<compile_context>
chip_gen: v6e
topology: v6e:2x2x1
jax: 0.10.0
libtpu: 0.0.40
codegen_flags: <defaults>
</compile_context>

<pallas_src>
import jax
import jax.numpy as jnp
from jax.experimental import pallas as pl
from jax.experimental.pallas import tpu as pltpu

ENC_DIMS = [(784, 512), (512, 256), (256, 64), (64, 20)]   # each followed by ReLU
DEC_DIMS = [(10, 64), (64, 256), (256, 512), (512, 784)]   # ReLU x3, then Sigmoid

FEAT = 784           # 28 * 28 (HBM-side feature width: unpadded)
FEAT_P = 896         # 784 padded to 7 * 128 (VMEM-side, first-matmul K / last-matmul N)
TILE_B = 512         # batch tile: amortizes grid-step overhead, VMEM-safe on v7x


def _pad128(n: int) -> int:
    return ((n + 127) // 128) * 128


def _ae_kernel(x_ref,
               ew0, eb0, ew1, eb1, ew2, eb2, ew3, eb3,
               dw0, db0, dw1, db1, dw2, db2, dw3, db3,
               o_ref, xpad_ref):
    # Pad x 784 -> 896 inside VMEM (zero lanes 784..895) so the first matmul's K is
    # lane-aligned; this replaces the old wrapper-side HBM pad.
    xpad_ref[...] = jnp.zeros_like(xpad_ref)
    xpad_ref[:, :FEAT] = x_ref[...]
    h = xpad_ref[...]                                # (tile_b, 896) bf16

    # ---- encoder (Linear->ReLU x4) then decoder (Linear->ReLU x3) ----
    # Weights are bf16 zero-padded to 128 multiples; biases f32 zero-padded.
    # TODO(synk): the original PyTorch module is internally inconsistent -- the encoder
    # emits 20 latent features but the decoder's first Linear expects 10, so
    # AutoEncoder.forward would raise in PyTorch. We bridge by zero-padding dw0's input
    # rows so only latent features 0..9 contribute (equivalent to truncating to 10).
    for w, b in ((ew0, eb0), (ew1, eb1), (ew2, eb2), (ew3, eb3),
                 (dw0, db0), (dw1, db1), (dw2, db2)):
        h = jnp.dot(h.astype(jnp.bfloat16), w[...],
                    preferred_element_type=jnp.float32) + b[...]
        h = jnp.maximum(h, 0.0)

    # final Linear (512 -> 896-padded 784) -> Sigmoid, store only the real 784 cols.
    h = jnp.dot(h.astype(jnp.bfloat16), dw3[...],
                preferred_element_type=jnp.float32) + db3[...]
    o_ref[...] = jax.nn.sigmoid(h[:, :FEAT]).astype(o_ref.dtype)


def init_params(key):
    """Deterministic init matching nn.Linear default (uniform +/- 1/sqrt(fan_in)).

    Weights are stored as (fan_in, fan_out) so the kernel computes x @ W + b,
    equivalent to PyTorch's x @ W_pt.T + b.
    """
    params = []
    for fan_in, fan_out in ENC_DIMS + DEC_DIMS:
        key, kw, kb = jax.random.split(key, 3)
        bound = 1.0 / (fan_in ** 0.5)
        w = jax.random.uniform(kw, (fan_in, fan_out), jnp.float32, -bound, bound)
        b = jax.random.uniform(kb, (1, fan_out), jnp.float32, -bound, bound)
        params += [w, b]
    return params


def pack_params(params):
    """Zero-pad every weight dim up to a multiple of 128 and cast weights to bf16.

    Zero-padded weight rows/cols contribute nothing, so results match the unpadded
    math (including the 20->10 latent truncation bridge for the decoder's first
    layer, whose padded rows 10..127 are zero).
    """
    packed = []
    for (fan_in, fan_out), w, b in zip(ENC_DIMS + DEC_DIMS,
                                       params[0::2], params[1::2]):
        ki, ko = _pad128(fan_in), _pad128(fan_out)
        wp = jnp.zeros((ki, ko), jnp.bfloat16).at[:fan_in, :fan_out].set(
            w.astype(jnp.bfloat16))
        bp = jnp.zeros((1, ko), jnp.float32).at[:, :fan_out].set(b)
        packed += [wp, bp]
    return packed


def autoencoder_forward(x_nchw, packed_params):
    B = x_nchw.shape[0]
    x = x_nchw.reshape(B, -1).astype(jnp.bfloat16)        # nn.Flatten -> (B, 784) bf16
    assert x.shape[1] == FEAT, f"expected {FEAT} features, got {x.shape[1]}"

    # No batch padding: small batches use a block equal to the full batch dim;
    # large batches tile at TILE_B with a (masked) partial last block. Rows are
    # fully independent, so garbage in OOB rows never affects real outputs.
    tile_b = B if B <= TILE_B else TILE_B
    grid = (pl.cdiv(B, tile_b),)

    # x/out: batch-blocked bf16 tiles (last dim = full 784 -> legal block shape).
    # Weights/biases: full arrays, constant index_map -> VMEM-resident across steps.
    x_spec = pl.BlockSpec((tile_b, FEAT), lambda i: (i, 0))
    out_spec = pl.BlockSpec((tile_b, FEAT), lambda i: (i, 0))
    param_specs = [pl.BlockSpec(p.shape, lambda i: (0, 0)) for p in packed_params]

    out = pl.pallas_call(
        _ae_kernel,
        out_shape=jax.ShapeDtypeStruct((B, FEAT), jnp.bfloat16),
        grid=grid,
        in_specs=[x_spec] + param_specs,
        out_specs=out_spec,
        scratch_shapes=[pltpu.VMEM((tile_b, FEAT_P), jnp.bfloat16)],
        compiler_params=pltpu.CompilerParams(
            dimension_semantics=("parallel",),
            vmem_limit_bytes=32 << 20),
    )(x, *packed_params)

    return out.reshape(B, 1, 28, 28)                      # matches reshape(-1, 1, 28, 28)


def reference_forward(x_nchw, params):
    """Pure-JAX f32 reference of the same forward (with the 20->10 latent bridge)."""
    B = x_nchw.shape[0]
    h = x_nchw.reshape(B, -1).astype(jnp.float32)
    ws, bs = params[0::2], params[1::2]
    for i in range(4):
        h = jnp.maximum(h @ ws[i] + bs[i], 0.0)
    h = h[:, :10]                                         # 20 -> 10 latent bridge
    for i in range(4, 7):
        h = jnp.maximum(h @ ws[i] + bs[i], 0.0)
    h = jax.nn.sigmoid(h @ ws[7] + bs[7])
    return h.reshape(B, 1, 28, 28)


if __name__ == "__main__":
    key = jax.random.PRNGKey(0)
    k_params, k_x = jax.random.split(key)
    params = init_params(k_params)
    packed = pack_params(params)
    x = jax.random.normal(k_x, (2, 1, 28, 28), dtype=jnp.float32)

    y = autoencoder_forward(x, packed)
    y = jax.block_until_ready(y)

    assert y.shape == (2, 1, 28, 28), y.shape
    y32 = y.astype(jnp.float32)
    assert bool(jnp.all(jnp.isfinite(y32)))
    assert bool(jnp.all((y32 >= 0.0) & (y32 <= 1.0)))     # sigmoid output range
    ref = reference_forward(x, params)
    max_err = float(jnp.max(jnp.abs(y32 - ref)))
    assert max_err < 5e-2, f"max abs err vs f32 reference: {max_err}"
    print("KERNEL_OK")
</pallas_src>

<mosaic_0001>
module attributes {stable_mosaic.version = 11 : i64} {
  func.func @_ae_kernel(%arg0: i32, %arg1: memref<2x784xbf16, #tpu.memory_space<vmem>>, %arg2: memref<896x512xbf16, #tpu.memory_space<vmem>>, %arg3: memref<1x512xf32, #tpu.memory_space<vmem>>, %arg4: memref<512x256xbf16, #tpu.memory_space<vmem>>, %arg5: memref<1x256xf32, #tpu.memory_space<vmem>>, %arg6: memref<256x128xbf16, #tpu.memory_space<vmem>>, %arg7: memref<1x128xf32, #tpu.memory_space<vmem>>, %arg8: memref<128x128xbf16, #tpu.memory_space<vmem>>, %arg9: memref<1x128xf32, #tpu.memory_space<vmem>>, %arg10: memref<128x128xbf16, #tpu.memory_space<vmem>>, %arg11: memref<1x128xf32, #tpu.memory_space<vmem>>, %arg12: memref<128x256xbf16, #tpu.memory_space<vmem>>, %arg13: memref<1x256xf32, #tpu.memory_space<vmem>>, %arg14: memref<256x512xbf16, #tpu.memory_space<vmem>>, %arg15: memref<1x512xf32, #tpu.memory_space<vmem>>, %arg16: memref<512x896xbf16, #tpu.memory_space<vmem>>, %arg17: memref<1x896xf32, #tpu.memory_space<vmem>>, %arg18: memref<2x784xbf16, #tpu.memory_space<vmem>>, %arg19: memref<2x896xbf16, #tpu.memory_space<vmem>>) attributes {dimension_semantics = [#tpu.dimension_semantics<parallel>], iteration_bounds = array<i64: 1>, scalar_prefetch = 0 : i64, scratch_operands = 1 : i64, tpu.core_type = #tpu.core_type<tc>, window_params = [{transform_indices = @transform_0, window_bounds = array<i64: 2, 784>}, {pipeline_mode = #tpu.pipeline_mode<synchronous>, transform_indices = @transform_1, window_bounds = array<i64: 896, 512>}, {pipeline_mode = #tpu.pipeline_mode<synchronous>, transform_indices = @transform_2, window_bounds = array<i64: 1, 512>}, {pipeline_mode = #tpu.pipeline_mode<synchronous>, transform_indices = @transform_3, window_bounds = array<i64: 512, 256>}, {pipeline_mode = #tpu.pipeline_mode<synchronous>, transform_indices = @transform_4, window_bounds = array<i64: 1, 256>}, {pipeline_mode = #tpu.pipeline_mode<synchronous>, transform_indices = @transform_5, window_bounds = array<i64: 256, 128>}, {pipeline_mode = #tpu.pipeline_mode<synchronous>, transform_indices = @transform_6, window_bounds = array<i64: 1, 128>}, {pipeline_mode = #tpu.pipeline_mode<synchronous>, transform_indices = @transform_7, window_bounds = array<i64: 128, 128>}, {pipeline_mode = #tpu.pipeline_mode<synchronous>, transform_indices = @transform_8, window_bounds = array<i64: 1, 128>}, {pipeline_mode = #tpu.pipeline_mode<synchronous>, transform_indices = @transform_9, window_bounds = array<i64: 128, 128>}, {pipeline_mode = #tpu.pipeline_mode<synchronous>, transform_indices = @transform_10, window_bounds = array<i64: 1, 128>}, {pipeline_mode = #tpu.pipeline_mode<synchronous>, transform_indices = @transform_11, window_bounds = array<i64: 128, 256>}, {pipeline_mode = #tpu.pipeline_mode<synchronous>, transform_indices = @transform_12, window_bounds = array<i64: 1, 256>}, {pipeline_mode = #tpu.pipeline_mode<synchronous>, transform_indices = @transform_13, window_bounds = array<i64: 256, 512>}, {pipeline_mode = #tpu.pipeline_mode<synchronous>, transform_indices = @transform_14, window_bounds = array<i64: 1, 512>}, {pipeline_mode = #tpu.pipeline_mode<synchronous>, transform_indices = @transform_15, window_bounds = array<i64: 512, 896>}, {pipeline_mode = #tpu.pipeline_mode<synchronous>, transform_indices = @transform_16, window_bounds = array<i64: 1, 896>}, {transform_indices = @transform_17, window_bounds = array<i64: 2, 784>}]} {
    %cst = arith.constant 0.000000e+00 : bf16
    %0 = vector.broadcast %cst : bf16 to vector<2x896xbf16>
    %c0 = arith.constant 0 : index
    %c0_0 = arith.constant 0 : index
    %1 = vector.load %arg19[%c0, %c0_0] : memref<2x896xbf16, #tpu.memory_space<vmem>>, vector<2x896xbf16>
    tpu.vector_store %arg19[%c0, %c0_0], %0 {strides = array<i32>} : memref<2x896xbf16, #tpu.memory_space<vmem>>, vector<2x896xbf16>,
    %c0_1 = arith.constant 0 : index
    %c0_2 = arith.constant 0 : index
    %2 = vector.load %arg1[%c0_1, %c0_2] : memref<2x784xbf16, #tpu.memory_space<vmem>>, vector<2x784xbf16>
    %c0_3 = arith.constant 0 : index
    %c0_4 = arith.constant 0 : index
    %3 = vector.load %arg19[%c0_3, %c0_4] : memref<2x896xbf16, #tpu.memory_space<vmem>>, vector<2x784xbf16>
    tpu.vector_store %arg19[%c0_3, %c0_4], %2 {strides = array<i32>} : memref<2x896xbf16, #tpu.memory_space<vmem>>, vector<2x784xbf16>,
    %c0_5 = arith.constant 0 : index
    %c0_6 = arith.constant 0 : index
    %4 = vector.load %arg19[%c0_5, %c0_6] : memref<2x896xbf16, #tpu.memory_space<vmem>>, vector<2x896xbf16>
    %c0_7 = arith.constant 0 : index
    %c0_8 = arith.constant 0 : index
    %5 = vector.load %arg2[%c0_7, %c0_8] : memref<896x512xbf16, #tpu.memory_space<vmem>>, vector<896x512xbf16>
    %cst_9 = arith.constant dense<0.000000e+00> : vector<2x512xf32>
    %6 = tpu.matmul %4, %5, %cst_9 {dimension_numbers = #tpu.dot_dimension_numbers<[1], [0], [0], [1], [0, 0, 1, 1], [], []>} : vector<2x896xbf16>, vector<896x512xbf16>, vector<2x512xf32> -> vector<2x512xf32>
    %c0_10 = arith.constant 0 : index
    %c0_11 = arith.constant 0 : index
    %7 = vector.load %arg3[%c0_10, %c0_11] : memref<1x512xf32, #tpu.memory_space<vmem>>, vector<1x512xf32>
    %8 = vector.broadcast %7 : vector<1x512xf32> to vector<2x512xf32>
    %9 = arith.addf %6, %8 : vector<2x512xf32>
    %cst_12 = arith.constant 0.000000e+00 : f32
    %10 = vector.broadcast %cst_12 : f32 to vector<2x512xf32>
    %11 = arith.maximumf %9, %10 : vector<2x512xf32>
    %12 = arith.truncf %11 : vector<2x512xf32> to vector<2x512xbf16>
    %c0_13 = arith.constant 0 : index
    %c0_14 = arith.constant 0 : index
    %13 = vector.load %arg4[%c0_13, %c0_14] : memref<512x256xbf16, #tpu.memory_space<vmem>>, vector<512x256xbf16>
    %cst_15 = arith.constant dense<0.000000e+00> : vector<2x256xf32>
    %14 = tpu.matmul %12, %13, %cst_15 {dimension_numbers = #tpu.dot_dimension_numbers<[1], [0], [0], [1], [0, 0, 1, 1], [], []>} : vector<2x512xbf16>, vector<512x256xbf16>, vector<2x256xf32> -> vector<2x256xf32>
    %c0_16 = arith.constant 0 : index
    %c0_17 = arith.constant 0 : index
    %15 = vector.load %arg5[%c0_16, %c0_17] : memref<1x256xf32, #tpu.memory_space<vmem>>, vector<1x256xf32>
    %16 = vector.broadcast %15 : vector<1x256xf32> to vector<2x256xf32>
    %17 = arith.addf %14, %16 : vector<2x256xf32>
    %cst_18 = arith.constant 0.000000e+00 : f32
    %18 = vector.broadcast %cst_18 : f32 to vector<2x256xf32>
    %19 = arith.maximumf %17, %18 : vector<2x256xf32>
    %20 = arith.truncf %19 : vector<2x256xf32> to vector<2x256xbf16>
    %c0_19 = arith.constant 0 : index
    %c0_20 = arith.constant 0 : index
    %21 = vector.load %arg6[%c0_19, %c0_20] : memref<256x128xbf16, #tpu.memory_space<vmem>>, vector<256x128xbf16>
    %cst_21 = arith.constant dense<0.000000e+00> : vector<2x128xf32>
    %22 = tpu.matmul %20, %21, %cst_21 {dimension_numbers = #tpu.dot_dimension_numbers<[1], [0], [0], [1], [0, 0, 1, 1], [], []>} : vector<2x256xbf16>, vector<256x128xbf16>, vector<2x128xf32> -> vector<2x128xf32>
    %c0_22 = arith.constant 0 : index
    %c0_23 = arith.constant 0 : index
    %23 = vector.load %arg7[%c0_22, %c0_23] : memref<1x128xf32, #tpu.memory_space<vmem>>, vector<1x128xf32>
    %24 = vector.broadcast %23 : vector<1x128xf32> to vector<2x128xf32>
    %25 = arith.addf %22, %24 : vector<2x128xf32>
    %cst_24 = arith.constant 0.000000e+00 : f32
    %26 = vector.broadcast %cst_24 : f32 to vector<2x128xf32>
    %27 = arith.maximumf %25, %26 : vector<2x128xf32>
    %28 = arith.truncf %27 : vector<2x128xf32> to vector<2x128xbf16>
    %c0_25 = arith.constant 0 : index
    %c0_26 = arith.constant 0 : index
    %29 = vector.load %arg8[%c0_25, %c0_26] : memref<128x128xbf16, #tpu.memory_space<vmem>>, vector<128x128xbf16>
    %cst_27 = arith.constant dense<0.000000e+00> : vector<2x128xf32>
    %30 = tpu.matmul %28, %29, %cst_27 {dimension_numbers = #tpu.dot_dimension_numbers<[1], [0], [0], [1], [0, 0, 1, 1], [], []>} : vector<2x128xbf16>, vector<128x128xbf16>, vector<2x128xf32> -> vector<2x128xf32>
    %c0_28 = arith.constant 0 : index
    %c0_29 = arith.constant 0 : index
    %31 = vector.load %arg9[%c0_28, %c0_29] : memref<1x128xf32, #tpu.memory_space<vmem>>, vector<1x128xf32>
    %32 = vector.broadcast %31 : vector<1x128xf32> to vector<2x128xf32>
    %33 = arith.addf %30, %32 : vector<2x128xf32>
    %cst_30 = arith.constant 0.000000e+00 : f32
    %34 = vector.broadcast %cst_30 : f32 to vector<2x128xf32>
    %35 = arith.maximumf %33, %34 : vector<2x128xf32>
    %36 = arith.truncf %35 : vector<2x128xf32> to vector<2x128xbf16>
    %c0_31 = arith.constant 0 : index
    %c0_32 = arith.constant 0 : index
    %37 = vector.load %arg10[%c0_31, %c0_32] : memref<128x128xbf16, #tpu.memory_space<vmem>>, vector<128x128xbf16>
    %cst_33 = arith.constant dense<0.000000e+00> : vector<2x128xf32>
    %38 = tpu.matmul %36, %37, %cst_33 {dimension_numbers = #tpu.dot_dimension_numbers<[1], [0], [0], [1], [0, 0, 1, 1], [], []>} : vector<2x128xbf16>, vector<128x128xbf16>, vector<2x128xf32> -> vector<2x128xf32>
    %c0_34 = arith.constant 0 : index
    %c0_35 = arith.constant 0 : index
    %39 = vector.load %arg11[%c0_34, %c0_35] : memref<1x128xf32, #tpu.memory_space<vmem>>, vector<1x128xf32>
    %40 = vector.broadcast %39 : vector<1x128xf32> to vector<2x128xf32>
    %41 = arith.addf %38, %40 : vector<2x128xf32>
    %cst_36 = arith.constant 0.000000e+00 : f32
    %42 = vector.broadcast %cst_36 : f32 to vector<2x128xf32>
    %43 = arith.maximumf %41, %42 : vector<2x128xf32>
    %44 = arith.truncf %43 : vector<2x128xf32> to vector<2x128xbf16>
    %c0_37 = arith.constant 0 : index
    %c0_38 = arith.constant 0 : index
    %45 = vector.load %arg12[%c0_37, %c0_38] : memref<128x256xbf16, #tpu.memory_space<vmem>>, vector<128x256xbf16>
    %cst_39 = arith.constant dense<0.000000e+00> : vector<2x256xf32>
    %46 = tpu.matmul %44, %45, %cst_39 {dimension_numbers = #tpu.dot_dimension_numbers<[1], [0], [0], [1], [0, 0, 1, 1], [], []>} : vector<2x128xbf16>, vector<128x256xbf16>, vector<2x256xf32> -> vector<2x256xf32>
    %c0_40 = arith.constant 0 : index
    %c0_41 = arith.constant 0 : index
    %47 = vector.load %arg13[%c0_40, %c0_41] : memref<1x256xf32, #tpu.memory_space<vmem>>, vector<1x256xf32>
    %48 = vector.broadcast %47 : vector<1x256xf32> to vector<2x256xf32>
    %49 = arith.addf %46, %48 : vector<2x256xf32>
    %cst_42 = arith.constant 0.000000e+00 : f32
    %50 = vector.broadcast %cst_42 : f32 to vector<2x256xf32>
    %51 = arith.maximumf %49, %50 : vector<2x256xf32>
    %52 = arith.truncf %51 : vector<2x256xf32> to vector<2x256xbf16>
    %c0_43 = arith.constant 0 : index
    %c0_44 = arith.constant 0 : index
    %53 = vector.load %arg14[%c0_43, %c0_44] : memref<256x512xbf16, #tpu.memory_space<vmem>>, vector<256x512xbf16>
    %cst_45 = arith.constant dense<0.000000e+00> : vector<2x512xf32>
    %54 = tpu.matmul %52, %53, %cst_45 {dimension_numbers = #tpu.dot_dimension_numbers<[1], [0], [0], [1], [0, 0, 1, 1], [], []>} : vector<2x256xbf16>, vector<256x512xbf16>, vector<2x512xf32> -> vector<2x512xf32>
    %c0_46 = arith.constant 0 : index
    %c0_47 = arith.constant 0 : index
    %55 = vector.load %arg15[%c0_46, %c0_47] : memref<1x512xf32, #tpu.memory_space<vmem>>, vector<1x512xf32>
    %56 = vector.broadcast %55 : vector<1x512xf32> to vector<2x512xf32>
    %57 = arith.addf %54, %56 : vector<2x512xf32>
    %cst_48 = arith.constant 0.000000e+00 : f32
    %58 = vector.broadcast %cst_48 : f32 to vector<2x512xf32>
    %59 = arith.maximumf %57, %58 : vector<2x512xf32>
    %60 = arith.truncf %59 : vector<2x512xf32> to vector<2x512xbf16>
    %c0_49 = arith.constant 0 : index
    %c0_50 = arith.constant 0 : index
    %61 = vector.load %arg16[%c0_49, %c0_50] : memref<512x896xbf16, #tpu.memory_space<vmem>>, vector<512x896xbf16>
    %cst_51 = arith.constant dense<0.000000e+00> : vector<2x896xf32>
    %62 = tpu.matmul %60, %61, %cst_51 {dimension_numbers = #tpu.dot_dimension_numbers<[1], [0], [0], [1], [0, 0, 1, 1], [], []>} : vector<2x512xbf16>, vector<512x896xbf16>, vector<2x896xf32> -> vector<2x896xf32>
    %c0_52 = arith.constant 0 : index
    %c0_53 = arith.constant 0 : index
    %63 = vector.load %arg17[%c0_52, %c0_53] : memref<1x896xf32, #tpu.memory_space<vmem>>, vector<1x896xf32>
    %64 = vector.broadcast %63 : vector<1x896xf32> to vector<2x896xf32>
    %65 = arith.addf %62, %64 : vector<2x896xf32>
    %66 = vector.extract_strided_slice %65 {offsets = [0, 0], sizes = [2, 784], strides = [1, 1]} : vector<2x896xf32> to vector<2x784xf32>
    %67 = arith.negf %66 : vector<2x784xf32>
    %68 = math.exp %67 : vector<2x784xf32>
    %cst_54 = arith.constant 1.000000e+00 : f32
    %69 = vector.broadcast %cst_54 : f32 to vector<2x784xf32>
    %70 = arith.addf %69, %68 : vector<2x784xf32>
    %71 = arith.divf %69, %70 : vector<2x784xf32>
    %72 = arith.truncf %71 : vector<2x784xf32> to vector<2x784xbf16>
    %c0_55 = arith.constant 0 : index
    %c0_56 = arith.constant 0 : index
    %73 = vector.load %arg18[%c0_55, %c0_56] : memref<2x784xbf16, #tpu.memory_space<vmem>>, vector<2x784xbf16>
    tpu.vector_store %arg18[%c0_55, %c0_56], %72 {strides = array<i32>} : memref<2x784xbf16, #tpu.memory_space<vmem>>, vector<2x784xbf16>,
    return
  }
  func.func @transform_0(%arg0: i32) -> (i32, i32) {
    %c0_i32 = arith.constant 0 : i32
    %c0_i32_0 = arith.constant 0 : i32
    return %arg0, %c0_i32 : i32, i32
  }
  func.func @transform_1(%arg0: i32) -> (i32, i32) {
    %c0_i32 = arith.constant 0 : i32
    %c0_i32_0 = arith.constant 0 : i32
    %c0_i32_1 = arith.constant 0 : i32
    return %c0_i32, %c0_i32_0 : i32, i32
  }
  func.func @transform_2(%arg0: i32) -> (i32, i32) {
    %c0_i32 = arith.constant 0 : i32
    %c0_i32_0 = arith.constant 0 : i32
    %c0_i32_1 = arith.constant 0 : i32
    return %c0_i32, %c0_i32_0 : i32, i32
  }
  func.func @transform_3(%arg0: i32) -> (i32, i32) {
    %c0_i32 = arith.constant 0 : i32
    %c0_i32_0 = arith.constant 0 : i32
    %c0_i32_1 = arith.constant 0 : i32
    return %c0_i32, %c0_i32_0 : i32, i32
  }
  func.func @transform_4(%arg0: i32) -> (i32, i32) {
    %c0_i32 = arith.constant 0 : i32
    %c0_i32_0 = arith.constant 0 : i32
    %c0_i32_1 = arith.constant 0 : i32
    return %c0_i32, %c0_i32_0 : i32, i32
  }
  func.func @transform_5(%arg0: i32) -> (i32, i32) {
    %c0_i32 = arith.constant 0 : i32
    %c0_i32_0 = arith.constant 0 : i32
    %c0_i32_1 = arith.constant 0 : i32
    return %c0_i32, %c0_i32_0 : i32, i32
  }
  func.func @transform_6(%arg0: i32) -> (i32, i32) {
    %c0_i32 = arith.constant 0 : i32
    %c0_i32_0 = arith.constant 0 : i32
    %c0_i32_1 = arith.constant 0 : i32
    return %c0_i32, %c0_i32_0 : i32, i32
  }
  func.func @transform_7(%arg0: i32) -> (i32, i32) {
    %c0_i32 = arith.constant 0 : i32
    %c0_i32_0 = arith.constant 0 : i32
    %c0_i32_1 = arith.constant 0 : i32
    return %c0_i32, %c0_i32_0 : i32, i32
  }
  func.func @transform_8(%arg0: i32) -> (i32, i32) {
    %c0_i32 = arith.constant 0 : i32
    %c0_i32_0 = arith.constant 0 : i32
    %c0_i32_1 = arith.constant 0 : i32
    return %c0_i32, %c0_i32_0 : i32, i32
  }
  func.func @transform_9(%arg0: i32) -> (i32, i32) {
    %c0_i32 = arith.constant 0 : i32
    %c0_i32_0 = arith.constant 0 : i32
    %c0_i32_1 = arith.constant 0 : i32
    return %c0_i32, %c0_i32_0 : i32, i32
  }
  func.func @transform_10(%arg0: i32) -> (i32, i32) {
    %c0_i32 = arith.constant 0 : i32
    %c0_i32_0 = arith.constant 0 : i32
    %c0_i32_1 = arith.constant 0 : i32
    return %c0_i32, %c0_i32_0 : i32, i32
  }
  func.func @transform_11(%arg0: i32) -> (i32, i32) {
    %c0_i32 = arith.constant 0 : i32
    %c0_i32_0 = arith.constant 0 : i32
    %c0_i32_1 = arith.constant 0 : i32
    return %c0_i32, %c0_i32_0 : i32, i32
  }
  func.func @transform_12(%arg0: i32) -> (i32, i32) {
    %c0_i32 = arith.constant 0 : i32
    %c0_i32_0 = arith.constant 0 : i32
    %c0_i32_1 = arith.constant 0 : i32
    return %c0_i32, %c0_i32_0 : i32, i32
  }
  func.func @transform_13(%arg0: i32) -> (i32, i32) {
    %c0_i32 = arith.constant 0 : i32
    %c0_i32_0 = arith.constant 0 : i32
    %c0_i32_1 = arith.constant 0 : i32
    return %c0_i32, %c0_i32_0 : i32, i32
  }
  func.func @transform_14(%arg0: i32) -> (i32, i32) {
    %c0_i32 = arith.constant 0 : i32
    %c0_i32_0 = arith.constant 0 : i32
    %c0_i32_1 = arith.constant 0 : i32
    return %c0_i32, %c0_i32_0 : i32, i32
  }
  func.func @transform_15(%arg0: i32) -> (i32, i32) {
    %c0_i32 = arith.constant 0 : i32
    %c0_i32_0 = arith.constant 0 : i32
    %c0_i32_1 = arith.constant 0 : i32
    return %c0_i32, %c0_i32_0 : i32, i32
  }
  func.func @transform_16(%arg0: i32) -> (i32, i32) {
    %c0_i32 = arith.constant 0 : i32
    %c0_i32_0 = arith.constant 0 : i32
    %c0_i32_1 = arith.constant 0 : i32
    return %c0_i32, %c0_i32_0 : i32, i32
  }
  func.func @transform_17(%arg0: i32) -> (i32, i32) {
    %c0_i32 = arith.constant 0 : i32
    %c0_i32_0 = arith.constant 0 : i32
    return %arg0, %c0_i32 : i32, i32
  }
}

</mosaic_0001>

<bundles_post_ra>
// kernel: tpu_custom_call.1
= control target key start
LH: loop header
LB: loop body
LE: loop exit
PB: predicated region body
PF: predicated region fallthrough
CT: control target
= control target key end

     0   :  { %s7730_s0 = inlined_call_operand.hbm [shape: bf16[2,784], index: 0, kind: input, shape index: {}]   ;;  %s7731_s1 = inlined_call_operand.hbm [shape: bf16[896,512], index: 1, kind: input, shape index: {}]   ;;  %s7732_s2 = inlined_call_operand.hbm [shape: f32[1,512], index: 2, kind: input, shape index: {}]   ;;  %s7733_s3 = inlined_call_operand.hbm [shape: bf16[512,256], index: 3, kind: input, shape index: {}]   ;;  %s7734_s4 = inlined_call_operand.vmem [shape: f32[1,256], index: 4, kind: input, shape index: {}]   ;;  %s7735_s5 = inlined_call_operand.hbm [shape: bf16[256,128], index: 5, kind: input, shape index: {}]   ;;  %s7736_s6 = inlined_call_operand.vmem [shape: f32[1,128], index: 6, kind: input, shape index: {}]   ;;  %s7737_s7 = inlined_call_operand.hbm [shape: bf16[128,128], index: 7, kind: input, shape index: {}]   ;;  %s7738_s8 = inlined_call_operand.hbm [shape: f32[1,128], index: 8, kind: input, shape index: {}]   ;;  %s7739_s9 = inlined_call_operand.hbm [shape: bf16[128,128], index: 9, kind: input, shape index: {}]   ;;  %s7740_s10 = inlined_call_operand.vmem [shape: f32[1,128], index: 10, kind: input, shape index: {}]   ;;  %s7741_s11 = inlined_call_operand.hbm [shape: bf16[128,256], index: 11, kind: input, shape index: {}]   ;;  %s7742_s12 = inlined_call_operand.vmem [shape: f32[1,256], index: 12, kind: input, shape index: {}]   ;;  %s7743_s13 = inlined_call_operand.hbm [shape: bf16[256,512], index: 13, kind: input, shape index: {}]   ;;  %s7744_s14 = inlined_call_operand.vmem [shape: f32[1,512], index: 14, kind: input, shape index: {}]   ;;  %s7745_s15 = inlined_call_operand.hbm [shape: bf16[512,896], index: 15, kind: input, shape index: {}]   ;;  %s7746_s16 = inlined_call_operand.vmem [shape: f32[1,896], index: 16, kind: input, shape index: {}]   ;;  %s7747_s17 = inlined_call_operand.hbm [shape: bf16[2,784], index: 17, kind: output, shape index: {}]  }
   0x1   :  { %7749 = sst [smem:[#allocation29_spill]] %s7730_s0 }
   0x2   :  { %7750 = sst [smem:[#allocation30_spill]] %s7731_s1 }
   0x3   :  { %22 = vsyncpa [#allocation4], 0 }
   0x4   :  { %23 = vsyncpa [#allocation7], 0 }
   0x5   :  { %24 = vsyncpa [#allocation10], 0 }
   0x6   :  { %25 = vsyncpa [#allocation13], 0 }
   0x7   :  { %26 = vsyncpa [#allocation16], 0 }
   0x8   :  { %27 = vsyncpa [#allocation19], 0 }
   0x9   :  { %28 = vsyncpa [#allocation5], 0  ;;  %s7379_s24 = smov [#allocation6]  }
   0xa   :  { %s44_s25 = sshll.u32 %s7379_s24, 4  ;;  %s45_s25 = int_to_ptr.vmem [resolvable:$true] %s44_s25 }
   0xb   :  { %s7133_s26 = scalar_lea.vmem %s45_s25, 28672  ;;  %p7138_p1 = scmp.lt.s32.totalorder %s45_s25, %s45_s25 }
   0xc   :  { %p7134_p0 = scmp.ne.s32.totalorder %s45_s25, %s7133_s26  ;;  %p7139_p2 = scmp.lt.s32.totalorder %s7133_s26, %s7133_s26 }
   0xe   :  { %p7140_p3 = por %p7139_p2, %p7138_p1 }
  0x10   :  { %p7141_p4 = pnand %p7140_p3, %p7134_p0 }
  0x12   :  { %7144 = shalt.err (!%p7141_p4)
}
  0x13   :  { %s7380_s27 = smov 256   ;;  %s7381_s28 = smov 16  }
  0x14   :  { %s7751_s30 = sld [smem:[#allocation30_spill]]  ;;  %s7382_s18 = smov [#allocation9]  }
  0x15   :  { %s66_s19 = sshll.u32 %s7382_s18, 4  ;;  %s67_s19 = int_to_ptr.vmem [resolvable:$true] %s66_s19 }
  0x16   :  { %s7153_s1 = scalar_lea.vmem %s67_s19, 8192  ;;  %p7158_p6 = scmp.lt.s32.totalorder %s67_s19, %s67_s19 }
  0x17   :  { %p7154_p5 = scmp.ne.s32.totalorder %s67_s19, %s7153_s1  ;;  %p7159_p7 = scmp.lt.s32.totalorder %s7153_s1, %s7153_s1 }
  0x19   :  { %p7160_p8 = por %p7159_p7, %p7158_p6 }
  0x1a   :  { %50 = dma.hbm_to_vmem [thread:$0]  %s7751_s30, 28672, %s45_s25, [#allocation7], %s7380_s27, %s7380_s27, %s7381_s28  }
  0x1b   :  { %p7161_p9 = pnand %p7160_p8, %p7154_p5 }
  0x1d   :  { %7164 = shalt.err (!%p7161_p9)
}
  0x1e   :  { %s7748_s20 = smov 128   ;;  %s7384_s21 = smov 8  }
  0x1f   :  { %72 = dma.hbm_to_vmem [thread:$0]  %s7733_s3, 8192, %s67_s19, [#allocation10], %s7748_s20, %s7748_s20, %s7384_s21  }
  0x20   :  { %s7385_s24 = smov [#allocation12]   ;;  %s7386_s26 = smov [#allocation15]  }
  0x21   :  { %s94_s25 = sshll.u32 %s7385_s24, 4  ;;  %s116_s29 = sshll.u32 %s7386_s26, 4  ;;  %s95_s25 = int_to_ptr.vmem [resolvable:$true] %s94_s25  ;;  %s117_s29 = int_to_ptr.vmem [resolvable:$true] %s116_s29 }
  0x22   :  { %s7173_s0 = scalar_lea.vmem %s95_s25, 1024  ;;  %p7178_p11 = scmp.lt.s32.totalorder %s95_s25, %s95_s25 }
  0x23   :  { %p7174_p10 = scmp.ne.s32.totalorder %s95_s25, %s7173_s0  ;;  %p7179_p12 = scmp.lt.s32.totalorder %s7173_s0, %s7173_s0 }
  0x25   :  { %p7180_p13 = por %p7179_p12, %p7178_p11 }
  0x27   :  { %p7181_p0 = pnand %p7180_p13, %p7174_p10 }
  0x29   :  { %7184 = shalt.err (!%p7181_p0)
}
  0x2a   :  { %s7387_s30 = smov 64   ;;  %s7388_s18 = smov 4  }
  0x2b   :  { %100 = dma.hbm_to_vmem [thread:$0]  %s7737_s7, 1024, %s95_s25, [#allocation13], %s7387_s30, %s7387_s30, %s7388_s18  }
  0x2c   :  { %s7193_s19 = scalar_lea.vmem %s117_s29, 1024  ;;  %p7198_p2 = scmp.lt.s32.totalorder %s117_s29, %s117_s29 }
  0x2d   :  { %p7194_p1 = scmp.ne.s32.totalorder %s117_s29, %s7193_s19  ;;  %p7199_p3 = scmp.lt.s32.totalorder %s7193_s19, %s7193_s19 }
  0x2f   :  { %p7200_p4 = por %p7199_p3, %p7198_p2 }
  0x31   :  { %p7201_p5 = pnand %p7200_p4, %p7194_p1 }
  0x33   :  { %7204 = shalt.err (!%p7201_p5)
}
  0x34   :  { %122 = dma.hbm_to_vmem [thread:$0]  %s7739_s9, 1024, %s117_s29, [#allocation16], %s7387_s30, %s7387_s30, %s7388_s18  }
  0x35   :  { %s7389_s24 = smov [#allocation18]   ;;  %s7390_s0 = smov [#allocation3]  }
  0x36   :  { %s144_s26 = sshll.u32 %s7389_s24, 4  ;;  %s35_s20 = sshll.u32 %s7390_s0, 4  ;;  %s145_s26 = int_to_ptr.vmem [resolvable:$true] %s144_s26  ;;  %s36_s20 = int_to_ptr.vmem [resolvable:$true] %s35_s20 }
  0x37   :  { %s7213_s7 = scalar_lea.vmem %s145_s26, 8192  ;;  %p7218_p7 = scmp.lt.s32.totalorder %s145_s26, %s145_s26 }
  0x38   :  { %p7214_p6 = scmp.ne.s32.totalorder %s145_s26, %s7213_s7  ;;  %p7219_p8 = scmp.lt.s32.totalorder %s7213_s7, %s7213_s7 }
  0x3a   :  { %p7220_p9 = por %p7219_p8, %p7218_p7 }
  0x3c   :  { %p7221_p10 = pnand %p7220_p9, %p7214_p6 }
  0x3e   :  { %7224 = shalt.err (!%p7221_p10)
}
  0x3f   :  { %150 = dma.hbm_to_vmem [thread:$0]  %s7743_s13, 8192, %s145_s26, [#allocation19], %s7380_s27, %s7380_s27, %s7381_s28  }
  0x40   :  { %s7233_s9 = scalar_lea.vmem %s36_s20, 112  ;;  %s7237_s29 = scalar_lea.vmem %s36_s20, 128 }
  0x41   :  { %p7234_p11 = scmp.ne.s32.totalorder %s36_s20, %s7233_s9  ;;  %p7238_p12 = scmp.lt.s32.totalorder %s36_s20, %s36_s20 }
  0x42   :  { %p7239_p13 = scmp.lt.s32.totalorder %s7237_s29, %s7233_s9 }
  0x44   :  { %p7240_p0 = por %p7239_p13, %p7238_p12 }
  0x46   :  { %p7241_p1 = pnand %p7240_p0, %p7234_p11 }
  0x48   :  { %7244 = shalt.err (!%p7241_p1)
}
  0x49   :  { %s7752_s22 = sld [smem:[#allocation29_spill]]  ;;  %s7391_s23 = smov [#allocation8]  }
  0x4a   :  { %s57_s24 = sshll.u32 %s7391_s23, 4  ;;  %s7392_s0 = smov [#allocation11]   ;;  %s58_s24 = int_to_ptr.vmem [resolvable:$true] %s57_s24 }
  0x4b   :  { %s80_s7 = sshll.u32 %s7392_s0, 4  ;;  %s7253_s25 = scalar_lea.vmem %s58_s24, 64  ;;  %s81_s7 = int_to_ptr.vmem [resolvable:$true] %s80_s7 }
  0x4c   :  { %p7254_p2 = scmp.ne.s32.totalorder %s58_s24, %s7253_s25  ;;  %p7258_p3 = scmp.lt.s32.totalorder %s58_s24, %s58_s24 }
  0x4d   :  { %p7259_p4 = scmp.lt.s32.totalorder %s7253_s25, %s7253_s25 }
  0x4f   :  { %38 = dma.hbm_to_vmem [thread:$0]  %s7752_s22, 112, %s36_s20, [#allocation4]  }
  0x50   :  { %p7260_p5 = por %p7259_p4, %p7258_p3 }
  0x52   :  { %p7261_p6 = pnand %p7260_p5, %p7254_p2 }
  0x54   :  { %7264 = shalt.err (!%p7261_p6)
}
  0x55   :  { %60 = dma.hbm_to_vmem [thread:$0]  %s7732_s2, 64, %s58_s24, [#allocation7]  }
  0x56   :  { %s7273_s28 = scalar_lea.vmem %s81_s7, 2048  ;;  %p7278_p8 = scmp.lt.s32.totalorder %s81_s7, %s81_s7 }
  0x57   :  { %p7274_p7 = scmp.ne.s32.totalorder %s81_s7, %s7273_s28  ;;  %p7279_p9 = scmp.lt.s32.totalorder %s7273_s28, %s7273_s28 }
  0x59   :  { %p7280_p10 = por %p7279_p9, %p7278_p8 }
  0x5b   :  { %p7281_p11 = pnand %p7280_p10, %p7274_p7 }
  0x5d   :  { %7284 = shalt.err (!%p7281_p11)
}
  0x5e   :  { %86 = dma.hbm_to_vmem [thread:$0]  %s7735_s5, 2048, %s81_s7, [#allocation10], %s7387_s30, %s7387_s30, %s7388_s18  }
  0x5f   :  { %s7393_s1 = smov [#allocation14]   ;;  %s7394_s29 = smov [#allocation17]  }
  0x60   :  { %s107_s9 = sshll.u32 %s7393_s1, 4  ;;  %s130_s3 = sshll.u32 %s7394_s29, 4  ;;  %s108_s9 = int_to_ptr.vmem [resolvable:$true] %s107_s9  ;;  %s131_s3 = int_to_ptr.vmem [resolvable:$true] %s130_s3 }
  0x61   :  { %s7293_s2 = scalar_lea.vmem %s108_s9, 16  ;;  %s7297_s19 = scalar_lea.vmem %s108_s9, 32 }
  0x62   :  { %p7294_p12 = scmp.ne.s32.totalorder %s108_s9, %s7293_s2  ;;  %p7298_p13 = scmp.lt.s32.totalorder %s108_s9, %s108_s9 }
  0x63   :  { %p7299_p0 = scmp.lt.s32.totalorder %s7297_s19, %s7293_s2 }
  0x65   :  { %p7300_p1 = por %p7299_p0, %p7298_p13 }
  0x67   :  { %p7301_p2 = pnand %p7300_p1, %p7294_p12 }
  0x69   :  { %7304 = shalt.err (!%p7301_p2)
}
  0x6a   :  { %110 = dma.hbm_to_vmem [thread:$0]  %s7738_s8, 16, %s108_s9, [#allocation13]  }
  0x6b   :  { %s7313_s24 = scalar_lea.vmem %s131_s3, 2048  ;;  %p7318_p4 = scmp.lt.s32.totalorder %s131_s3, %s131_s3 }
  0x6c   :  { %p7314_p3 = scmp.ne.s32.totalorder %s131_s3, %s7313_s24  ;;  %p7319_p5 = scmp.lt.s32.totalorder %s7313_s24, %s7313_s24 }
  0x6e   :  { %p7320_p6 = por %p7319_p5, %p7318_p4 }
  0x70   :  { %p7321_p7 = pnand %p7320_p6, %p7314_p3 }
  0x72   :  { %7324 = shalt.err (!%p7321_p7)
}
  0x73   :  { %s7753_s5 = smov 128   ;;  %s7395_s0 = smov [#allocation20]  }
  0x74   :  { %136 = dma.hbm_to_vmem [thread:$0]  %s7741_s11, 2048, %s131_s3, [#allocation16], %s7753_s5, %s7753_s5, %s7384_s21  }
  0x75   :  { %s158_s7 = sshll.u32 %s7395_s0, 4  ;;  %s159_s7 = int_to_ptr.vmem [resolvable:$true] %s158_s7 }
  0x76   :  { %s7333_s25 = scalar_lea.vmem %s159_s7, 28672  ;;  %p7338_p9 = scmp.lt.s32.totalorder %s159_s7, %s159_s7 }
  0x77   :  { %p7334_p8 = scmp.ne.s32.totalorder %s159_s7, %s7333_s25  ;;  %p7339_p10 = scmp.lt.s32.totalorder %s7333_s25, %s7333_s25 }
  0x79   :  { %p7340_p11 = por %p7339_p10, %p7338_p9 }
  0x7b   :  { %p7341_p12 = pnand %p7340_p11, %p7334_p8 }
  0x7d   :  { %7344 = shalt.err (!%p7341_p12)
}
  0x7e   :  { %s7396_s8 = smov 448   ;;  %s7397_s13 = smov 28  }
  0x7f   :  { %164 = dma.hbm_to_vmem [thread:$0]  %s7745_s15, 28672, %s159_s7, [#allocation19], %s7396_s8, %s7396_s8, %s7397_s13  }
  0x80   :  { %7365 = dma.done.wait [#allocation4], 112  }
  0x81   :  { %7366 = vsyncadd [#allocation4], 4294967184 }
  0x82   :  { %7367 = dma.done.wait [#allocation7], 28736  }
  0x83   :  { %7368 = vsyncadd [#allocation7], 4294938560 }
  0x84   :  { %7369 = dma.done.wait [#allocation10], 10240  }
  0x85   :  { %7370 = vsyncadd [#allocation10], 4294957056 }
  0x86   :  { %7371 = dma.done.wait [#allocation13], 1040  }
  0x87   :  { %7372 = vsyncadd [#allocation13], 4294966256 }
  0x88   :  { %7373 = dma.done.wait [#allocation16], 3072  }
  0x89   :  { %7374 = vsyncadd [#allocation16], 4294964224 }
  0x8a   :  { %7375 = dma.done.wait [#allocation19], 36864  }
  0x8b   :  { %7376 = vsyncadd [#allocation19], 4294930432  ;;  %v7398_v0 = vmov 0   ;;  %v6192_v1 = vld [vmem:[#allocation6 + $0xe4] ss:$16 sps:$4 sm:$0xff]   ;;  %vm203_vm0 = vcmask 1040384   ;;  %v444_v46 = vlaneseq }
  0x8c   :  { %201 = vst [vmem:[#allocation2] sm:$0x7f] %v7398_v0  ;;  %v6194_v2 = vld [vmem:[#allocation6 + $0x2e4] ss:$16 sps:$4 sm:$0xff]   ;;  %1640 = vmatprep.subr.bf16.mxu0 %v6192_v1  ;;  %v6196_v3 = vld [vmem:[#allocation6 + $0xe0] ss:$16 sps:$4 sm:$0xff]  }
  0x8d   :  { %v6197_v4 = vld [vmem:[#allocation6 + $0x2e0] ss:$16 sps:$4 sm:$0xff]   ;;  %1681 = vmatprep.subr.bf16.mxu1 %v6194_v2  ;;  %v6198_v5 = vld [vmem:[#allocation6 + $0xc4] ss:$16 sps:$4 sm:$0xff]   ;;  %1641 = vmatpush1.bf16.msra.mxu0 %v6196_v3  ;;  %vm204_vm1 = vcmask 1041409   ;;  %vm206_vm3 = vcmask 1042434  }
  0x8e   :  { %1682 = vmatpush1.bf16.msra.mxu1 %v6197_v4  ;;  %v6200_v6 = vld [vmem:[#allocation6 + $0x2c4] ss:$16 sps:$4 sm:$0xff]   ;;  %v6202_v7 = vld [vmem:[#allocation6 + $0xc0] ss:$16 sps:$4 sm:$0xff]   ;;  %1642 = vmatprep.subr.bf16.mxu0 %v6198_v5  ;;  %vm205_vm2 = vmor %vm204_vm1, %vm203_vm0  ;;  %vm208_vm5 = vcmask 1043459   ;;  %vm210_vm7 = vcmask 1044484  }
  0x8f   :  { %v6203_v8 = vld [vmem:[#allocation6 + $0x2c0] ss:$16 sps:$4 sm:$0xff]   ;;  %1683 = vmatprep.subr.bf16.mxu1 %v6200_v6  ;;  %v6204_v9 = vld [vmem:[#allocation6 + $0xa4] ss:$16 sps:$4 sm:$0xff]   ;;  %vm207_vm4 = vmor %vm206_vm3, %vm205_vm2  ;;  %vm212_vm9 = vcmask 1045509   ;;  %vm214_vm11 = vcmask 129030  }
  0x90   :  { %v6206_v10 = vld [vmem:[#allocation6 + $0x2a4] ss:$16 sps:$4 sm:$0xff]   ;;  %v6208_v11 = vld [vmem:[#allocation6 + $0xa0] ss:$16 sps:$4 sm:$0xff]   ;;  %vm209_vm6 = vmor %vm208_vm5, %vm207_vm4  ;;  %v7399_v47 = vmov 1966171168  }
  0x91   :  { %v6209_v12 = vld [vmem:[#allocation6 + $0x2a0] ss:$16 sps:$4 sm:$0xff]   ;;  %1643 = vmatpush1.bf16.msra.mxu0 %v6202_v7  ;;  %v6210_v13 = vld [vmem:[#allocation6 + $0x84] ss:$16 sps:$4 sm:$0xff]   ;;  %vm211_vm8 = vmor %vm210_vm7, %vm209_vm6  ;;  %v467_v48 = vunpack.c.l.s4 %v7399_v47  ;;  %v7554_v53 = vshrl.u32 %v444_v46, 7  ;;  %vm7401_vm13 = vmmov 0  }
  0x92   :  { %1684 = vmatpush1.bf16.msra.mxu1 %v6203_v8  ;;  %1644 = vmatprep.subr.bf16.mxu0 %v6204_v9  ;;  %v6212_v14 = vld [vmem:[#allocation6 + $0x284] ss:$16 sps:$4 sm:$0xff]   ;;  %v6214_v15 = vld [vmem:[#allocation6 + $0x80] ss:$16 sps:$4 sm:$0xff]   ;;  %vm213_vm10 = vmor %vm212_vm9, %vm211_vm8 }
  0x93   :  { %1685 = vmatprep.subr.bf16.mxu1 %v6206_v10  ;;  %v6215_v16 = vld [vmem:[#allocation6 + $0x280] ss:$16 sps:$4 sm:$0xff]   ;;  %v6216_v17 = vld [vmem:[#allocation6 + $0x64] ss:$16 sps:$4 sm:$0xff]   ;;  %vm7548_vm12 = vmor %vm214_vm11, %vm213_vm10  ;;  %v468_v54 = vunpack.c.0.s8 %v467_v48 }
  0x94   :  { %v6218_v18 = vld [vmem:[#allocation6 + $0x264] ss:$16 sps:$4 sm:$0xff]   ;;  %v6220_v19 = vld [vmem:[#allocation6 + $0x60] ss:$16 sps:$4 sm:$0xff]   ;;  %v202_v51 = vld [vmem:[#allocation3] sm:$0x7f] }
  0x95   :  { %1645 = vmatpush1.bf16.msra.mxu0 %v6208_v11  ;;  %v6221_v20 = vld [vmem:[#allocation6 + $0x260] ss:$16 sps:$4 sm:$0xff]   ;;  %v6222_v21 = vld [vmem:[#allocation6 + $0x44] ss:$16 sps:$4 sm:$0xff]   ;;  %216 = vst.msk [vmem:[#allocation2] sm:$0x7f] %vm7548_vm12, %v202_v51  ;;  %v7557_v59 = vsub.s32 %v468_v54, %v7554_v53 }
  0x96   :  { %1686 = vmatpush1.bf16.msra.mxu1 %v6209_v12  ;;  %1646 = vmatprep.subr.bf16.mxu0 %v6210_v13  ;;  %v6224_v22 = vld [vmem:[#allocation6 + $0x244] ss:$16 sps:$4 sm:$0xff]   ;;  %v6226_v23 = vld [vmem:[#allocation6 + $0x40] ss:$16 sps:$4 sm:$0xff]  }
  0x97   :  { %1687 = vmatprep.subr.bf16.mxu1 %v6212_v14  ;;  %v6227_v24 = vld [vmem:[#allocation6 + $0x240] ss:$16 sps:$4 sm:$0xff]   ;;  %v6228_v25 = vld [vmem:[#allocation6 + $0x24] ss:$16 sps:$4 sm:$0xff]  }
  0x98   :  { %v6230_v26 = vld [vmem:[#allocation6 + $0x224] ss:$16 sps:$4 sm:$0xff]   ;;  %v6232_v27 = vld [vmem:[#allocation6 + $0x20] ss:$16 sps:$4 sm:$0xff]  }
  0x99   :  { %1647 = vmatpush1.bf16.msra.mxu0 %v6214_v15  ;;  %v6233_v28 = vld [vmem:[#allocation6 + $0x220] ss:$16 sps:$4 sm:$0xff]   ;;  %v6234_v29 = vld [vmem:[#allocation6 + $0x4] ss:$16 sps:$4 sm:$0xff]  }
  0x9a   :  { %1688 = vmatpush1.bf16.msra.mxu1 %v6215_v16  ;;  %1648 = vmatprep.subr.bf16.mxu0 %v6216_v17  ;;  %v6236_v30 = vld [vmem:[#allocation6 + $0x204] ss:$16 sps:$4 sm:$0xff]   ;;  %v6238_v31 = vld [vmem:[#allocation6] ss:$16 sps:$4 sm:$0xff]  }
  0x9b   :  { %1689 = vmatprep.subr.bf16.mxu1 %v6218_v18  ;;  %v6239_v32 = vld [vmem:[#allocation6 + $0x200] ss:$16 sps:$4 sm:$0xff]   ;;  %v6240_v33 = vld [vmem:[#allocation6 + $0x1e4] ss:$16 sps:$4 sm:$0xff]  }
  0x9c   :  { %v6242_v34 = vld [vmem:[#allocation6 + $0x3e4] ss:$16 sps:$4 sm:$0xff]   ;;  %v6244_v35 = vld [vmem:[#allocation6 + $0x1e0] ss:$16 sps:$4 sm:$0xff]  }
  0x9d   :  { %1649 = vmatpush1.bf16.msra.mxu0 %v6220_v19  ;;  %v6245_v36 = vld [vmem:[#allocation6 + $0x3e0] ss:$16 sps:$4 sm:$0xff]   ;;  %v6246_v37 = vld [vmem:[#allocation6 + $0x1c4] ss:$16 sps:$4 sm:$0xff]  }
  0x9e   :  { %1690 = vmatpush1.bf16.msra.mxu1 %v6221_v20  ;;  %1650 = vmatprep.subr.bf16.mxu0 %v6222_v21  ;;  %v6248_v38 = vld [vmem:[#allocation6 + $0x3c4] ss:$16 sps:$4 sm:$0xff]   ;;  %v6250_v39 = vld [vmem:[#allocation6 + $0x1c0] ss:$16 sps:$4 sm:$0xff]  }
  0x9f   :  { %1691 = vmatprep.subr.bf16.mxu1 %v6224_v22  ;;  %v6251_v40 = vld [vmem:[#allocation6 + $0x3c0] ss:$16 sps:$4 sm:$0xff]   ;;  %v6252_v41 = vld [vmem:[#allocation6 + $0x1a4] ss:$16 sps:$4 sm:$0xff]  }
  0xa0   :  { %v6254_v42 = vld [vmem:[#allocation6 + $0x3a4] ss:$16 sps:$4 sm:$0xff]   ;;  %v6256_v43 = vld [vmem:[#allocation6 + $0x1a0] ss:$16 sps:$4 sm:$0xff]  }
  0xa1   :  { %1651 = vmatpush1.bf16.msra.mxu0 %v6226_v23  ;;  %v6257_v44 = vld [vmem:[#allocation6 + $0x3a0] ss:$16 sps:$4 sm:$0xff]   ;;  %v6258_v49 = vld [vmem:[#allocation6 + $0x184] ss:$16 sps:$4 sm:$0xff]  }
  0xa2   :  { %1692 = vmatpush1.bf16.msra.mxu1 %v6227_v24  ;;  %1652 = vmatprep.subr.bf16.mxu0 %v6228_v25  ;;  %v6260_v50 = vld [vmem:[#allocation6 + $0x384] ss:$16 sps:$4 sm:$0xff]   ;;  %v6262_v52 = vld [vmem:[#allocation6 + $0x180] ss:$16 sps:$4 sm:$0xff]  }
  0xa3   :  { %1693 = vmatprep.subr.bf16.mxu1 %v6230_v26  ;;  %v6263_v55 = vld [vmem:[#allocation6 + $0x380] ss:$16 sps:$4 sm:$0xff]   ;;  %v6264_v56 = vld [vmem:[#allocation6 + $0x164] ss:$16 sps:$4 sm:$0xff]  }
  0xa4   :  { %v6266_v57 = vld [vmem:[#allocation6 + $0x364] ss:$16 sps:$4 sm:$0xff]   ;;  %v6268_v58 = vld [vmem:[#allocation6 + $0x160] ss:$16 sps:$4 sm:$0xff]  }
  0xa5   :  { %1653 = vmatpush1.bf16.msra.mxu0 %v6232_v27  ;;  %v6269_v60 = vld [vmem:[#allocation6 + $0x360] ss:$16 sps:$4 sm:$0xff]   ;;  %v6270_v61 = vld [vmem:[#allocation6 + $0x144] ss:$16 sps:$4 sm:$0xff]  }
  0xa6   :  { %1694 = vmatpush1.bf16.msra.mxu1 %v6233_v28  ;;  %1654 = vmatprep.subr.bf16.mxu0 %v6234_v29  ;;  %v6272_v62 = vld [vmem:[#allocation6 + $0x344] ss:$16 sps:$4 sm:$0xff]   ;;  %v6274_v2 = vld [vmem:[#allocation6 + $0x140] ss:$16 sps:$4 sm:$0xff]  }
  0xa7   :  { %1695 = vmatprep.subr.bf16.mxu1 %v6236_v30  ;;  %v217_v63 = vld [vmem:[#allocation2] sm:$0x7f] }
  0xa8   :  { %v472_v1 = vrot.slane %v217_v63, %v7557_v59  ;;  %v6275_v3 = vld [vmem:[#allocation6 + $0x340] ss:$16 sps:$4 sm:$0xff]   ;;  %v6276_v4 = vld [vmem:[#allocation6 + $0x124] ss:$16 sps:$4 sm:$0xff]   ;;  %v465_v10 = vcombine.high %v217_v63, %v217_v63  ;;  %v6348_v63 = vld [vmem:[#allocation6 + $0xcc] ss:$16 sps:$4 sm:$0xff]  }
  0xa9   :  { %1655 = vmatpush1.bf16.msra.mxu0 %v6238_v31  ;;  %v6278_v5 = vld [vmem:[#allocation6 + $0x324] ss:$16 sps:$4 sm:$0xff]   ;;  %v6280_v8 = vld [vmem:[#allocation6 + $0x120] ss:$16 sps:$4 sm:$0xff]  }
  0xaa   :  { %1696 = vmatpush1.bf16.msra.mxu1 %v6239_v32  ;;  %1656 = vmatprep.subr.bf16.mxu0 %v6240_v33  ;;  %v480_v6 = vcombine.high %v472_v1, %v472_v1  ;;  %v6281_v9 = vld [vmem:[#allocation6 + $0x320] ss:$16 sps:$4 sm:$0xff]   ;;  %v6282_v11 = vld [vmem:[#allocation6 + $0x104] ss:$16 sps:$4 sm:$0xff]   ;;  %v7570_v14 = vrot.slane %v472_v1, %v7557_v59  ;;  %v7573_v17 = vrot.slane %v465_v10, %v7557_v59 }
  0xab   :  { %1697 = vmatprep.subr.bf16.mxu1 %v6242_v34  ;;  %v6284_v12 = vld [vmem:[#allocation6 + $0x304] ss:$16 sps:$4 sm:$0xff]   ;;  %v6286_v15 = vld [vmem:[#allocation6 + $0x100] ss:$16 sps:$4 sm:$0xff]  }
  0xac   :  { %v7561_v7 = vrot.slane %v480_v6, %v7557_v59  ;;  %v6287_v16 = vld [vmem:[#allocation6 + $0x300] ss:$16 sps:$4 sm:$0xff]   ;;  %v6291_v18 = vld [vmem:[#allocation6 + $0x4e4] ss:$16 sps:$4 sm:$0xff]   ;;  %v481_v20 = vcombine.high %v7573_v17, %v7573_v17  ;;  %v7579_v21 = vcombine.high %v7570_v14, %v7570_v14  ;;  %v6352_v6 = vld [vmem:[#allocation6 + $0xa8] ss:$16 sps:$4 sm:$0xff]  }
  0xad   :  { %1657 = vmatpush2.bf16.msra.mxu0 %v6244_v35  ;;  %v6294_v19 = vld [vmem:[#allocation6 + $0x6e4] ss:$16 sps:$4 sm:$0xff]   ;;  %v6289_v22 = vld [vmem:[#allocation6 + $0x4e0] ss:$16 sps:$4 sm:$0xff]  }
  0xae   :  { %1698 = vmatpush2.bf16.msra.mxu1 %v6245_v36  ;;  %1658 = vmatprep.subr.bf16.mxu0 %v6246_v37  ;;  %v7565_v13 = vcombine.high %v7561_v7, %v7561_v7  ;;  %v6292_v23 = vld [vmem:[#allocation6 + $0x6e0] ss:$16 sps:$4 sm:$0xff]   ;;  %v6297_v24 = vld [vmem:[#allocation6 + $0x4c4] ss:$16 sps:$4 sm:$0xff]   ;;  %v7582_v26 = vrot.slane %v481_v20, %v7557_v59  ;;  %v6370_v20 = vld [vmem:[#allocation6 + $0x48] ss:$16 sps:$4 sm:$0xff]  }
  0xaf   :  { %1699 = vmatprep.subr.bf16.mxu1 %v6248_v38  ;;  %1672 = vmatprep.mubr.bf16.mxu0 %v7561_v7  ;;  %v6300_v25 = vld [vmem:[#allocation6 + $0x6c4] ss:$16 sps:$4 sm:$0xff]   ;;  %v6295_v27 = vld [vmem:[#allocation6 + $0x4c0] ss:$16 sps:$4 sm:$0xff]  }
  0xb0   :  { %1713 = vmatprep.mubr.bf16.mxu1 %v7565_v13  ;;  %v6298_v28 = vld [vmem:[#allocation6 + $0x6c0] ss:$16 sps:$4 sm:$0xff]   ;;  %v6303_v29 = vld [vmem:[#allocation6 + $0x4a4] ss:$16 sps:$4 sm:$0xff]  }
  0xb1   :  { %1659 = vmatpush2.bf16.msra.mxu0 %v6250_v39  ;;  %v6306_v30 = vld [vmem:[#allocation6 + $0x6a4] ss:$16 sps:$4 sm:$0xff]   ;;  %v6301_v31 = vld [vmem:[#allocation6 + $0x4a0] ss:$16 sps:$4 sm:$0xff]  }
  0xb2   :  { %1700 = vmatpush2.bf16.msra.mxu1 %v6251_v40  ;;  %1660 = vmatprep.subr.bf16.mxu0 %v6252_v41  ;;  %v6304_v32 = vld [vmem:[#allocation6 + $0x6a0] ss:$16 sps:$4 sm:$0xff]   ;;  %v6309_v33 = vld [vmem:[#allocation6 + $0x484] ss:$16 sps:$4 sm:$0xff]  }
  0xb3   :  { %1701 = vmatprep.subr.bf16.mxu1 %v6254_v42  ;;  %v6312_v34 = vld [vmem:[#allocation6 + $0x684] ss:$16 sps:$4 sm:$0xff]   ;;  %v6307_v35 = vld [vmem:[#allocation6 + $0x480] ss:$16 sps:$4 sm:$0xff]  }
  0xb4   :  { %v6310_v36 = vld [vmem:[#allocation6 + $0x680] ss:$16 sps:$4 sm:$0xff]   ;;  %v6315_v37 = vld [vmem:[#allocation6 + $0x464] ss:$16 sps:$4 sm:$0xff]  }
  0xb5   :  { %1661 = vmatpush2.bf16.msra.mxu0 %v6256_v43  ;;  %v6318_v38 = vld [vmem:[#allocation6 + $0x664] ss:$16 sps:$4 sm:$0xff]   ;;  %v6313_v39 = vld [vmem:[#allocation6 + $0x460] ss:$16 sps:$4 sm:$0xff]  }
  0xb6   :  { %1702 = vmatpush2.bf16.msra.mxu1 %v6257_v44  ;;  %1662 = vmatprep.subr.bf16.mxu0 %v6258_v49  ;;  %v6316_v40 = vld [vmem:[#allocation6 + $0x660] ss:$16 sps:$4 sm:$0xff]   ;;  %v6321_v41 = vld [vmem:[#allocation6 + $0x444] ss:$16 sps:$4 sm:$0xff]  }
  0xb7   :  { %1703 = vmatprep.subr.bf16.mxu1 %v6260_v50  ;;  %v6324_v42 = vld [vmem:[#allocation6 + $0x644] ss:$16 sps:$4 sm:$0xff]   ;;  %v6319_v43 = vld [vmem:[#allocation6 + $0x440] ss:$16 sps:$4 sm:$0xff]  }
  0xb8   :  { %v6322_v44 = vld [vmem:[#allocation6 + $0x640] ss:$16 sps:$4 sm:$0xff]   ;;  %v6327_v46 = vld [vmem:[#allocation6 + $0x424] ss:$16 sps:$4 sm:$0xff]  }
  0xb9   :  { %1663 = vmatpush2.bf16.msra.mxu0 %v6262_v52  ;;  %v6330_v47 = vld [vmem:[#allocation6 + $0x624] ss:$16 sps:$4 sm:$0xff]   ;;  %v6325_v48 = vld [vmem:[#allocation6 + $0x420] ss:$16 sps:$4 sm:$0xff]   ;;  %v7590_v52 = vrot.slane %v7573_v17, %v7557_v59 }
  0xba   :  { %1704 = vmatpush2.bf16.msra.mxu1 %v6263_v55  ;;  %1664 = vmatprep.subr.bf16.mxu0 %v6264_v56  ;;  %v6328_v49 = vld [vmem:[#allocation6 + $0x620] ss:$16 sps:$4 sm:$0xff]   ;;  %v6333_v50 = vld [vmem:[#allocation6 + $0x404] ss:$16 sps:$4 sm:$0xff]  }
  0xbb   :  { %1705 = vmatprep.subr.bf16.mxu1 %v6266_v57  ;;  %v6336_v51 = vld [vmem:[#allocation6 + $0x604] ss:$16 sps:$4 sm:$0xff]   ;;  %v6331_v54 = vld [vmem:[#allocation6 + $0x400] ss:$16 sps:$4 sm:$0xff]   ;;  %v6342_v57 = vld [vmem:[#allocation6 + $0xec] ss:$16 sps:$4 sm:$0xff]  }
  0xbc   :  { %v6334_v55 = vld [vmem:[#allocation6 + $0x600] ss:$16 sps:$4 sm:$0xff]   ;;  %v6339_v56 = vld [vmem:[#allocation6 + $0x5e4] ss:$16 sps:$4 sm:$0xff]  }
  0xbd   :  { %1665 = vmatpush2.bf16.msra.mxu0 %v6268_v58  ;;  %v7594_v58 = vcombine.high %v7590_v52, %v7590_v52  ;;  %v6343_v1 = vld [vmem:[#allocation6 + $0x5c0] ss:$16 sps:$4 sm:$0xff]   ;;  %v6369_v17 = vld [vmem:[#allocation6 + $0x544] ss:$16 sps:$4 sm:$0xff]  }
  0xbe   :  { %1706 = vmatpush2.bf16.msra.mxu1 %v6269_v60  ;;  %1666 = vmatprep.subr.bf16.mxu0 %v6270_v61  ;;  %v6337_v60 = vld [vmem:[#allocation6 + $0x5e0] ss:$16 sps:$4 sm:$0xff]   ;;  %v6340_v61 = vld [vmem:[#allocation6 + $0xe8] ss:$16 sps:$4 sm:$0xff]  }
  0xbf   :  { %1707 = vmatprep.subr.bf16.mxu1 %v6272_v62  ;;  %v6345_v62 = vld [vmem:[#allocation6 + $0x5c4] ss:$16 sps:$4 sm:$0xff]   ;;  %v6355_v10 = vld [vmem:[#allocation6 + $0x580] ss:$16 sps:$4 sm:$0xff]  }
  0xc1   :  { %1667 = vmatpush2.bf16.msra.mxu0 %v6274_v2  ;;  %v6346_v2 = vld [vmem:[#allocation6 + $0xc8] ss:$16 sps:$4 sm:$0xff]  }
  0xc2   :  { %1708 = vmatpush2.bf16.msra.mxu1 %v6275_v3  ;;  %1668 = vmatprep.subr.bf16.mxu0 %v6276_v4  ;;  %v6351_v3 = vld [vmem:[#allocation6 + $0x5a4] ss:$16 sps:$4 sm:$0xff]   ;;  %v6354_v4 = vld [vmem:[#allocation6 + $0xac] ss:$16 sps:$4 sm:$0xff]  }
  0xc3   :  { %1709 = vmatprep.subr.bf16.mxu1 %v6278_v5  ;;  %v6349_v5 = vld [vmem:[#allocation6 + $0x5a0] ss:$16 sps:$4 sm:$0xff]  }
  0xc5   :  { %1669 = vmatpush2.bf16.msra.mxu0 %v6280_v8  ;;  %v6357_v8 = vld [vmem:[#allocation6 + $0x584] ss:$16 sps:$4 sm:$0xff]  }
  0xc6   :  { %1710 = vmatpush2.bf16.msra.mxu1 %v6281_v9  ;;  %1670 = vmatprep.subr.bf16.mxu0 %v6282_v11  ;;  %v6360_v9 = vld [vmem:[#allocation6 + $0x8c] ss:$16 sps:$4 sm:$0xff]   ;;  %v6358_v11 = vld [vmem:[#allocation6 + $0x88] ss:$16 sps:$4 sm:$0xff]  }
  0xc7   :  { %1711 = vmatprep.subr.bf16.mxu1 %v6284_v12  ;;  %v6363_v12 = vld [vmem:[#allocation6 + $0x564] ss:$16 sps:$4 sm:$0xff]  }
  0xc9   :  { %1671 = vmatpush2.bf16.msra.mxu0 %v6286_v15  ;;  %v6366_v15 = vld [vmem:[#allocation6 + $0x6c] ss:$16 sps:$4 sm:$0xff]  }
  0xca   :  { %1712 = vmatpush2.bf16.msra.mxu1 %v6287_v16  ;;  %1722 = vmatprep.subr.bf16.mxu0 %v6291_v18  ;;  %v6361_v16 = vld [vmem:[#allocation6 + $0x560] ss:$16 sps:$4 sm:$0xff]   ;;  %v6372_v18 = vld [vmem:[#allocation6 + $0x4c] ss:$16 sps:$4 sm:$0xff]  }
  0xcb   :  { %1763 = vmatprep.subr.bf16.mxu1 %v6294_v19  ;;  %v6367_v19 = vld [vmem:[#allocation6 + $0x540] ss:$16 sps:$4 sm:$0xff]  }
  0xcc   :  { %1673 = vmatmul.mubr.bf16.vlgmr.msra.gmra.mxu0 %v7570_v14 }
  0xcd   :  { %1714 = vmatmul.mubr.bf16.vlgmr.msra.gmra.mxu1 %v7579_v21  ;;  %1723 = vmatpush1.bf16.msra.mxu0 %v6289_v22  ;;  %v6375_v22 = vld [vmem:[#allocation6 + $0x524] ss:$16 sps:$4 sm:$0xff]  }
  0xce   :  { %1764 = vmatpush1.bf16.msra.mxu1 %v6292_v23  ;;  %1724 = vmatprep.subr.bf16.mxu0 %v6297_v24  ;;  %v6378_v23 = vld [vmem:[#allocation6 + $0x2c] ss:$16 sps:$4 sm:$0xff]   ;;  %v6373_v24 = vld [vmem:[#allocation6 + $0x520] ss:$16 sps:$4 sm:$0xff]  }
  0xcf   :  { %1765 = vmatprep.subr.bf16.mxu1 %v6300_v25  ;;  %1795 = vmatprep.mubr.bf16.mxu1 %v7398_v0  ;;  %v6376_v25 = vld [vmem:[#allocation6 + $0x28] ss:$16 sps:$4 sm:$0xff]  }
  0xd0   :  { %1754 = vmatprep.mubr.bf16.mxu0 %v7582_v26 }
  0xd1   :  { %1725 = vmatpush1.bf16.msra.mxu0 %v6295_v27  ;;  %v6381_v27 = vld [vmem:[#allocation6 + $0x504] ss:$16 sps:$4 sm:$0xff]  }
  0xd2   :  { %1766 = vmatpush1.bf16.msra.mxu1 %v6298_v28  ;;  %1726 = vmatprep.subr.bf16.mxu0 %v6303_v29  ;;  %v6384_v28 = vld [vmem:[#allocation6 + $0xc] ss:$16 sps:$4 sm:$0xff]   ;;  %v6379_v29 = vld [vmem:[#allocation6 + $0x500] ss:$16 sps:$4 sm:$0xff]  }
  0xd3   :  { %1767 = vmatprep.subr.bf16.mxu1 %v6306_v30  ;;  %v6382_v30 = vld [vmem:[#allocation6 + $0x8] ss:$16 sps:$4 sm:$0xff]  }
  0xd5   :  { %1727 = vmatpush1.bf16.msra.mxu0 %v6301_v31  ;;  %v6387_v31 = vld [vmem:[#allocation6 + $0x1ec] ss:$16 sps:$4 sm:$0xff]  }
  0xd6   :  { %1768 = vmatpush1.bf16.msra.mxu1 %v6304_v32  ;;  %1728 = vmatprep.subr.bf16.mxu0 %v6309_v33  ;;  %v6390_v32 = vld [vmem:[#allocation6 + $0x2ec] ss:$16 sps:$4 sm:$0xff]   ;;  %v6385_v33 = vld [vmem:[#allocation6 + $0x1e8] ss:$16 sps:$4 sm:$0xff]  }
  0xd7   :  { %1769 = vmatprep.subr.bf16.mxu1 %v6312_v34  ;;  %v6388_v34 = vld [vmem:[#allocation6 + $0x2e8] ss:$16 sps:$4 sm:$0xff]  }
  0xd9   :  { %1729 = vmatpush1.bf16.msra.mxu0 %v6307_v35  ;;  %v6393_v35 = vld [vmem:[#allocation6 + $0x1cc] ss:$16 sps:$4 sm:$0xff]  }
  0xda   :  { %1770 = vmatpush1.bf16.msra.mxu1 %v6310_v36  ;;  %1730 = vmatprep.subr.bf16.mxu0 %v6315_v37  ;;  %v6396_v36 = vld [vmem:[#allocation6 + $0x2cc] ss:$16 sps:$4 sm:$0xff]   ;;  %v6391_v37 = vld [vmem:[#allocation6 + $0x1c8] ss:$16 sps:$4 sm:$0xff]  }
  0xdb   :  { %1771 = vmatprep.subr.bf16.mxu1 %v6318_v38  ;;  %v6394_v38 = vld [vmem:[#allocation6 + $0x2c8] ss:$16 sps:$4 sm:$0xff]  }
  0xdd   :  { %1731 = vmatpush1.bf16.msra.mxu0 %v6313_v39  ;;  %v6399_v39 = vld [vmem:[#allocation6 + $0x1ac] ss:$16 sps:$4 sm:$0xff]  }
  0xde   :  { %1772 = vmatpush1.bf16.msra.mxu1 %v6316_v40  ;;  %1732 = vmatprep.subr.bf16.mxu0 %v6321_v41  ;;  %v6402_v40 = vld [vmem:[#allocation6 + $0x2ac] ss:$16 sps:$4 sm:$0xff]   ;;  %v6397_v41 = vld [vmem:[#allocation6 + $0x1a8] ss:$16 sps:$4 sm:$0xff]  }
  0xdf   :  { %1773 = vmatprep.subr.bf16.mxu1 %v6324_v42  ;;  %v6400_v42 = vld [vmem:[#allocation6 + $0x2a8] ss:$16 sps:$4 sm:$0xff]  }
  0xe1   :  { %1733 = vmatpush1.bf16.msra.mxu0 %v6319_v43  ;;  %v6405_v43 = vld [vmem:[#allocation6 + $0x18c] ss:$16 sps:$4 sm:$0xff]  }
  0xe2   :  { %1774 = vmatpush1.bf16.msra.mxu1 %v6322_v44  ;;  %1734 = vmatprep.subr.bf16.mxu0 %v6327_v46  ;;  %v6408_v44 = vld [vmem:[#allocation6 + $0x28c] ss:$16 sps:$4 sm:$0xff]   ;;  %v6403_v46 = vld [vmem:[#allocation6 + $0x188] ss:$16 sps:$4 sm:$0xff]  }
  0xe3   :  { %1775 = vmatprep.subr.bf16.mxu1 %v6330_v47  ;;  %v6406_v47 = vld [vmem:[#allocation6 + $0x288] ss:$16 sps:$4 sm:$0xff]  }
  0xe5   :  { %1735 = vmatpush1.bf16.msra.mxu0 %v6325_v48  ;;  %v6411_v48 = vld [vmem:[#allocation6 + $0x16c] ss:$16 sps:$4 sm:$0xff]  }
  0xe6   :  { %1776 = vmatpush1.bf16.msra.mxu1 %v6328_v49  ;;  %1736 = vmatprep.subr.bf16.mxu0 %v6333_v50  ;;  %v6414_v49 = vld [vmem:[#allocation6 + $0x26c] ss:$16 sps:$4 sm:$0xff]   ;;  %v6409_v50 = vld [vmem:[#allocation6 + $0x168] ss:$16 sps:$4 sm:$0xff]  }
  0xe7   :  { %1777 = vmatprep.subr.bf16.mxu1 %v6336_v51  ;;  %v6417_v51 = vld [vmem:[#allocation6 + $0x14c] ss:$16 sps:$4 sm:$0xff]  }
  0xe9   :  { %1737 = vmatpush1.bf16.msra.mxu0 %v6331_v54  ;;  %v6420_v54 = vld [vmem:[#allocation6 + $0x24c] ss:$16 sps:$4 sm:$0xff]  }
  0xea   :  { %1778 = vmatpush1.bf16.msra.mxu1 %v6334_v55  ;;  %1738 = vmatprep.subr.bf16.mxu0 %v6339_v56  ;;  %v6415_v55 = vld [vmem:[#allocation6 + $0x148] ss:$16 sps:$4 sm:$0xff]  }
  0xeb   :  { %1804 = vmatprep.subr.bf16.mxu1 %v6342_v57  ;;  %v6418_v56 = vld [vmem:[#allocation6 + $0x248] ss:$16 sps:$4 sm:$0xff]   ;;  %v6423_v57 = vld [vmem:[#allocation6 + $0x12c] ss:$16 sps:$4 sm:$0xff]  }
  0xed   :  { %1796 = vmatmul.mubr.bf16.vlgmr.msra.gmra.mxu1 %v7594_v58  ;;  %1739 = vmatpush2.bf16.msra.mxu0 %v6337_v60  ;;  %v6426_v60 = vld [vmem:[#allocation6 + $0x22c] ss:$16 sps:$4 sm:$0xff]  }
  0xee   :  { %1805 = vmatpush1.bf16.msra.mxu1 %v6340_v61  ;;  %1740 = vmatprep.subr.bf16.mxu0 %v6345_v62  ;;  %v6421_v61 = vld [vmem:[#allocation6 + $0x128] ss:$16 sps:$4 sm:$0xff]  }
  0xef   :  { %1806 = vmatprep.subr.bf16.mxu1 %v6348_v63  ;;  %1836 = vmatprep.mubr.bf16.mxu1 %v7561_v7  ;;  %v6364_v7 = vld [vmem:[#allocation6 + $0x68] ss:$16 sps:$4 sm:$0xff]   ;;  %v6429_v63 = vld [vmem:[#allocation6 + $0x10c] ss:$16 sps:$4 sm:$0xff]  }
  0xf0   :  { %v6424_v62 = vld [vmem:[#allocation6 + $0x228] ss:$16 sps:$4 sm:$0xff]  }
  0xf1   :  { %1741 = vmatpush2.bf16.msra.mxu0 %v6343_v1  ;;  %v6432_v1 = vld [vmem:[#allocation6 + $0x20c] ss:$16 sps:$4 sm:$0xff]  }
  0xf2   :  { %1807 = vmatpush1.bf16.msra.mxu1 %v6346_v2  ;;  %1742 = vmatprep.subr.bf16.mxu0 %v6351_v3  ;;  %v6427_v2 = vld [vmem:[#allocation6 + $0x108] ss:$16 sps:$4 sm:$0xff]  }
  0xf3   :  { %1808 = vmatprep.subr.bf16.mxu1 %v6354_v4  ;;  %v6430_v3 = vld [vmem:[#allocation6 + $0x208] ss:$16 sps:$4 sm:$0xff]   ;;  %v6435_v4 = vld [vmem:[#allocation6 + $0x3ec] ss:$16 sps:$4 sm:$0xff]  }
  0xf5   :  { %1743 = vmatpush2.bf16.msra.mxu0 %v6349_v5  ;;  %v6438_v5 = vld [vmem:[#allocation6 + $0x4ec] ss:$16 sps:$4 sm:$0xff]  }
  0xf6   :  { %1809 = vmatpush1.bf16.msra.mxu1 %v6352_v6  ;;  %1744 = vmatprep.subr.bf16.mxu0 %v6357_v8  ;;  %v6433_v6 = vld [vmem:[#allocation6 + $0x3e8] ss:$16 sps:$4 sm:$0xff]  }
  0xf7   :  { %1810 = vmatprep.subr.bf16.mxu1 %v6360_v9  ;;  %v6436_v8 = vld [vmem:[#allocation6 + $0x4e8] ss:$16 sps:$4 sm:$0xff]   ;;  %v6441_v9 = vld [vmem:[#allocation6 + $0x3cc] ss:$16 sps:$4 sm:$0xff]  }
  0xf9   :  { %1745 = vmatpush2.bf16.msra.mxu0 %v6355_v10  ;;  %v6444_v10 = vld [vmem:[#allocation6 + $0x4cc] ss:$16 sps:$4 sm:$0xff]  }
  0xfa   :  { %1811 = vmatpush1.bf16.msra.mxu1 %v6358_v11  ;;  %1746 = vmatprep.subr.bf16.mxu0 %v6363_v12  ;;  %v6439_v11 = vld [vmem:[#allocation6 + $0x3c8] ss:$16 sps:$4 sm:$0xff]  }
  0xfb   :  { %1812 = vmatprep.subr.bf16.mxu1 %v6366_v15  ;;  %v6442_v12 = vld [vmem:[#allocation6 + $0x4c8] ss:$16 sps:$4 sm:$0xff]   ;;  %v6447_v15 = vld [vmem:[#allocation6 + $0x3ac] ss:$16 sps:$4 sm:$0xff]  }
  0xfd   :  { %1747 = vmatpush2.bf16.msra.mxu0 %v6361_v16  ;;  %v6450_v16 = vld [vmem:[#allocation6 + $0x4ac] ss:$16 sps:$4 sm:$0xff]  }
  0xfe   :  { %1813 = vmatpush1.bf16.msra.mxu1 %v6364_v7  ;;  %1748 = vmatprep.subr.bf16.mxu0 %v6369_v17  ;;  %v6445_v7 = vld [vmem:[#allocation6 + $0x3a8] ss:$16 sps:$4 sm:$0xff]  }
  0xff   :  { %1814 = vmatprep.subr.bf16.mxu1 %v6372_v18  ;;  %v6448_v17 = vld [vmem:[#allocation6 + $0x4a8] ss:$16 sps:$4 sm:$0xff]   ;;  %v6453_v18 = vld [vmem:[#allocation6 + $0x38c] ss:$16 sps:$4 sm:$0xff]  }
 0x101   :  { %1749 = vmatpush2.bf16.msra.mxu0 %v6367_v19  ;;  %v6456_v19 = vld [vmem:[#allocation6 + $0x48c] ss:$16 sps:$4 sm:$0xff]  }
 0x102   :  { %1815 = vmatpush1.bf16.msra.mxu1 %v6370_v20  ;;  %1750 = vmatprep.subr.bf16.mxu0 %v6375_v22  ;;  %v6451_v20 = vld [vmem:[#allocation6 + $0x388] ss:$16 sps:$4 sm:$0xff]   ;;  %v6459_v22 = vld [vmem:[#allocation6 + $0x36c] ss:$16 sps:$4 sm:$0xff]  }
 0x103   :  { %1816 = vmatprep.subr.bf16.mxu1 %v6378_v23  ;;  %v6462_v23 = vld [vmem:[#allocation6 + $0x46c] ss:$16 sps:$4 sm:$0xff]  }
 0x105   :  { %1751 = vmatpush2.bf16.msra.mxu0 %v6373_v24  ;;  %v6457_v24 = vld [vmem:[#allocation6 + $0x368] ss:$16 sps:$4 sm:$0xff]  }
 0x106   :  { %1817 = vmatpush1.bf16.msra.mxu1 %v6376_v25  ;;  %1752 = vmatprep.subr.bf16.mxu0 %v6381_v27  ;;  %v6460_v25 = vld [vmem:[#allocation6 + $0x468] ss:$16 sps:$4 sm:$0xff]   ;;  %v6465_v27 = vld [vmem:[#allocation6 + $0x34c] ss:$16 sps:$4 sm:$0xff]  }
 0x107   :  { %1818 = vmatprep.subr.bf16.mxu1 %v6384_v28  ;;  %v6468_v28 = vld [vmem:[#allocation6 + $0x44c] ss:$16 sps:$4 sm:$0xff]  }
 0x109   :  { %1753 = vmatpush2.bf16.msra.mxu0 %v6379_v29  ;;  %v6466_v29 = vld [vmem:[#allocation6 + $0x448] ss:$16 sps:$4 sm:$0xff]  }
 0x10a   :  { %1819 = vmatpush1.bf16.msra.mxu1 %v6382_v30  ;;  %1845 = vmatprep.subr.bf16.mxu0 %v6390_v32  ;;  %v6471_v30 = vld [vmem:[#allocation6 + $0x32c] ss:$16 sps:$4 sm:$0xff]   ;;  %v6469_v32 = vld [vmem:[#allocation6 + $0x328] ss:$16 sps:$4 sm:$0xff]  }
 0x10b   :  { %1820 = vmatprep.subr.bf16.mxu1 %v6387_v31  ;;  %v6474_v31 = vld [vmem:[#allocation6 + $0x42c] ss:$16 sps:$4 sm:$0xff]  }
 0x10c   :  { %1755 = vmatmul.mubr.bf16.vlgmr.msra.gmra.mxu0 %v7590_v52 }
 0x10d   :  { %1846 = vmatpush1.bf16.msra.mxu0 %v6388_v34  ;;  %1877 = vmatprep.mubr.bf16.mxu0 %v7565_v13  ;;  %v6412_v13 = vld [vmem:[#allocation6 + $0x268] ss:$16 sps:$4 sm:$0xff]   ;;  %v6477_v34 = vld [vmem:[#allocation6 + $0x30c] ss:$16 sps:$4 sm:$0xff]  }
 0x10e   :  { %1821 = vmatpush2.bf16.msra.mxu1 %v6385_v33  ;;  %1847 = vmatprep.subr.bf16.mxu0 %v6396_v36  ;;  %v6472_v33 = vld [vmem:[#allocation6 + $0x428] ss:$16 sps:$4 sm:$0xff]  }
 0x10f   :  { %1822 = vmatprep.subr.bf16.mxu1 %v6393_v35  ;;  %v6480_v35 = vld [vmem:[#allocation6 + $0x40c] ss:$16 sps:$4 sm:$0xff]   ;;  %v6475_v36 = vld [vmem:[#allocation6 + $0x308] ss:$16 sps:$4 sm:$0xff]  }
 0x111   :  { %1848 = vmatpush1.bf16.msra.mxu0 %v6394_v38  ;;  %v6483_v38 = vld [vmem:[#allocation6 + $0x5ec] ss:$16 sps:$4 sm:$0xff]  }
 0x112   :  { %1823 = vmatpush2.bf16.msra.mxu1 %v6391_v37  ;;  %1849 = vmatprep.subr.bf16.mxu0 %v6402_v40  ;;  %v6478_v37 = vld [vmem:[#allocation6 + $0x408] ss:$16 sps:$4 sm:$0xff]  }
 0x113   :  { %1824 = vmatprep.subr.bf16.mxu1 %v6399_v39  ;;  %v6486_v39 = vld [vmem:[#allocation6 + $0x6ec] ss:$16 sps:$4 sm:$0xff]   ;;  %v6481_v40 = vld [vmem:[#allocation6 + $0x5e8] ss:$16 sps:$4 sm:$0xff]  }
 0x115   :  { %1850 = vmatpush1.bf16.msra.mxu0 %v6400_v42  ;;  %v6489_v42 = vld [vmem:[#allocation6 + $0x5cc] ss:$16 sps:$4 sm:$0xff]  }
 0x116   :  { %1825 = vmatpush2.bf16.msra.mxu1 %v6397_v41  ;;  %1851 = vmatprep.subr.bf16.mxu0 %v6408_v44  ;;  %v6484_v41 = vld [vmem:[#allocation6 + $0x6e8] ss:$16 sps:$4 sm:$0xff]  }
 0x117   :  { %1826 = vmatprep.subr.bf16.mxu1 %v6405_v43  ;;  %v6492_v43 = vld [vmem:[#allocation6 + $0x6cc] ss:$16 sps:$4 sm:$0xff]   ;;  %v6487_v44 = vld [vmem:[#allocation6 + $0x5c8] ss:$16 sps:$4 sm:$0xff]  }
 0x119   :  { %1852 = vmatpush1.bf16.msra.mxu0 %v6406_v47  ;;  %v6495_v47 = vld [vmem:[#allocation6 + $0x5ac] ss:$16 sps:$4 sm:$0xff]  }
 0x11a   :  { %1827 = vmatpush2.bf16.msra.mxu1 %v6403_v46  ;;  %1853 = vmatprep.subr.bf16.mxu0 %v6414_v49  ;;  %v6490_v46 = vld [vmem:[#allocation6 + $0x6c8] ss:$16 sps:$4 sm:$0xff]  }
 0x11b   :  { %1828 = vmatprep.subr.bf16.mxu1 %v6411_v48  ;;  %v6498_v48 = vld [vmem:[#allocation6 + $0x6ac] ss:$16 sps:$4 sm:$0xff]   ;;  %v6493_v49 = vld [vmem:[#allocation6 + $0x5a8] ss:$16 sps:$4 sm:$0xff]  }
 0x11d   :  { %1854 = vmatpush1.bf16.msra.mxu0 %v6412_v13  ;;  %v6501_v13 = vld [vmem:[#allocation6 + $0x58c] ss:$16 sps:$4 sm:$0xff]  }
 0x11e   :  { %1829 = vmatpush2.bf16.msra.mxu1 %v6409_v50  ;;  %1855 = vmatprep.subr.bf16.mxu0 %v6420_v54  ;;  %v6496_v50 = vld [vmem:[#allocation6 + $0x6a8] ss:$16 sps:$4 sm:$0xff]  }
 0x11f   :  { %1830 = vmatprep.subr.bf16.mxu1 %v6417_v51  ;;  %v6504_v51 = vld [vmem:[#allocation6 + $0x68c] ss:$16 sps:$4 sm:$0xff]   ;;  %v6499_v54 = vld [vmem:[#allocation6 + $0x588] ss:$16 sps:$4 sm:$0xff]  }
 0x121   :  { %1856 = vmatpush1.bf16.msra.mxu0 %v6418_v56  ;;  %v6507_v56 = vld [vmem:[#allocation6 + $0x56c] ss:$16 sps:$4 sm:$0xff]  }
 0x122   :  { %1831 = vmatpush2.bf16.msra.mxu1 %v6415_v55  ;;  %1857 = vmatprep.subr.bf16.mxu0 %v6426_v60  ;;  %v6502_v55 = vld [vmem:[#allocation6 + $0x688] ss:$16 sps:$4 sm:$0xff]  }
 0x123   :  { %1832 = vmatprep.subr.bf16.mxu1 %v6423_v57  ;;  %v6505_v57 = vld [vmem:[#allocation6 + $0x568] ss:$16 sps:$4 sm:$0xff]  }
 0x124   :  { %v6508_v60 = vld [vmem:[#allocation6 + $0x668] ss:$16 sps:$4 sm:$0xff]  }
 0x125   :  { %1858 = vmatpush1.bf16.msra.mxu0 %v6424_v62  ;;  %v6516_v62 = vld [vmem:[#allocation6 + $0x64c] ss:$16 sps:$4 sm:$0xff]  }
 0x126   :  { %1833 = vmatpush2.bf16.msra.mxu1 %v6421_v61  ;;  %1859 = vmatprep.subr.bf16.mxu0 %v6432_v1  ;;  %v6513_v61 = vld [vmem:[#allocation6 + $0x54c] ss:$16 sps:$4 sm:$0xff]   ;;  %v6514_v1 = vld [vmem:[#allocation6 + $0x648] ss:$16 sps:$4 sm:$0xff]  }
 0x127   :  { %1834 = vmatprep.subr.bf16.mxu1 %v6429_v63  ;;  %v6511_v63 = vld [vmem:[#allocation6 + $0x548] ss:$16 sps:$4 sm:$0xff]  }
 0x129   :  { %1860 = vmatpush1.bf16.msra.mxu0 %v6430_v3  ;;  %v6522_v3 = vld [vmem:[#allocation6 + $0x62c] ss:$16 sps:$4 sm:$0xff]  }
 0x12a   :  { %1835 = vmatpush2.bf16.msra.mxu1 %v6427_v2  ;;  %1861 = vmatprep.subr.bf16.mxu0 %v6435_v4  ;;  %v6519_v2 = vld [vmem:[#allocation6 + $0x52c] ss:$16 sps:$4 sm:$0xff]   ;;  %v6517_v4 = vld [vmem:[#allocation6 + $0x528] ss:$16 sps:$4 sm:$0xff]  }
 0x12b   :  { %1886 = vmatprep.subr.bf16.mxu1 %v6438_v5  ;;  %v6520_v5 = vld [vmem:[#allocation6 + $0x628] ss:$16 sps:$4 sm:$0xff]  }
 0x12d   :  { %1837 = vmatmul.mubr.bf16.vlgmr.msra.gmra.mxu1 %v7570_v14  ;;  %1862 = vmatpush2.bf16.msra.mxu0 %v6433_v6  ;;  %v6454_v14 = vld [vmem:[#allocation6 + $0x488] ss:$16 sps:$4 sm:$0xff]   ;;  %v6525_v6 = vld [vmem:[#allocation6 + $0x50c] ss:$16 sps:$4 sm:$0xff]  }
 0x12e   :  { %1887 = vmatpush1.bf16.msra.mxu1 %v6436_v8  ;;  %1863 = vmatprep.subr.bf16.mxu0 %v6441_v9  ;;  %v6528_v8 = vld [vmem:[#allocation6 + $0x60c] ss:$16 sps:$4 sm:$0xff]   ;;  %v6523_v9 = vld [vmem:[#allocation6 + $0x508] ss:$16 sps:$4 sm:$0xff]  }
 0x12f   :  { %1888 = vmatprep.subr.bf16.mxu1 %v6444_v10  ;;  %1918 = vmatprep.mubr.bf16.mxu1 %v7582_v26  ;;  %v6463_v26 = vld [vmem:[#allocation6 + $0x348] ss:$16 sps:$4 sm:$0xff]  }
 0x130   :  { %v6526_v10 = vld [vmem:[#allocation6 + $0x608] ss:$16 sps:$4 sm:$0xff]  }
 0x131   :  { %1864 = vmatpush2.bf16.msra.mxu0 %v6439_v11  ;;  %v6531_v11 = vld [vmem:[#allocation9 + $0x74] ss:$8 sps:$4 sm:$0xff]  }
 0x132   :  { %1889 = vmatpush1.bf16.msra.mxu1 %v6442_v12  ;;  %1865 = vmatprep.subr.bf16.mxu0 %v6447_v15  ;;  %v6529_v12 = vld [vmem:[#allocation9 + $0x70] ss:$8 sps:$4 sm:$0xff]   ;;  %v6534_v15 = vld [vmem:[#allocation9 + $0x64] ss:$8 sps:$4 sm:$0xff]  }
 0x133   :  { %1890 = vmatprep.subr.bf16.mxu1 %v6450_v16  ;;  %v6532_v16 = vld [vmem:[#allocation9 + $0x60] ss:$8 sps:$4 sm:$0xff]  }
 0x135   :  { %1866 = vmatpush2.bf16.msra.mxu0 %v6445_v7  ;;  %v6537_v7 = vld [vmem:[#allocation9 + $0x54] ss:$8 sps:$4 sm:$0xff]  }
 0x136   :  { %1891 = vmatpush1.bf16.msra.mxu1 %v6448_v17  ;;  %1867 = vmatprep.subr.bf16.mxu0 %v6453_v18  ;;  %v6535_v17 = vld [vmem:[#allocation9 + $0x50] ss:$8 sps:$4 sm:$0xff]   ;;  %v6540_v18 = vld [vmem:[#allocation9 + $0x44] ss:$8 sps:$4 sm:$0xff]  }
 0x137   :  { %1892 = vmatprep.subr.bf16.mxu1 %v6456_v19  ;;  %v6577_v19 = vld [vmem:[#allocation9 + $0x170] ss:$8 sps:$4 sm:$0xff]  }
 0x139   :  { %1868 = vmatpush2.bf16.msra.mxu0 %v6451_v20  ;;  %v6579_v20 = vld [vmem:[#allocation9 + $0x174] ss:$8 sps:$4 sm:$0xff]  }
 0x13a   :  { %1893 = vmatpush1.bf16.msra.mxu1 %v6454_v14  ;;  %1869 = vmatprep.subr.bf16.mxu0 %v6459_v22  ;;  %v6582_v14 = vld [vmem:[#allocation9 + $0x164] ss:$8 sps:$4 sm:$0xff]   ;;  %v6538_v22 = vld [vmem:[#allocation9 + $0x40] ss:$8 sps:$4 sm:$0xff]  }
 0x13b   :  { %1894 = vmatprep.subr.bf16.mxu1 %v6462_v23  ;;  %v6543_v23 = vld [vmem:[#allocation9 + $0x34] ss:$8 sps:$4 sm:$0xff]  }
 0x13d   :  { %1870 = vmatpush2.bf16.msra.mxu0 %v6457_v24  ;;  %v6580_v24 = vld [vmem:[#allocation9 + $0x160] ss:$8 sps:$4 sm:$0xff]  }
 0x13e   :  { %1895 = vmatpush1.bf16.msra.mxu1 %v6460_v25  ;;  %1871 = vmatprep.subr.bf16.mxu0 %v6465_v27  ;;  %v6585_v25 = vld [vmem:[#allocation9 + $0x154] ss:$8 sps:$4 sm:$0xff]   ;;  %v6546_v27 = vld [vmem:[#allocation9 + $0x24] ss:$8 sps:$4 sm:$0xff]  }
 0x13f   :  { %1896 = vmatprep.subr.bf16.mxu1 %v6468_v28  ;;  %v6588_v28 = vld [vmem:[#allocation9 + $0x144] ss:$8 sps:$4 sm:$0xff]  }
 0x141   :  { %1872 = vmatpush2.bf16.msra.mxu0 %v6463_v26  ;;  %v6544_v26 = vld [vmem:[#allocation9 + $0x20] ss:$8 sps:$4 sm:$0xff]  }
 0x142   :  { %1897 = vmatpush1.bf16.msra.mxu1 %v6466_v29  ;;  %1873 = vmatprep.subr.bf16.mxu0 %v6471_v30  ;;  %v6586_v29 = vld [vmem:[#allocation9 + $0x140] ss:$8 sps:$4 sm:$0xff]   ;;  %v6549_v30 = vld [vmem:[#allocation9 + $0x14] ss:$8 sps:$4 sm:$0xff]  }
 0x143   :  { %1898 = vmatprep.subr.bf16.mxu1 %v6474_v31  ;;  %v6591_v31 = vld [vmem:[#allocation9 + $0x134] ss:$8 sps:$4 sm:$0xff]  }
 0x145   :  { %1874 = vmatpush2.bf16.msra.mxu0 %v6469_v32  ;;  %v6547_v32 = vld [vmem:[#allocation9 + $0x10] ss:$8 sps:$4 sm:$0xff]  }
 0x146   :  { %1899 = vmatpush1.bf16.msra.mxu1 %v6472_v33  ;;  %1875 = vmatprep.subr.bf16.mxu0 %v6477_v34  ;;  %v6589_v33 = vld [vmem:[#allocation9 + $0x130] ss:$8 sps:$4 sm:$0xff]   ;;  %v6552_v34 = vld [vmem:[#allocation9 + $0x4] ss:$8 sps:$4 sm:$0xff]  }
 0x147   :  { %1900 = vmatprep.subr.bf16.mxu1 %v6480_v35  ;;  %v6550_v35 = vld [vmem:[#allocation9] ss:$8 sps:$4 sm:$0xff]  }
 0x149   :  { %1876 = vmatpush2.bf16.msra.mxu0 %v6475_v36  ;;  %v6555_v36 = vld [vmem:[#allocation9 + $0xf4] ss:$8 sps:$4 sm:$0xff]  }
 0x14a   :  { %1901 = vmatpush1.bf16.msra.mxu1 %v6478_v37  ;;  %1927 = vmatprep.subr.bf16.mxu0 %v6486_v39  ;;  %v6553_v37 = vld [vmem:[#allocation9 + $0xf0] ss:$8 sps:$4 sm:$0xff]   ;;  %v6594_v39 = vld [vmem:[#allocation9 + $0x124] ss:$8 sps:$4 sm:$0xff]  }
 0x14b   :  { %1902 = vmatprep.subr.bf16.mxu1 %v6483_v38  ;;  %v6558_v38 = vld [vmem:[#allocation9 + $0xe4] ss:$8 sps:$4 sm:$0xff]  }
 0x14c   :  { %1878 = vmatmul.mubr.bf16.vlgmr.msra.gmra.mxu0 %v7579_v21  ;;  %v6510_v21 = vld [vmem:[#allocation6 + $0x66c] ss:$16 sps:$4 sm:$0xff]  }
 0x14d   :  { %1928 = vmatpush1.bf16.msra.mxu0 %v6484_v41  ;;  %1959 = vmatprep.mubr.bf16.mxu0 %v7398_v0  ;;  %v6592_v41 = vld [vmem:[#allocation9 + $0x120] ss:$8 sps:$4 sm:$0xff]  }
 0x14e   :  { %1903 = vmatpush2.bf16.msra.mxu1 %v6481_v40  ;;  %1929 = vmatprep.subr.bf16.mxu0 %v6492_v43  ;;  %v6556_v40 = vld [vmem:[#allocation9 + $0xe0] ss:$8 sps:$4 sm:$0xff]  }
 0x14f   :  { %1904 = vmatprep.subr.bf16.mxu1 %v6489_v42 }
 0x151   :  { %1930 = vmatpush1.bf16.msra.mxu0 %v6490_v46 }
 0x152   :  { %1905 = vmatpush2.bf16.msra.mxu1 %v6487_v44  ;;  %1931 = vmatprep.subr.bf16.mxu0 %v6498_v48  ;;  %v6561_v44 = vld [vmem:[#allocation9 + $0xd4] ss:$8 sps:$4 sm:$0xff]  }
 0x153   :  { %1906 = vmatprep.subr.bf16.mxu1 %v6495_v47  ;;  %v6597_v48 = vld [vmem:[#allocation9 + $0x114] ss:$8 sps:$4 sm:$0xff]  }
 0x155   :  { %1932 = vmatpush1.bf16.msra.mxu0 %v6496_v50  ;;  %v6595_v50 = vld [vmem:[#allocation9 + $0x110] ss:$8 sps:$4 sm:$0xff]  }
 0x156   :  { %1907 = vmatpush2.bf16.msra.mxu1 %v6493_v49  ;;  %1933 = vmatprep.subr.bf16.mxu0 %v6504_v51  ;;  %v6559_v49 = vld [vmem:[#allocation9 + $0xd0] ss:$8 sps:$4 sm:$0xff]  }
 0x157   :  { %1908 = vmatprep.subr.bf16.mxu1 %v6501_v13 }
 0x159   :  { %1934 = vmatpush1.bf16.msra.mxu0 %v6502_v55 }
 0x15a   :  { %1909 = vmatpush2.bf16.msra.mxu1 %v6499_v54  ;;  %1935 = vmatprep.subr.bf16.mxu0 %v6510_v21  ;;  %v6598_v21 = vld [vmem:[#allocation9 + $0x100] ss:$8 sps:$4 sm:$0xff]  }
 0x15b   :  { %1910 = vmatprep.subr.bf16.mxu1 %v6507_v56  ;;  %v6564_v56 = vld [vmem:[#allocation9 + $0xc4] ss:$8 sps:$4 sm:$0xff]  }
 0x15d   :  { %1936 = vmatpush1.bf16.msra.mxu0 %v6508_v60  ;;  %v6603_v60 = vld [vmem:[#allocation9 + $0x1f4] ss:$8 sps:$4 sm:$0xff]  }
 0x15e   :  { %1911 = vmatpush2.bf16.msra.mxu1 %v6505_v57  ;;  %1937 = vmatprep.subr.bf16.mxu0 %v6516_v62  ;;  %v6600_v57 = vld [vmem:[#allocation9 + $0x104] ss:$8 sps:$4 sm:$0xff]   ;;  %v6567_v62 = vld [vmem:[#allocation9 + $0xb4] ss:$8 sps:$4 sm:$0xff]  }
 0x15f   :  { %1912 = vmatprep.subr.bf16.mxu1 %v6513_v61  ;;  %v6562_v61 = vld [vmem:[#allocation9 + $0xc0] ss:$8 sps:$4 sm:$0xff]  }
 0x161   :  { %1938 = vmatpush1.bf16.msra.mxu0 %v6514_v1  ;;  %v6606_v1 = vld [vmem:[#allocation9 + $0x1e4] ss:$8 sps:$4 sm:$0xff]  }
 0x162   :  { %1913 = vmatpush2.bf16.msra.mxu1 %v6511_v63  ;;  %1939 = vmatprep.subr.bf16.mxu0 %v6522_v3  ;;  %v6601_v63 = vld [vmem:[#allocation9 + $0x1f0] ss:$8 sps:$4 sm:$0xff]   ;;  %v6604_v3 = vld [vmem:[#allocation9 + $0x1e0] ss:$8 sps:$4 sm:$0xff]  }
 0x163   :  { %1914 = vmatprep.subr.bf16.mxu1 %v6519_v2  ;;  %v6565_v2 = vld [vmem:[#allocation9 + $0xb0] ss:$8 sps:$4 sm:$0xff]  }
 0x165   :  { %1940 = vmatpush1.bf16.msra.mxu0 %v6520_v5  ;;  %v6609_v5 = vld [vmem:[#allocation9 + $0x1d4] ss:$8 sps:$4 sm:$0xff]  }
 0x166   :  { %1915 = vmatpush2.bf16.msra.mxu1 %v6517_v4  ;;  %1941 = vmatprep.subr.bf16.mxu0 %v6528_v8  ;;  %v6570_v4 = vld [vmem:[#allocation9 + $0xa4] ss:$8 sps:$4 sm:$0xff]   ;;  %v6607_v8 = vld [vmem:[#allocation9 + $0x1d0] ss:$8 sps:$4 sm:$0xff]  }
 0x167   :  { %1916 = vmatprep.subr.bf16.mxu1 %v6525_v6  ;;  %v6568_v6 = vld [vmem:[#allocation9 + $0xa0] ss:$8 sps:$4 sm:$0xff]  }
 0x169   :  { %1942 = vmatpush1.bf16.msra.mxu0 %v6526_v10  ;;  %v6612_v10 = vld [vmem:[#allocation9 + $0x1c4] ss:$8 sps:$4 sm:$0xff]  }
 0x16a   :  { %1917 = vmatpush2.bf16.msra.mxu1 %v6523_v9  ;;  %2372 = vmatprep.subr.bf16.mxu0 %v6531_v11  ;;  %v6573_v9 = vld [vmem:[#allocation9 + $0x94] ss:$8 sps:$4 sm:$0xff]   ;;  %v6571_v11 = vld [vmem:[#allocation9 + $0x90] ss:$8 sps:$4 sm:$0xff]  }
 0x16b   :  { %2413 = vmatprep.subr.bf16.mxu1 %v6579_v20 }
 0x16c   :  { %1960 = vmatmul.mubr.bf16.vlgmr.msra.gmra.mxu0 %v7594_v58  ;;  %v6583_v58 = vld [vmem:[#allocation9 + $0x150] ss:$8 sps:$4 sm:$0xff]  }
 0x16d   :  { %1919 = vmatmul.mubr.bf16.vlgmr.msra.gmra.mxu1 %v7590_v52  ;;  %2373 = vmatpush1.bf16.msra.mxu0 %v6529_v12  ;;  %v6541_v52 = vld [vmem:[#allocation9 + $0x30] ss:$8 sps:$4 sm:$0xff]   ;;  %v6610_v12 = vld [vmem:[#allocation9 + $0x1c0] ss:$8 sps:$4 sm:$0xff]  }
 0x16e   :  { %2374 = vmatprep.subr.bf16.mxu0 %v6534_v15  ;;  %2414 = vmatpush1.bf16.msra.mxu1 %v6577_v19  ;;  %v6576_v15 = vld [vmem:[#allocation9 + $0x84] ss:$8 sps:$4 sm:$0xff]   ;;  %v6616_v19 = vld [vmem:[#allocation9 + $0x1a0] ss:$8 sps:$4 sm:$0xff]  }
 0x16f   :  { %2415 = vmatprep.subr.bf16.mxu1 %v6582_v14 }
 0x171   :  { %2375 = vmatpush1.bf16.msra.mxu0 %v6532_v16  ;;  %v6615_v16 = vld [vmem:[#allocation9 + $0x1b4] ss:$8 sps:$4 sm:$0xff]  }
 0x172   :  { %2376 = vmatprep.subr.bf16.mxu0 %v6537_v7  ;;  %2416 = vmatpush1.bf16.msra.mxu1 %v6580_v24  ;;  %v6574_v7 = vld [vmem:[#allocation9 + $0x80] ss:$8 sps:$4 sm:$0xff]  }
 0x173   :  { %2417 = vmatprep.subr.bf16.mxu1 %v6585_v25 }
 0x175   :  { %2377 = vmatpush1.bf16.msra.mxu0 %v6535_v17  ;;  %v6613_v17 = vld [vmem:[#allocation9 + $0x1b0] ss:$8 sps:$4 sm:$0xff]  }
 0x176   :  { %2378 = vmatprep.subr.bf16.mxu0 %v6540_v18  ;;  %2418 = vmatpush1.bf16.msra.mxu1 %v6583_v58  ;;  %v6618_v18 = vld [vmem:[#allocation9 + $0x1a4] ss:$8 sps:$4 sm:$0xff]   ;;  %v6622_v58 = vld [vmem:[#allocation9 + $0x180] ss:$8 sps:$4 sm:$0xff]  }
 0x177   :  { %2419 = vmatprep.subr.bf16.mxu1 %v6588_v28  ;;  %v7618_v28 = vsub.s32 1, %v7554_v53 }
 0x179   :  { %2379 = vmatpush1.bf16.msra.mxu0 %v6538_v22  ;;  %v6621_v22 = vld [vmem:[#allocation9 + $0x194] ss:$8 sps:$4 sm:$0xff]  }
 0x17a   :  { %2380 = vmatprep.subr.bf16.mxu0 %v6543_v23  ;;  %2420 = vmatpush1.bf16.msra.mxu1 %v6586_v29  ;;  %v6619_v23 = vld [vmem:[#allocation9 + $0x190] ss:$8 sps:$4 sm:$0xff]  }
 0x17b   :  { %2421 = vmatprep.subr.bf16.mxu1 %v6591_v31 }
 0x17d   :  { %2381 = vmatpush1.bf16.msra.mxu0 %v6541_v52  ;;  %v6624_v52 = vld [vmem:[#allocation9 + $0x184] ss:$8 sps:$4 sm:$0xff]  }
 0x17e   :  { %2382 = vmatprep.subr.bf16.mxu0 %v6546_v27  ;;  %2422 = vmatpush1.bf16.msra.mxu1 %v6589_v33  ;;  %v7615_v27 = vsub.s32 0, %v7554_v53 }
 0x17f   :  { %2423 = vmatprep.subr.bf16.mxu1 %v6594_v39 }
 0x181   :  { %2383 = vmatpush1.bf16.msra.mxu0 %v6544_v26  ;;  %v442_v26 = vld [vmem:[#allocation8] sm:$0xf] }
 0x182   :  { %2384 = vmatprep.subr.bf16.mxu0 %v6549_v30  ;;  %2424 = vmatpush1.bf16.msra.mxu1 %v6592_v41  ;;  %v447_v29 = vrot.slane %v442_v26, %v7615_v27  ;;  %v451_v30 = vrot.slane %v442_v26, %v7618_v28 }
 0x183   :  { %2425 = vmatprep.subr.bf16.mxu1 %v6597_v48 }
 0x185   :  { %2385 = vmatpush1.bf16.msra.mxu0 %v6547_v32 }
 0x186   :  { %2386 = vmatprep.subr.bf16.mxu0 %v6552_v34  ;;  %2426 = vmatpush1.bf16.msra.mxu1 %v6595_v50 }
 0x187   :  { %2427 = vmatprep.subr.bf16.mxu1 %v6600_v57  ;;  %v6626_v57 = vld [vmem:[#allocation11 + $0x38] sm:$0xff]  }
 0x189   :  { %2387 = vmatpush1.bf16.msra.mxu0 %v6550_v35 }
 0x18a   :  { %2388 = vmatprep.subr.bf16.mxu0 %v6555_v36  ;;  %2428 = vmatpush1.bf16.msra.mxu1 %v6598_v21  ;;  %v6625_v21 = vld [vmem:[#allocation11 + $0x78] sm:$0xff]  }
 0x18b   :  { %2429 = vmatprep.subr.bf16.mxu1 %v6603_v60  ;;  %v6627_v60 = vld [vmem:[#allocation11 + $0x70] sm:$0xff]  }
 0x18c   :  { %v7606_v42 = vpop.f32.mrf.mxu0 }
 0x18d   :  { %v7608_v43 = vpop.f32.mrf.mxu1  ;;  %2389 = vmatpush2.bf16.msra.mxu0 %v6553_v37  ;;  %v1675_v31 = vadd.f32 %v7606_v42, %v447_v29 }
 0x18e   :  { %v7610_v46 = vpop.f32.mrf.mxu0  ;;  %2390 = vmatprep.subr.bf16.mxu0 %v6558_v38  ;;  %2430 = vmatpush2.bf16.msra.mxu1 %v6601_v63  ;;  %v6629_v63 = vld [vmem:[#allocation11 + $0x68] sm:$0xff]  }
 0x18f   :  { %v7612_v47 = vpop.f32.mrf.mxu1  ;;  %2431 = vmatprep.subr.bf16.mxu1 %v6606_v1  ;;  %v1677_v32 = vadd.f32 %v7610_v46, %v451_v30  ;;  %v1716_v33 = vadd.f32 %v7608_v43, %v1675_v31  ;;  %v7630_v1 = vsub.s32 3, %v7554_v53 }
 0x190   :  { %v1678_v13 = vpop.f32.mrf.mxu0 }
 0x191   :  { %v1719_v51 = vpop.f32.mrf.mxu1  ;;  %2391 = vmatpush2.bf16.msra.mxu0 %v6556_v40  ;;  %v1718_v35 = vadd.f32 %v7612_v47, %v1677_v32 }
 0x192   :  { %v1679_v54 = vpop.f32.mrf.mxu0  ;;  %2392 = vmatprep.subr.bf16.mxu0 %v6561_v44  ;;  %2432 = vmatpush2.bf16.msra.mxu1 %v6604_v3  ;;  %v6630_v3 = vld [vmem:[#allocation11 + $0x28] sm:$0xff]  }
 0x193   :  { %v1720_v55 = vpop.f32.mrf.mxu1  ;;  %2433 = vmatprep.subr.bf16.mxu1 %v6609_v5  ;;  %v459_v5 = vrot.slane %v442_v26, %v7630_v1 }
 0x195   :  { %2393 = vmatpush2.bf16.msra.mxu0 %v6559_v49 }
 0x196   :  { %2394 = vmatprep.subr.bf16.mxu0 %v6564_v56  ;;  %2434 = vmatpush2.bf16.msra.mxu1 %v6607_v8  ;;  %v6632_v8 = vld [vmem:[#allocation11 + $0x20] sm:$0xff]  }
 0x197   :  { %2435 = vmatprep.subr.bf16.mxu1 %v6612_v10 }
 0x199   :  { %2395 = vmatpush2.bf16.msra.mxu0 %v6562_v61  ;;  %v7627_v61 = vsub.s32 2, %v7554_v53 }
 0x19a   :  { %2396 = vmatprep.subr.bf16.mxu0 %v6567_v62  ;;  %2436 = vmatpush2.bf16.msra.mxu1 %v6610_v12  ;;  %v6628_v62 = vld [vmem:[#allocation11 + $0x30] sm:$0xff]  }
 0x19b   :  { %2437 = vmatprep.subr.bf16.mxu1 %v6615_v16 }
 0x19d   :  { %2397 = vmatpush2.bf16.msra.mxu0 %v6565_v2  ;;  %v455_v2 = vrot.slane %v442_v26, %v7627_v61 }
 0x19e   :  { %2398 = vmatprep.subr.bf16.mxu0 %v6570_v4  ;;  %2438 = vmatpush2.bf16.msra.mxu1 %v6613_v17  ;;  %v6631_v4 = vld [vmem:[#allocation11 + $0x60] sm:$0xff]   ;;  %v6634_v17 = vld [vmem:[#allocation11 + $0x18] sm:$0xff]  }
 0x19f   :  { %2439 = vmatprep.subr.bf16.mxu1 %v6618_v18 }
 0x1a1   :  { %2399 = vmatpush2.bf16.msra.mxu0 %v6568_v6 }
 0x1a2   :  { %2400 = vmatprep.subr.bf16.mxu0 %v6573_v9  ;;  %2440 = vmatpush2.bf16.msra.mxu1 %v6616_v19  ;;  %v6633_v9 = vld [vmem:[#allocation11 + $0x58] sm:$0xff]  }
 0x1a3   :  { %2441 = vmatprep.subr.bf16.mxu1 %v6621_v22 }
 0x1a5   :  { %2401 = vmatpush2.bf16.msra.mxu0 %v6571_v11 }
 0x1a6   :  { %2402 = vmatprep.subr.bf16.mxu0 %v6576_v15  ;;  %2442 = vmatpush2.bf16.msra.mxu1 %v6619_v23 }
 0x1a7   :  { %2443 = vmatprep.subr.bf16.mxu1 %v6624_v52  ;;  %v6636_v52 = vld [vmem:[#allocation11 + $0x10] sm:$0xff]  }
 0x1a9   :  { %2403 = vmatpush2.bf16.msra.mxu0 %v6574_v7 }
 0x1aa   :  { %2444 = vmatpush2.bf16.msra.mxu1 %v6622_v58  ;;  %6044 = vmatprep.subr.bf16.mxu0 %v6625_v21 }
 0x1ad   :  { %v1797_v20 = vpop.f32.mrf.mxu1 }
 0x1af   :  { %v1799_v14 = vpop.f32.mrf.mxu1 }
 0x1b1   :  { %v1801_v24 = vpop.f32.mrf.mxu1 }
 0x1b3   :  { %v1802_v25 = vpop.f32.mrf.mxu1 }
 0x1cc   :  { %v1756_v34 = vpop.f32.mrf.mxu0 }
 0x1cd   :  { %v1757_v36 = vadd.f32 %v1756_v34, %v1716_v33  ;;  %v6637_v33 = vld [vmem:[#allocation11 + $0x48] sm:$0xff]  }
 0x1ce   :  { %v1758_v37 = vpop.f32.mrf.mxu0  ;;  %v6638_v34 = vld [vmem:[#allocation11 + $0x8] sm:$0xff]  }
 0x1cf   :  { %v1798_v38 = vadd.f32 %v1797_v20, %v1757_v36  ;;  %v1759_v39 = vadd.f32 %v1758_v37, %v1718_v35  ;;  %v6635_v20 = vld [vmem:[#allocation11 + $0x50] sm:$0xff]   ;;  %v6639_v35 = vld [vmem:[#allocation11 + $0x40] sm:$0xff]   ;;  %v6641_v37 = vld [vmem:[#allocation12 + $0x38] sm:$0xff]  }
 0x1d0   :  { %v1760_v40 = vpop.f32.mrf.mxu0  ;;  %v6640_v36 = vld [vmem:[#allocation11] sm:$0xff]  }
 0x1d1   :  { %v1800_v41 = vadd.f32 %v1799_v14, %v1759_v39  ;;  %v1968_v44 = vmax.f32 %v1798_v38, 0.0  ;;  %v7400_v38 = vmov 0.0   ;;  %v6642_v39 = vld [vmem:[#allocation12 + $0x30] sm:$0xff]   ;;  %v6643_v40 = vld [vmem:[#allocation12 + $0x28] sm:$0xff]  }
 0x1d2   :  { %v1761_v48 = vpop.f32.mrf.mxu0  ;;  %6128 = vmatprep.subr.bf16.mxu1 %v7400_v38 }
 0x1d3   :  { %v1969_v49 = vmax.f32 %v1800_v41, 0.0  ;;  %v1972_v13 = vpack.c.bf16 %v1968_v44, %v1968_v44  ;;  %v6644_v41 = vld [vmem:[#allocation12 + $0x20] sm:$0xff]   ;;  %v6645_v44 = vld [vmem:[#allocation12 + $0x18] sm:$0xff]  }
 0x1d5   :  { %v1973_v50 = vpack.c.bf16 %v1969_v49, %v1969_v49 }
 0x1d7   :  { %2404 = vmatprep.mubr.bf16.mxu0 %v1973_v50 }
 0x1d8   :  { %2405 = vmatmul.mubr.bf16.vlgmr.msra.gmra.mxu0 %v1972_v13 }
 0x1d9   :  { %6045 = vmatpush3.bf16.msra.mxu0 %v6626_v57 }
 0x1da   :  { %6046 = vmatprep.subr.bf16.mxu0 %v6627_v60 }
 0x1dd   :  { %6047 = vmatpush3.bf16.msra.mxu0 %v6628_v62 }
 0x1de   :  { %6048 = vmatprep.subr.bf16.mxu0 %v6629_v63 }
 0x1e1   :  { %6049 = vmatpush3.bf16.msra.mxu0 %v6630_v3 }
 0x1e2   :  { %6050 = vmatprep.subr.bf16.mxu0 %v6631_v4  ;;  %v6646_v4 = vld [vmem:[#allocation12 + $0x10] sm:$0xff]  }
 0x1e5   :  { %6051 = vmatpush3.bf16.msra.mxu0 %v6632_v8  ;;  %v6649_v8 = vld [vmem:[#allocation15 + $0x38] sm:$0xff]  }
 0x1e6   :  { %6052 = vmatprep.subr.bf16.mxu0 %v6633_v9  ;;  %v6650_v9 = vld [vmem:[#allocation15 + $0x30] sm:$0xff]  }
 0x1e9   :  { %6053 = vmatpush3.bf16.msra.mxu0 %v6634_v17 }
 0x1ea   :  { %6054 = vmatprep.subr.bf16.mxu0 %v6635_v20 }
 0x1ed   :  { %v1838_v42 = vpop.f32.mrf.mxu1  ;;  %6055 = vmatpush3.bf16.msra.mxu0 %v6636_v52  ;;  %v6657_v52 = vld [vmem:[#allocation17 + $0x70] ss:$8 sps:$4 sm:$0xff]  }
 0x1ee   :  { %v1839_v6 = vadd.f32 %v1838_v42, %v455_v2  ;;  %6056 = vmatprep.subr.bf16.mxu0 %v6637_v33  ;;  %v2040_v42 = vld [vmem:[%s7734_s4] sm:$0x3]  ;;  %v6671_v33 = vld [vmem:[#allocation17 + $0x34] ss:$8 sps:$4 sm:$0xff]  }
 0x1ef   :  { %v1840_v46 = vpop.f32.mrf.mxu1 }
 0x1f0   :  { %v1841_v10 = vadd.f32 %v1840_v46, %v459_v5  ;;  %v2045_v46 = vrot.slane %v2040_v42, %v7615_v27  ;;  %v6647_v5 = vld [vmem:[#allocation12 + $0x8] sm:$0xff]  }
 0x1f1   :  { %v1842_v51 = vpop.f32.mrf.mxu1  ;;  %6057 = vmatpush3.bf16.msra.mxu0 %v6638_v34  ;;  %v6669_v34 = vld [vmem:[#allocation17 + $0x30] ss:$8 sps:$4 sm:$0xff]  }
 0x1f2   :  { %6058 = vmatprep.subr.bf16.mxu0 %v6639_v35  ;;  %v2049_v51 = vrot.slane %v2040_v42, %v7618_v28  ;;  %v6674_v35 = vld [vmem:[#allocation17 + $0x24] ss:$8 sps:$4 sm:$0xff]  }
 0x1f3   :  { %v1843_v43 = vpop.f32.mrf.mxu1  ;;  %v6680_v42 = vld [vmem:[#allocation17 + $0x4] ss:$8 sps:$4 sm:$0xff]  }
 0x1f5   :  { %6059 = vmatpush3.bf16.msra.mxu0 %v6640_v36  ;;  %v6672_v36 = vld [vmem:[#allocation17 + $0x20] ss:$8 sps:$4 sm:$0xff]  }
 0x1f6   :  { %6148 = vmatprep.subr.bf16.mxu0 %v7400_v38 }
 0x20c   :  { %v1879_v54 = vpop.f32.mrf.mxu0 }
 0x20d   :  { %v1880_v11 = vadd.f32 %v1879_v54, %v1839_v6  ;;  %v6648_v6 = vld [vmem:[#allocation12] sm:$0xff]  }
 0x20e   :  { %v1881_v55 = vpop.f32.mrf.mxu0 }
 0x20f   :  { %v1882_v16 = vadd.f32 %v1881_v55, %v1841_v10  ;;  %v6651_v10 = vld [vmem:[#allocation15 + $0x28] sm:$0xff]  }
 0x210   :  { %v1883_v47 = vpop.f32.mrf.mxu0 }
 0x212   :  { %v1884_v56 = vpop.f32.mrf.mxu0 }
 0x22c   :  { %v1961_v15 = vpop.f32.mrf.mxu0 }
 0x22d   :  { %v1920_v12 = vpop.f32.mrf.mxu1 }
 0x22e   :  { %v1921_v7 = vadd.f32 %v1920_v12, %v1880_v11  ;;  %v1963_v19 = vpop.f32.mrf.mxu0  ;;  %v6652_v11 = vld [vmem:[#allocation15 + $0x20] sm:$0xff]   ;;  %v6653_v12 = vld [vmem:[#allocation15 + $0x18] sm:$0xff]  }
 0x22f   :  { %v1922_v18 = vpop.f32.mrf.mxu1 }
 0x230   :  { %v1962_v14 = vadd.f32 %v1961_v15, %v1921_v7  ;;  %v1923_v22 = vadd.f32 %v1922_v18, %v1882_v16  ;;  %v1965_v24 = vpop.f32.mrf.mxu0  ;;  %v6654_v15 = vld [vmem:[#allocation15 + $0x10] sm:$0xff]   ;;  %v5695_v7 = vld [vmem:[%s7736_s6] ss:$0 sm:$0xff] }
 0x231   :  { %v1924_v23 = vpop.f32.mrf.mxu1  ;;  %v6655_v24 = vld [vmem:[#allocation15 + $0x8] sm:$0xff]  }
 0x232   :  { %v1964_v25 = vadd.f32 %v1963_v19, %v1923_v22  ;;  %v1970_v58 = vmax.f32 %v1962_v14, 0.0  ;;  %v1966_v29 = vpop.f32.mrf.mxu0 }
 0x233   :  { %v1925_v26 = vpop.f32.mrf.mxu1  ;;  %v6660_v29 = vld [vmem:[#allocation17 + $0x60] ss:$8 sps:$4 sm:$0xff]  }
 0x234   :  { %v1971_v30 = vmax.f32 %v1964_v25, 0.0  ;;  %v1974_v32 = vpack.c.bf16 %v1970_v58, %v1970_v58  ;;  %v6656_v25 = vld [vmem:[#allocation15] sm:$0xff]   ;;  %v6659_v58 = vld [vmem:[#allocation17 + $0x74] ss:$8 sps:$4 sm:$0xff]  }
 0x235   :  { %v6662_v26 = vld [vmem:[#allocation17 + $0x64] ss:$8 sps:$4 sm:$0xff]  }
 0x236   :  { %v1975_v31 = vpack.c.bf16 %v1971_v30, %v1971_v30  ;;  %v6665_v30 = vld [vmem:[#allocation17 + $0x54] ss:$8 sps:$4 sm:$0xff]  }
 0x238   :  { %2445 = vmatprep.mubr.bf16.mxu1 %v1975_v31  ;;  %v6663_v31 = vld [vmem:[#allocation17 + $0x50] ss:$8 sps:$4 sm:$0xff]  }
 0x239   :  { %2446 = vmatmul.mubr.bf16.vlgmr.msra.gmra.mxu1 %v1974_v32  ;;  %v6668_v32 = vld [vmem:[#allocation17 + $0x44] ss:$8 sps:$4 sm:$0xff]  }
 0x23a   :  { %6129 = vmatpush3.bf16.msra.mxu1 %v6641_v37  ;;  %6144 = vmatprep.mubr.msk.bf16.mxu1 %vm7401_vm13, %v7400_v38  ;;  %v6677_v37 = vld [vmem:[#allocation17 + $0x14] ss:$8 sps:$4 sm:$0xff]  }
 0x23b   :  { %6130 = vmatprep.subr.bf16.mxu1 %v7400_v38 }
 0x23e   :  { %6131 = vmatpush3.bf16.msra.mxu1 %v6642_v39  ;;  %v5712_v39 = vld [vmem:[#allocation14] ss:$0 sm:$0xff] }
 0x23f   :  { %6132 = vmatprep.subr.bf16.mxu1 %v7400_v38 }
 0x242   :  { %6133 = vmatpush3.bf16.msra.mxu1 %v6643_v40 }
 0x243   :  { %6134 = vmatprep.subr.bf16.mxu1 %v7400_v38 }
 0x246   :  { %6135 = vmatpush3.bf16.msra.mxu1 %v6644_v41 }
 0x247   :  { %6136 = vmatprep.subr.bf16.mxu1 %v7400_v38 }
 0x24a   :  { %6137 = vmatpush3.bf16.msra.mxu1 %v6645_v44 }
 0x24b   :  { %6138 = vmatprep.subr.bf16.mxu1 %v7400_v38 }
 0x24e   :  { %6139 = vmatpush3.bf16.msra.mxu1 %v6646_v4  ;;  %v6719_v4 = vld [vmem:[#allocation18 + $0x24] ss:$16 sps:$4 sm:$0xff]  }
 0x24f   :  { %6140 = vmatprep.subr.bf16.mxu1 %v7400_v38 }
 0x252   :  { %6141 = vmatpush3.bf16.msra.mxu1 %v6647_v5  ;;  %v6717_v5 = vld [vmem:[#allocation18 + $0x20] ss:$16 sps:$4 sm:$0xff]  }
 0x253   :  { %6142 = vmatprep.subr.bf16.mxu1 %v7400_v38 }
 0x256   :  { %6143 = vmatpush3.bf16.msra.mxu1 %v6648_v6  ;;  %v6725_v6 = vld [vmem:[#allocation18 + $0x4] ss:$16 sps:$4 sm:$0xff]  }
 0x257   :  { %2969 = vmatprep.subr.bf16.mxu1 %v6659_v58 }
 0x298   :  { %v2406_v48 = vpop.f32.mrf.mxu0 }
 0x299   :  { %v2407_v43 = vadd.f32 %v2406_v48, %v2045_v46  ;;  %v6678_v46 = vld [vmem:[#allocation17] ss:$8 sps:$4 sm:$0xff]  }
 0x29a   :  { %v2408_v49 = vpop.f32.mrf.mxu0 }
 0x29b   :  { %v2409_v55 = vadd.f32 %v2408_v49, %v2049_v51  ;;  %v6681_v51 = vld [vmem:[#allocation18 + $0xe0] ss:$16 sps:$4 sm:$0xff]  }
 0x29c   :  { %v2410_v50 = vpop.f32.mrf.mxu0 }
 0x29e   :  { %v2411_v13 = vpop.f32.mrf.mxu0 }
 0x2f9   :  { %v2447_v54 = vpop.f32.mrf.mxu1 }
 0x2fa   :  { %v2448_v47 = vadd.f32 %v2447_v54, %v2407_v43  ;;  %v6683_v43 = vld [vmem:[#allocation18 + $0xe4] ss:$16 sps:$4 sm:$0xff]   ;;  %v6686_v54 = vld [vmem:[#allocation18 + $0xec] ss:$16 sps:$4 sm:$0xff]  }
 0x2fb   :  { %v2449_v56 = vpop.f32.mrf.mxu1 }
 0x2fc   :  { %v2450_v21 = vadd.f32 %v2449_v56, %v2409_v55  ;;  %v2454_v57 = vmax.f32 %v2448_v47, 0.0  ;;  %v6689_v55 = vld [vmem:[#allocation18 + $0xc4] ss:$16 sps:$4 sm:$0xff]   ;;  %v6687_v47 = vld [vmem:[#allocation18 + $0xc0] ss:$16 sps:$4 sm:$0xff]  }
 0x2fd   :  { %v2451_v60 = vpop.f32.mrf.mxu1  ;;  %v6695_v56 = vld [vmem:[#allocation18 + $0xa4] ss:$16 sps:$4 sm:$0xff]  }
 0x2fe   :  { %v2455_v62 = vmax.f32 %v2450_v21, 0.0  ;;  %v2456_v3 = vpack.c.bf16 %v2454_v57, %v2454_v57  ;;  %v6693_v21 = vld [vmem:[#allocation18 + $0xa0] ss:$16 sps:$4 sm:$0xff]   ;;  %v6701_v57 = vld [vmem:[#allocation18 + $0x84] ss:$16 sps:$4 sm:$0xff]  }
 0x2ff   :  { %v2452_v63 = vpop.f32.mrf.mxu1  ;;  %v6699_v60 = vld [vmem:[#allocation18 + $0x80] ss:$16 sps:$4 sm:$0xff]  }
 0x300   :  { %v2457_v2 = vpack.c.bf16 %v2455_v62, %v2455_v62  ;;  %v6707_v62 = vld [vmem:[#allocation18 + $0x64] ss:$16 sps:$4 sm:$0xff]   ;;  %v6705_v63 = vld [vmem:[#allocation18 + $0x60] ss:$16 sps:$4 sm:$0xff]  }
 0x302   :  { %2625 = vmatprep.mubr.bf16.mxu0 %v2457_v2  ;;  %v6713_v2 = vld [vmem:[#allocation18 + $0x44] ss:$16 sps:$4 sm:$0xff]  }
 0x303   :  { %2626 = vmatmul.mubr.bf16.vlgmr.msra.gmra.mxu0 %v2456_v3  ;;  %v6711_v3 = vld [vmem:[#allocation18 + $0x40] ss:$16 sps:$4 sm:$0xff]  }
 0x304   :  { %6164 = vmatprep.mubr.msk.bf16.mxu0 %vm7401_vm13, %v7400_v38  ;;  %6149 = vmatpush3.bf16.msra.mxu0 %v6649_v8  ;;  %v6723_v8 = vld [vmem:[#allocation18] ss:$16 sps:$4 sm:$0xff]  }
 0x305   :  { %6150 = vmatprep.subr.bf16.mxu0 %v7400_v38 }
 0x308   :  { %6151 = vmatpush3.bf16.msra.mxu0 %v6650_v9  ;;  %v6731_v9 = vld [vmem:[#allocation18 + $0x1e4] ss:$16 sps:$4 sm:$0xff]  }
 0x309   :  { %6152 = vmatprep.subr.bf16.mxu0 %v7400_v38 }
 0x30c   :  { %6153 = vmatpush3.bf16.msra.mxu0 %v6651_v10  ;;  %v6729_v10 = vld [vmem:[#allocation18 + $0x1e0] ss:$16 sps:$4 sm:$0xff]  }
 0x30d   :  { %6154 = vmatprep.subr.bf16.mxu0 %v7400_v38 }
 0x310   :  { %6155 = vmatpush3.bf16.msra.mxu0 %v6652_v11  ;;  %v6737_v11 = vld [vmem:[#allocation18 + $0x1c4] ss:$16 sps:$4 sm:$0xff]  }
 0x311   :  { %6156 = vmatprep.subr.bf16.mxu0 %v7400_v38 }
 0x314   :  { %6157 = vmatpush3.bf16.msra.mxu0 %v6653_v12  ;;  %v6735_v12 = vld [vmem:[#allocation18 + $0x1c0] ss:$16 sps:$4 sm:$0xff]  }
 0x315   :  { %6158 = vmatprep.subr.bf16.mxu0 %v7400_v38 }
 0x318   :  { %6159 = vmatpush3.bf16.msra.mxu0 %v6654_v15  ;;  %v6743_v15 = vld [vmem:[#allocation18 + $0x1a4] ss:$16 sps:$4 sm:$0xff]  }
 0x319   :  { %6160 = vmatprep.subr.bf16.mxu0 %v7400_v38 }
 0x31c   :  { %6161 = vmatpush3.bf16.msra.mxu0 %v6655_v24 }
 0x31d   :  { %6162 = vmatprep.subr.bf16.mxu0 %v7400_v38  ;;  %v6675_v38 = vld [vmem:[#allocation17 + $0x10] ss:$8 sps:$4 sm:$0xff]  }
 0x320   :  { %6163 = vmatpush3.bf16.msra.mxu0 %v6656_v25 }
 0x321   :  { %3420 = vmatprep.subr.bf16.mxu0 %v6683_v43  ;;  %v6752_v43 = vld [vmem:[#allocation18 + $0x18c] ss:$16 sps:$4 sm:$0xff]  }
 0x3c3   :  { %v6060_v16 = vpop.f32.mrf.mxu0 }
 0x3c5   :  { %v6061_v17 = vpop.f32.mrf.mxu0 }
 0x3c6   :  { %v6062_v18 = vadd.f32 %v6061_v17, %v6060_v16  ;;  %v6741_v16 = vld [vmem:[#allocation18 + $0x1a0] ss:$16 sps:$4 sm:$0xff]  }
 0x3c7   :  { %v6063_v19 = vpop.f32.mrf.mxu0  ;;  %v6747_v17 = vld [vmem:[#allocation18 + $0x180] ss:$16 sps:$4 sm:$0xff]  }
 0x3c8   :  { %v2628_v20 = vadd.f32 %v6062_v18, %v5695_v7  ;;  %v6749_v7 = vld [vmem:[#allocation18 + $0x184] ss:$16 sps:$4 sm:$0xff]   ;;  %v6753_v19 = vld [vmem:[#allocation18 + $0x160] ss:$16 sps:$4 sm:$0xff]  }
 0x3c9   :  { %v6064_v14 = vpop.f32.mrf.mxu0  ;;  %v6755_v18 = vld [vmem:[#allocation18 + $0x164] ss:$16 sps:$4 sm:$0xff]  }
 0x3ca   :  { %v2633_v22 = vmax.f32 %v2628_v20, 0.0  ;;  %v6761_v20 = vld [vmem:[#allocation18 + $0x144] ss:$16 sps:$4 sm:$0xff]   ;;  %v6759_v14 = vld [vmem:[#allocation18 + $0x140] ss:$16 sps:$4 sm:$0xff]  }
 0x3cc   :  { %v2634_v23 = vpack.c.bf16 %v2633_v22, %v2633_v22  ;;  %v5721_v22 = vld [vmem:[%s7740_s10] ss:$0 sm:$0xff] }
 0x3ce   :  { %6145 = vmatmul.mubr.bf16.vlgmr.msra.gmra.mxu1 %v2634_v23 }
 0x3cf   :  { %3001 = vmatprep.mubr.bf16.mxu1 %v7398_v0  ;;  %2970 = vmatpush1.bf16.msra.mxu1 %v6657_v52  ;;  %v6666_v0 = vld [vmem:[#allocation17 + $0x40] ss:$8 sps:$4 sm:$0xff]  }
 0x3d0   :  { %2971 = vmatprep.subr.bf16.mxu1 %v6662_v26  ;;  %v6684_v26 = vld [vmem:[#allocation18 + $0xe8] ss:$16 sps:$4 sm:$0xff]  }
 0x3d3   :  { %2972 = vmatpush1.bf16.msra.mxu1 %v6660_v29 }
 0x3d4   :  { %2973 = vmatprep.subr.bf16.mxu1 %v6665_v30  ;;  %v6692_v30 = vld [vmem:[#allocation18 + $0xcc] ss:$16 sps:$4 sm:$0xff]  }
 0x3d7   :  { %2974 = vmatpush1.bf16.msra.mxu1 %v6663_v31 }
 0x3d8   :  { %2975 = vmatprep.subr.bf16.mxu1 %v6668_v32  ;;  %v6690_v32 = vld [vmem:[#allocation18 + $0xc8] ss:$16 sps:$4 sm:$0xff]  }
 0x3db   :  { %2976 = vmatpush1.bf16.msra.mxu1 %v6666_v0  ;;  %v6698_v0 = vld [vmem:[#allocation18 + $0xac] ss:$16 sps:$4 sm:$0xff]  }
 0x3dc   :  { %2977 = vmatprep.subr.bf16.mxu1 %v6671_v33  ;;  %v6696_v33 = vld [vmem:[#allocation18 + $0xa8] ss:$16 sps:$4 sm:$0xff]  }
 0x3df   :  { %2978 = vmatpush1.bf16.msra.mxu1 %v6669_v34  ;;  %v6704_v34 = vld [vmem:[#allocation18 + $0x8c] ss:$16 sps:$4 sm:$0xff]  }
 0x3e0   :  { %2979 = vmatprep.subr.bf16.mxu1 %v6674_v35  ;;  %v6702_v35 = vld [vmem:[#allocation18 + $0x88] ss:$16 sps:$4 sm:$0xff]  }
 0x3e3   :  { %2980 = vmatpush1.bf16.msra.mxu1 %v6672_v36  ;;  %v6710_v36 = vld [vmem:[#allocation18 + $0x6c] ss:$16 sps:$4 sm:$0xff]  }
 0x3e4   :  { %2981 = vmatprep.subr.bf16.mxu1 %v6677_v37  ;;  %v6708_v37 = vld [vmem:[#allocation18 + $0x68] ss:$16 sps:$4 sm:$0xff]  }
 0x3e7   :  { %2982 = vmatpush1.bf16.msra.mxu1 %v6675_v38  ;;  %v6716_v38 = vld [vmem:[#allocation18 + $0x4c] ss:$16 sps:$4 sm:$0xff]  }
 0x3e8   :  { %2983 = vmatprep.subr.bf16.mxu1 %v6680_v42  ;;  %v6738_v42 = vld [vmem:[#allocation18 + $0x1c8] ss:$16 sps:$4 sm:$0xff]  }
 0x3eb   :  { %2984 = vmatpush1.bf16.msra.mxu1 %v6678_v46  ;;  %v6746_v46 = vld [vmem:[#allocation18 + $0x1ac] ss:$16 sps:$4 sm:$0xff]  }
 0x3ec   :  { %3461 = vmatprep.subr.bf16.mxu1 %v6686_v54  ;;  %v6750_v54 = vld [vmem:[#allocation18 + $0x188] ss:$16 sps:$4 sm:$0xff]  }
 0x48e   :  { %v2740_v40 = vpop.f32.mrf.mxu1 }
 0x48f   :  { %v2741_v41 = vadd.f32 %v5712_v39, %v2740_v40  ;;  %v6714_v39 = vld [vmem:[#allocation18 + $0x48] ss:$16 sps:$4 sm:$0xff]   ;;  %v6722_v40 = vld [vmem:[#allocation18 + $0x2c] ss:$16 sps:$4 sm:$0xff]  }
 0x490   :  { %v6146_v44 = vpop.f32.mrf.mxu1 }
 0x491   :  { %v2746_v48 = vmax.f32 %v2741_v41, 0.0  ;;  %v6720_v41 = vld [vmem:[#allocation18 + $0x28] ss:$16 sps:$4 sm:$0xff]   ;;  %v6728_v44 = vld [vmem:[#allocation18 + $0xc] ss:$16 sps:$4 sm:$0xff]  }
 0x492   :  { %v2743_v49 = vpop.f32.mrf.mxu1 }
 0x493   :  { %v2747_v50 = vpack.c.bf16 %v2746_v48, %v2746_v48  ;;  %v6726_v48 = vld [vmem:[#allocation18 + $0x8] ss:$16 sps:$4 sm:$0xff]   ;;  %v6734_v49 = vld [vmem:[#allocation18 + $0x1ec] ss:$16 sps:$4 sm:$0xff]  }
 0x494   :  { %v6147_v13 = vpop.f32.mrf.mxu1 }
 0x495   :  { %6165 = vmatmul.mubr.bf16.vlgmr.msra.gmra.mxu0 %v2747_v50  ;;  %v6732_v50 = vld [vmem:[#allocation18 + $0x1e8] ss:$16 sps:$4 sm:$0xff]   ;;  %v6740_v13 = vld [vmem:[#allocation18 + $0x1cc] ss:$16 sps:$4 sm:$0xff]  }
 0x496   :  { %3421 = vmatpush1.bf16.msra.mxu0 %v6681_v51  ;;  %v6744_v51 = vld [vmem:[#allocation18 + $0x1a8] ss:$16 sps:$4 sm:$0xff]  }
 0x497   :  { %3422 = vmatprep.subr.bf16.mxu0 %v6689_v55  ;;  %v6758_v55 = vld [vmem:[#allocation18 + $0x16c] ss:$16 sps:$4 sm:$0xff]  }
 0x49a   :  { %3423 = vmatpush1.bf16.msra.mxu0 %v6687_v47  ;;  %v6756_v47 = vld [vmem:[#allocation18 + $0x168] ss:$16 sps:$4 sm:$0xff]  }
 0x49b   :  { %3424 = vmatprep.subr.bf16.mxu0 %v6695_v56  ;;  %v6764_v56 = vld [vmem:[#allocation18 + $0x14c] ss:$16 sps:$4 sm:$0xff]  }
 0x49e   :  { %3425 = vmatpush1.bf16.msra.mxu0 %v6693_v21  ;;  %v6762_v21 = vld [vmem:[#allocation18 + $0x148] ss:$16 sps:$4 sm:$0xff]  }
 0x49f   :  { %3426 = vmatprep.subr.bf16.mxu0 %v6701_v57  ;;  %v6767_v57 = vld [vmem:[#allocation18 + $0x124] ss:$16 sps:$4 sm:$0xff]  }
 0x4a2   :  { %3427 = vmatpush1.bf16.msra.mxu0 %v6699_v60  ;;  %v6770_v60 = vld [vmem:[#allocation18 + $0x12c] ss:$16 sps:$4 sm:$0xff]  }
 0x4a3   :  { %3428 = vmatprep.subr.bf16.mxu0 %v6707_v62  ;;  %v6765_v62 = vld [vmem:[#allocation18 + $0x120] ss:$16 sps:$4 sm:$0xff]  }
 0x4a6   :  { %3429 = vmatpush1.bf16.msra.mxu0 %v6705_v63  ;;  %v6768_v63 = vld [vmem:[#allocation18 + $0x128] ss:$16 sps:$4 sm:$0xff]  }
 0x4a7   :  { %3430 = vmatprep.subr.bf16.mxu0 %v6713_v2  ;;  %v6773_v2 = vld [vmem:[#allocation18 + $0x104] ss:$16 sps:$4 sm:$0xff]  }
 0x4aa   :  { %3431 = vmatpush1.bf16.msra.mxu0 %v6711_v3  ;;  %v6776_v3 = vld [vmem:[#allocation18 + $0x10c] ss:$16 sps:$4 sm:$0xff]  }
 0x4ab   :  { %3432 = vmatprep.subr.bf16.mxu0 %v6719_v4  ;;  %v6771_v4 = vld [vmem:[#allocation18 + $0x100] ss:$16 sps:$4 sm:$0xff]  }
 0x4ae   :  { %3433 = vmatpush1.bf16.msra.mxu0 %v6717_v5  ;;  %v6774_v5 = vld [vmem:[#allocation18 + $0x108] ss:$16 sps:$4 sm:$0xff]  }
 0x4af   :  { %3434 = vmatprep.subr.bf16.mxu0 %v6725_v6  ;;  %v6779_v6 = vld [vmem:[#allocation20 + $0x18c] ss:$28 sps:$4 sm:$0xff]  }
 0x4b2   :  { %3435 = vmatpush1.bf16.msra.mxu0 %v6723_v8  ;;  %v6782_v8 = vld [vmem:[#allocation20 + $0x50c] ss:$28 sps:$4 sm:$0xff]  }
 0x4b3   :  { %3436 = vmatprep.subr.bf16.mxu0 %v6731_v9  ;;  %v2877_v9 = vld [vmem:[%s7742_s12] sm:$0x3] }
 0x4b6   :  { %3437 = vmatpush2.bf16.msra.mxu0 %v6729_v10  ;;  %v2882_v10 = vrot.slane %v2877_v9, %v7615_v27 }
 0x4b7   :  { %3438 = vmatprep.subr.bf16.mxu0 %v6737_v11  ;;  %v2886_v11 = vrot.slane %v2877_v9, %v7618_v28  ;;  %v6843_v9 = vld [vmem:[#allocation20 + $0x2a0] ss:$28 sps:$4 sm:$0xff]  }
 0x4ba   :  { %3439 = vmatpush2.bf16.msra.mxu0 %v6735_v12 }
 0x4bb   :  { %3440 = vmatprep.subr.bf16.mxu0 %v6743_v15 }
 0x4be   :  { %3441 = vmatpush2.bf16.msra.mxu0 %v6741_v16 }
 0x4bf   :  { %3442 = vmatprep.subr.bf16.mxu0 %v6749_v7 }
 0x4c2   :  { %3443 = vmatpush2.bf16.msra.mxu0 %v6747_v17 }
 0x4c3   :  { %3444 = vmatprep.subr.bf16.mxu0 %v6755_v18 }
 0x4c6   :  { %3445 = vmatpush2.bf16.msra.mxu0 %v6753_v19 }
 0x4c7   :  { %3446 = vmatprep.subr.bf16.mxu0 %v6761_v20 }
 0x4ca   :  { %3447 = vmatpush2.bf16.msra.mxu0 %v6759_v14 }
 0x4cb   :  { %3448 = vmatprep.subr.bf16.mxu0 %v6767_v57  ;;  %v6833_v57 = vld [vmem:[#allocation20 + $0x314] ss:$28 sps:$4 sm:$0xff]  }
 0x4ce   :  { %3449 = vmatpush2.bf16.msra.mxu0 %v6765_v62  ;;  %v6831_v62 = vld [vmem:[#allocation20 + $0x310] ss:$28 sps:$4 sm:$0xff]  }
 0x4cf   :  { %3450 = vmatprep.subr.bf16.mxu0 %v6773_v2  ;;  %v6839_v2 = vld [vmem:[#allocation20 + $0x2dc] ss:$28 sps:$4 sm:$0xff]  }
 0x4d2   :  { %3451 = vmatpush2.bf16.msra.mxu0 %v6771_v4  ;;  %v6837_v4 = vld [vmem:[#allocation20 + $0x2d8] ss:$28 sps:$4 sm:$0xff]  }
 0x4d3   :  { %4955 = vmatprep.subr.bf16.mxu0 %v6779_v6  ;;  %v6845_v6 = vld [vmem:[#allocation20 + $0x2a4] ss:$28 sps:$4 sm:$0xff]  }
 0x555   :  { %v2853_v23 = vpop.f32.mrf.mxu0 }
 0x556   :  { %v2854_v24 = vadd.f32 %v5721_v22, %v2853_v23  ;;  %v6777_v22 = vld [vmem:[#allocation20 + $0x188] ss:$28 sps:$4 sm:$0xff]  }
 0x557   :  { %v6166_v25 = vpop.f32.mrf.mxu0  ;;  %v6780_v23 = vld [vmem:[#allocation20 + $0x508] ss:$28 sps:$4 sm:$0xff]  }
 0x558   :  { %v2859_v52 = vmax.f32 %v2854_v24, 0.0  ;;  %v6785_v25 = vld [vmem:[#allocation20 + $0x154] ss:$28 sps:$4 sm:$0xff]  }
 0x559   :  { %v2856_v58 = vpop.f32.mrf.mxu0 }
 0x55a   :  { %v2860_v29 = vpack.c.bf16 %v2859_v52, %v2859_v52  ;;  %v6788_v52 = vld [vmem:[#allocation20 + $0x4d4] ss:$28 sps:$4 sm:$0xff]  }
 0x55b   :  { %v6167_v31 = vpop.f32.mrf.mxu0  ;;  %v6783_v58 = vld [vmem:[#allocation20 + $0x150] ss:$28 sps:$4 sm:$0xff]  }
 0x55c   :  { %3002 = vmatmul.mubr.bf16.vlgmr.msra.gmra.mxu1 %v2860_v29  ;;  %v6791_v29 = vld [vmem:[#allocation20 + $0x11c] ss:$28 sps:$4 sm:$0xff]  }
 0x55d   :  { %3462 = vmatpush1.bf16.msra.mxu1 %v6684_v26  ;;  %v6786_v26 = vld [vmem:[#allocation20 + $0x4d0] ss:$28 sps:$4 sm:$0xff]   ;;  %v6789_v31 = vld [vmem:[#allocation20 + $0x118] ss:$28 sps:$4 sm:$0xff]  }
 0x55e   :  { %3463 = vmatprep.subr.bf16.mxu1 %v6692_v30  ;;  %v6794_v30 = vld [vmem:[#allocation20 + $0x49c] ss:$28 sps:$4 sm:$0xff]  }
 0x561   :  { %3464 = vmatpush1.bf16.msra.mxu1 %v6690_v32  ;;  %v6792_v32 = vld [vmem:[#allocation20 + $0x498] ss:$28 sps:$4 sm:$0xff]  }
 0x562   :  { %3465 = vmatprep.subr.bf16.mxu1 %v6698_v0  ;;  %v6797_v0 = vld [vmem:[#allocation20 + $0xe4] ss:$28 sps:$4 sm:$0xff]  }
 0x565   :  { %3466 = vmatpush1.bf16.msra.mxu1 %v6696_v33  ;;  %v6800_v33 = vld [vmem:[#allocation20 + $0x464] ss:$28 sps:$4 sm:$0xff]  }
 0x566   :  { %3467 = vmatprep.subr.bf16.mxu1 %v6704_v34  ;;  %v6795_v34 = vld [vmem:[#allocation20 + $0xe0] ss:$28 sps:$4 sm:$0xff]  }
 0x569   :  { %3468 = vmatpush1.bf16.msra.mxu1 %v6702_v35  ;;  %v6798_v35 = vld [vmem:[#allocation20 + $0x460] ss:$28 sps:$4 sm:$0xff]  }
 0x56a   :  { %3469 = vmatprep.subr.bf16.mxu1 %v6710_v36  ;;  %v6803_v36 = vld [vmem:[#allocation20 + $0xac] ss:$28 sps:$4 sm:$0xff]  }
 0x56d   :  { %3470 = vmatpush1.bf16.msra.mxu1 %v6708_v37  ;;  %v6806_v37 = vld [vmem:[#allocation20 + $0x42c] ss:$28 sps:$4 sm:$0xff]  }
 0x56e   :  { %3471 = vmatprep.subr.bf16.mxu1 %v6716_v38  ;;  %v6801_v38 = vld [vmem:[#allocation20 + $0xa8] ss:$28 sps:$4 sm:$0xff]  }
 0x571   :  { %3472 = vmatpush1.bf16.msra.mxu1 %v6714_v39  ;;  %v6804_v39 = vld [vmem:[#allocation20 + $0x428] ss:$28 sps:$4 sm:$0xff]  }
 0x572   :  { %3473 = vmatprep.subr.bf16.mxu1 %v6722_v40  ;;  %v6809_v40 = vld [vmem:[#allocation20 + $0x74] ss:$28 sps:$4 sm:$0xff]  }
 0x575   :  { %3474 = vmatpush1.bf16.msra.mxu1 %v6720_v41  ;;  %v6812_v41 = vld [vmem:[#allocation20 + $0x3f4] ss:$28 sps:$4 sm:$0xff]  }
 0x576   :  { %3475 = vmatprep.subr.bf16.mxu1 %v6728_v44  ;;  %v6807_v44 = vld [vmem:[#allocation20 + $0x70] ss:$28 sps:$4 sm:$0xff]  }
 0x579   :  { %3476 = vmatpush1.bf16.msra.mxu1 %v6726_v48  ;;  %v6810_v48 = vld [vmem:[#allocation20 + $0x3f0] ss:$28 sps:$4 sm:$0xff]  }
 0x57a   :  { %3477 = vmatprep.subr.bf16.mxu1 %v6734_v49  ;;  %v6815_v49 = vld [vmem:[#allocation20 + $0x3c] ss:$28 sps:$4 sm:$0xff]  }
 0x57d   :  { %3478 = vmatpush2.bf16.msra.mxu1 %v6732_v50  ;;  %v6818_v50 = vld [vmem:[#allocation20 + $0x3bc] ss:$28 sps:$4 sm:$0xff]  }
 0x57e   :  { %3479 = vmatprep.subr.bf16.mxu1 %v6740_v13  ;;  %v6813_v13 = vld [vmem:[#allocation20 + $0x38] ss:$28 sps:$4 sm:$0xff]  }
 0x581   :  { %3480 = vmatpush2.bf16.msra.mxu1 %v6738_v42  ;;  %v6816_v42 = vld [vmem:[#allocation20 + $0x3b8] ss:$28 sps:$4 sm:$0xff]  }
 0x582   :  { %3481 = vmatprep.subr.bf16.mxu1 %v6746_v46  ;;  %v6821_v46 = vld [vmem:[#allocation20 + $0x4] ss:$28 sps:$4 sm:$0xff]  }
 0x585   :  { %3482 = vmatpush2.bf16.msra.mxu1 %v6744_v51  ;;  %v6824_v51 = vld [vmem:[#allocation20 + $0x384] ss:$28 sps:$4 sm:$0xff]  }
 0x586   :  { %3483 = vmatprep.subr.bf16.mxu1 %v6752_v43  ;;  %v6819_v43 = vld [vmem:[#allocation20] ss:$28 sps:$4 sm:$0xff]  }
 0x589   :  { %3484 = vmatpush2.bf16.msra.mxu1 %v6750_v54  ;;  %v6822_v54 = vld [vmem:[#allocation20 + $0x380] ss:$28 sps:$4 sm:$0xff]  }
 0x58a   :  { %3485 = vmatprep.subr.bf16.mxu1 %v6758_v55  ;;  %v6827_v55 = vld [vmem:[#allocation20 + $0x34c] ss:$28 sps:$4 sm:$0xff]  }
 0x58d   :  { %3486 = vmatpush2.bf16.msra.mxu1 %v6756_v47  ;;  %v6830_v47 = vld [vmem:[#allocation20 + $0x6cc] ss:$28 sps:$4 sm:$0xff]  }
 0x58e   :  { %3487 = vmatprep.subr.bf16.mxu1 %v6764_v56  ;;  %v6825_v56 = vld [vmem:[#allocation20 + $0x348] ss:$28 sps:$4 sm:$0xff]  }
 0x591   :  { %3488 = vmatpush2.bf16.msra.mxu1 %v6762_v21  ;;  %v6828_v21 = vld [vmem:[#allocation20 + $0x6c8] ss:$28 sps:$4 sm:$0xff]  }
 0x592   :  { %3489 = vmatprep.subr.bf16.mxu1 %v6770_v60  ;;  %v6836_v60 = vld [vmem:[#allocation20 + $0x694] ss:$28 sps:$4 sm:$0xff]  }
 0x595   :  { %3490 = vmatpush2.bf16.msra.mxu1 %v6768_v63  ;;  %v6834_v63 = vld [vmem:[#allocation20 + $0x690] ss:$28 sps:$4 sm:$0xff]  }
 0x596   :  { %3491 = vmatprep.subr.bf16.mxu1 %v6776_v3  ;;  %v6842_v3 = vld [vmem:[#allocation20 + $0x65c] ss:$28 sps:$4 sm:$0xff]  }
 0x599   :  { %3492 = vmatpush2.bf16.msra.mxu1 %v6774_v5  ;;  %v6840_v5 = vld [vmem:[#allocation20 + $0x658] ss:$28 sps:$4 sm:$0xff]  }
 0x59a   :  { %4996 = vmatprep.subr.bf16.mxu1 %v6782_v8  ;;  %v6848_v8 = vld [vmem:[#allocation20 + $0x624] ss:$28 sps:$4 sm:$0xff]  }
 0x61c   :  { %v3003_v12 = vpop.f32.mrf.mxu1 }
 0x61d   :  { %v3004_v15 = vadd.f32 %v3003_v12, %v2882_v10  ;;  %v6846_v10 = vld [vmem:[#allocation20 + $0x620] ss:$28 sps:$4 sm:$0xff]   ;;  %v6854_v12 = vld [vmem:[#allocation20 + $0x5ec] ss:$28 sps:$4 sm:$0xff]  }
 0x61e   :  { %v3005_v16 = vpop.f32.mrf.mxu1 }
 0x61f   :  { %v3006_v7 = vadd.f32 %v3005_v16, %v2886_v11  ;;  %v3010_v17 = vmax.f32 %v3004_v15, 0.0  ;;  %v6851_v11 = vld [vmem:[#allocation20 + $0x26c] ss:$28 sps:$4 sm:$0xff]  }
 0x620   :  { %v3007_v18 = vpop.f32.mrf.mxu1  ;;  %v6849_v15 = vld [vmem:[#allocation20 + $0x268] ss:$28 sps:$4 sm:$0xff]  }
 0x621   :  { %v3011_v19 = vmax.f32 %v3006_v7, 0.0  ;;  %v3012_v24 = vpack.c.bf16 %v3010_v17, %v3010_v17  ;;  %v6852_v16 = vld [vmem:[#allocation20 + $0x5e8] ss:$28 sps:$4 sm:$0xff]   ;;  %v6857_v7 = vld [vmem:[#allocation20 + $0x234] ss:$28 sps:$4 sm:$0xff]  }
 0x622   :  { %v3008_v20 = vpop.f32.mrf.mxu1  ;;  %v6860_v17 = vld [vmem:[#allocation20 + $0x5b4] ss:$28 sps:$4 sm:$0xff]  }
 0x623   :  { %v3013_v14 = vpack.c.bf16 %v3011_v19, %v3011_v19  ;;  %v6855_v18 = vld [vmem:[#allocation20 + $0x230] ss:$28 sps:$4 sm:$0xff]   ;;  %v6863_v20 = vld [vmem:[#allocation20 + $0x1fc] ss:$28 sps:$4 sm:$0xff]  }
 0x624   :  { %v6858_v19 = vld [vmem:[#allocation20 + $0x5b0] ss:$28 sps:$4 sm:$0xff]  }
 0x625   :  { %3452 = vmatprep.mubr.bf16.mxu0 %v3013_v14  ;;  %3493 = vmatprep.mubr.bf16.mxu1 %v3013_v14  ;;  %v6866_v14 = vld [vmem:[#allocation20 + $0x57c] ss:$28 sps:$4 sm:$0xff]  }
 0x626   :  { %3453 = vmatmul.mubr.bf16.vlgmr.msra.gmra.mxu0 %v3012_v24  ;;  %3494 = vmatmul.mubr.bf16.vlgmr.msra.gmra.mxu1 %v3012_v24  ;;  %v6869_v24 = vld [vmem:[#allocation20 + $0x1c4] ss:$28 sps:$4 sm:$0xff]  }
 0x627   :  { %4956 = vmatpush1.bf16.msra.mxu0 %v6777_v22  ;;  %4997 = vmatpush1.bf16.msra.mxu1 %v6780_v23  ;;  %v6861_v22 = vld [vmem:[#allocation20 + $0x1f8] ss:$28 sps:$4 sm:$0xff]  }
 0x628   :  { %4957 = vmatprep.subr.bf16.mxu0 %v6785_v25  ;;  %4998 = vmatprep.subr.bf16.mxu1 %v6788_v52  ;;  %v6864_v23 = vld [vmem:[#allocation20 + $0x578] ss:$28 sps:$4 sm:$0xff]   ;;  %v6872_v25 = vld [vmem:[#allocation20 + $0x544] ss:$28 sps:$4 sm:$0xff]  }
 0x629   :  { %v6867_v52 = vld [vmem:[#allocation20 + $0x1c0] ss:$28 sps:$4 sm:$0xff]  }
 0x62b   :  { %4958 = vmatpush1.bf16.msra.mxu0 %v6783_v58  ;;  %4999 = vmatpush1.bf16.msra.mxu1 %v6786_v26  ;;  %v6870_v58 = vld [vmem:[#allocation20 + $0x540] ss:$28 sps:$4 sm:$0xff]   ;;  %v6875_v26 = vld [vmem:[#allocation20 + $0x194] ss:$28 sps:$4 sm:$0xff]  }
 0x62c   :  { %4959 = vmatprep.subr.bf16.mxu0 %v6791_v29  ;;  %5000 = vmatprep.subr.bf16.mxu1 %v6794_v30  ;;  %v6878_v29 = vld [vmem:[#allocation20 + $0x514] ss:$28 sps:$4 sm:$0xff]   ;;  %v3078_v30 = vld [vmem:[%s7744_s14] sm:$0xf] }
 0x62f   :  { %4960 = vmatpush1.bf16.msra.mxu0 %v6789_v31  ;;  %5001 = vmatpush1.bf16.msra.mxu1 %v6792_v32  ;;  %v3083_v31 = vrot.slane %v3078_v30, %v7615_v27  ;;  %v3091_v32 = vrot.slane %v3078_v30, %v7627_v61 }
 0x630   :  { %4961 = vmatprep.subr.bf16.mxu0 %v6797_v0  ;;  %5002 = vmatprep.subr.bf16.mxu1 %v6800_v33  ;;  %v3087_v0 = vrot.slane %v3078_v30, %v7618_v28  ;;  %v3095_v33 = vrot.slane %v3078_v30, %v7630_v1  ;;  %v6921_v30 = vld [vmem:[#allocation20 + $0x350] ss:$28 sps:$4 sm:$0xff]  }
 0x633   :  { %4962 = vmatpush1.bf16.msra.mxu0 %v6795_v34  ;;  %5003 = vmatpush1.bf16.msra.mxu1 %v6798_v35 }
 0x634   :  { %4963 = vmatprep.subr.bf16.mxu0 %v6803_v36  ;;  %5004 = vmatprep.subr.bf16.mxu1 %v6806_v37 }
 0x637   :  { %4964 = vmatpush1.bf16.msra.mxu0 %v6801_v38  ;;  %5005 = vmatpush1.bf16.msra.mxu1 %v6804_v39 }
 0x638   :  { %4965 = vmatprep.subr.bf16.mxu0 %v6809_v40  ;;  %5006 = vmatprep.subr.bf16.mxu1 %v6812_v41 }
 0x63b   :  { %4966 = vmatpush1.bf16.msra.mxu0 %v6807_v44  ;;  %5007 = vmatpush1.bf16.msra.mxu1 %v6810_v48 }
 0x63c   :  { %4967 = vmatprep.subr.bf16.mxu0 %v6815_v49  ;;  %5008 = vmatprep.subr.bf16.mxu1 %v6818_v50 }
 0x63f   :  { %4968 = vmatpush1.bf16.msra.mxu0 %v6813_v13  ;;  %5009 = vmatpush1.bf16.msra.mxu1 %v6816_v42 }
 0x640   :  { %4969 = vmatprep.subr.bf16.mxu0 %v6821_v46  ;;  %5010 = vmatprep.subr.bf16.mxu1 %v6824_v51 }
 0x643   :  { %4970 = vmatpush1.bf16.msra.mxu0 %v6819_v43  ;;  %5011 = vmatpush1.bf16.msra.mxu1 %v6822_v54 }
 0x644   :  { %4971 = vmatprep.subr.bf16.mxu0 %v6827_v55  ;;  %5012 = vmatprep.subr.bf16.mxu1 %v6830_v47  ;;  %v6873_v55 = vld [vmem:[#allocation20 + $0x190] ss:$28 sps:$4 sm:$0xff]  }
 0x645   :  { %v6876_v47 = vld [vmem:[#allocation20 + $0x510] ss:$28 sps:$4 sm:$0xff]  }
 0x647   :  { %4972 = vmatpush2.bf16.msra.mxu0 %v6825_v56  ;;  %5013 = vmatpush2.bf16.msra.mxu1 %v6828_v21 }
 0x648   :  { %4973 = vmatprep.subr.bf16.mxu0 %v6833_v57  ;;  %5014 = vmatprep.subr.bf16.mxu1 %v6836_v60  ;;  %v6881_v57 = vld [vmem:[#allocation20 + $0x15c] ss:$28 sps:$4 sm:$0xff]  }
 0x649   :  { %v6884_v60 = vld [vmem:[#allocation20 + $0x4dc] ss:$28 sps:$4 sm:$0xff]  }
 0x64b   :  { %4974 = vmatpush2.bf16.msra.mxu0 %v6831_v62  ;;  %5015 = vmatpush2.bf16.msra.mxu1 %v6834_v63  ;;  %v6879_v62 = vld [vmem:[#allocation20 + $0x158] ss:$28 sps:$4 sm:$0xff]  }
 0x64c   :  { %4975 = vmatprep.subr.bf16.mxu0 %v6839_v2  ;;  %5016 = vmatprep.subr.bf16.mxu1 %v6842_v3  ;;  %v6882_v63 = vld [vmem:[#allocation20 + $0x4d8] ss:$28 sps:$4 sm:$0xff]   ;;  %v6887_v2 = vld [vmem:[#allocation20 + $0x124] ss:$28 sps:$4 sm:$0xff]  }
 0x64d   :  { %v6890_v3 = vld [vmem:[#allocation20 + $0x4a4] ss:$28 sps:$4 sm:$0xff]  }
 0x64f   :  { %4976 = vmatpush2.bf16.msra.mxu0 %v6837_v4  ;;  %5017 = vmatpush2.bf16.msra.mxu1 %v6840_v5  ;;  %v6885_v4 = vld [vmem:[#allocation20 + $0x120] ss:$28 sps:$4 sm:$0xff]  }
 0x650   :  { %4977 = vmatprep.subr.bf16.mxu0 %v6845_v6  ;;  %5018 = vmatprep.subr.bf16.mxu1 %v6848_v8  ;;  %v6888_v5 = vld [vmem:[#allocation20 + $0x4a0] ss:$28 sps:$4 sm:$0xff]   ;;  %v6893_v6 = vld [vmem:[#allocation20 + $0xec] ss:$28 sps:$4 sm:$0xff]  }
 0x651   :  { %v6896_v8 = vld [vmem:[#allocation20 + $0x46c] ss:$28 sps:$4 sm:$0xff]  }
 0x653   :  { %4978 = vmatpush2.bf16.msra.mxu0 %v6843_v9  ;;  %5019 = vmatpush2.bf16.msra.mxu1 %v6846_v10  ;;  %v6891_v9 = vld [vmem:[#allocation20 + $0xe8] ss:$28 sps:$4 sm:$0xff]  }
 0x654   :  { %4979 = vmatprep.subr.bf16.mxu0 %v6851_v11  ;;  %5020 = vmatprep.subr.bf16.mxu1 %v6854_v12  ;;  %v6894_v10 = vld [vmem:[#allocation20 + $0x468] ss:$28 sps:$4 sm:$0xff]   ;;  %v6899_v11 = vld [vmem:[#allocation20 + $0xb4] ss:$28 sps:$4 sm:$0xff]  }
 0x655   :  { %v6902_v12 = vld [vmem:[#allocation20 + $0x434] ss:$28 sps:$4 sm:$0xff]  }
 0x657   :  { %4980 = vmatpush2.bf16.msra.mxu0 %v6849_v15  ;;  %5021 = vmatpush2.bf16.msra.mxu1 %v6852_v16  ;;  %v6897_v15 = vld [vmem:[#allocation20 + $0xb0] ss:$28 sps:$4 sm:$0xff]  }
 0x658   :  { %4981 = vmatprep.subr.bf16.mxu0 %v6857_v7  ;;  %5022 = vmatprep.subr.bf16.mxu1 %v6860_v17  ;;  %v6900_v16 = vld [vmem:[#allocation20 + $0x430] ss:$28 sps:$4 sm:$0xff]   ;;  %v6905_v7 = vld [vmem:[#allocation20 + $0x7c] ss:$28 sps:$4 sm:$0xff]  }
 0x659   :  { %v6908_v17 = vld [vmem:[#allocation20 + $0x3fc] ss:$28 sps:$4 sm:$0xff]  }
 0x65b   :  { %4982 = vmatpush2.bf16.msra.mxu0 %v6855_v18  ;;  %5023 = vmatpush2.bf16.msra.mxu1 %v6858_v19  ;;  %v6903_v18 = vld [vmem:[#allocation20 + $0x78] ss:$28 sps:$4 sm:$0xff]  }
 0x65c   :  { %4983 = vmatprep.subr.bf16.mxu0 %v6863_v20  ;;  %5024 = vmatprep.subr.bf16.mxu1 %v6866_v14  ;;  %v6906_v19 = vld [vmem:[#allocation20 + $0x3f8] ss:$28 sps:$4 sm:$0xff]   ;;  %v6911_v20 = vld [vmem:[#allocation20 + $0x44] ss:$28 sps:$4 sm:$0xff]  }
 0x65d   :  { %v6914_v14 = vld [vmem:[#allocation20 + $0x3c4] ss:$28 sps:$4 sm:$0xff]  }
 0x65f   :  { %4984 = vmatpush2.bf16.msra.mxu0 %v6861_v22  ;;  %5025 = vmatpush2.bf16.msra.mxu1 %v6864_v23  ;;  %v6909_v22 = vld [vmem:[#allocation20 + $0x40] ss:$28 sps:$4 sm:$0xff]  }
 0x660   :  { %4985 = vmatprep.subr.bf16.mxu0 %v6869_v24  ;;  %5026 = vmatprep.subr.bf16.mxu1 %v6872_v25  ;;  %v6912_v23 = vld [vmem:[#allocation20 + $0x3c0] ss:$28 sps:$4 sm:$0xff]   ;;  %v6917_v24 = vld [vmem:[#allocation20 + $0xc] ss:$28 sps:$4 sm:$0xff]  }
 0x661   :  { %v6920_v25 = vld [vmem:[#allocation20 + $0x38c] ss:$28 sps:$4 sm:$0xff]  }
 0x663   :  { %4986 = vmatpush2.bf16.msra.mxu0 %v6867_v52  ;;  %5027 = vmatpush2.bf16.msra.mxu1 %v6870_v58  ;;  %v6915_v52 = vld [vmem:[#allocation20 + $0x8] ss:$28 sps:$4 sm:$0xff]  }
 0x664   :  { %5037 = vmatprep.subr.bf16.mxu0 %v6875_v26  ;;  %5078 = vmatprep.subr.bf16.mxu1 %v6878_v29  ;;  %v6918_v58 = vld [vmem:[#allocation20 + $0x388] ss:$28 sps:$4 sm:$0xff]   ;;  %v6923_v26 = vld [vmem:[#allocation20 + $0x354] ss:$28 sps:$4 sm:$0xff]  }
 0x665   :  { %v6926_v29 = vld [vmem:[#allocation20 + $0x6d4] ss:$28 sps:$4 sm:$0xff]  }
 0x6e6   :  { %v3454_v34 = vpop.f32.mrf.mxu0  ;;  %v3495_v35 = vpop.f32.mrf.mxu1 }
 0x6e7   :  { %v3455_v36 = vadd.f32 %v3454_v34, %v3083_v31  ;;  %v3496_v37 = vadd.f32 %v3495_v35, %v3091_v32  ;;  %v6924_v31 = vld [vmem:[#allocation20 + $0x6d0] ss:$28 sps:$4 sm:$0xff]   ;;  %v6929_v32 = vld [vmem:[#allocation20 + $0x31c] ss:$28 sps:$4 sm:$0xff]   ;;  %v6935_v35 = vld [vmem:[#allocation20 + $0x2e4] ss:$28 sps:$4 sm:$0xff]  }
 0x6e8   :  { %v3456_v38 = vpop.f32.mrf.mxu0  ;;  %v3497_v39 = vpop.f32.mrf.mxu1  ;;  %v6930_v34 = vld [vmem:[#allocation20 + $0x698] ss:$28 sps:$4 sm:$0xff]  }
 0x6e9   :  { %v3457_v40 = vadd.f32 %v3456_v38, %v3087_v0  ;;  %v3498_v41 = vadd.f32 %v3497_v39, %v3095_v33  ;;  %v3502_v44 = vmax.f32 %v3455_v36, 0.0  ;;  %v3504_v48 = vmax.f32 %v3496_v37, 0.0  ;;  %v6932_v0 = vld [vmem:[#allocation20 + $0x69c] ss:$28 sps:$4 sm:$0xff]   ;;  %v6938_v36 = vld [vmem:[#allocation20 + $0x664] ss:$28 sps:$4 sm:$0xff]  }
 0x6ea   :  { %v3458_v49 = vpop.f32.mrf.mxu0  ;;  %v3499_v50 = vpop.f32.mrf.mxu1  ;;  %v6927_v33 = vld [vmem:[#allocation20 + $0x318] ss:$28 sps:$4 sm:$0xff]   ;;  %v6933_v37 = vld [vmem:[#allocation20 + $0x2e0] ss:$28 sps:$4 sm:$0xff]   ;;  %v6941_v39 = vld [vmem:[#allocation20 + $0x2ac] ss:$28 sps:$4 sm:$0xff]  }
 0x6eb   :  { %v3503_v13 = vmax.f32 %v3457_v40, 0.0  ;;  %v3505_v42 = vmax.f32 %v3498_v41, 0.0  ;;  %v7680_v56 = vpack.c.bf16 %v3502_v44, %v3502_v44  ;;  %v7682_v21 = vpack.c.bf16 %v3504_v48, %v3504_v48  ;;  %v6936_v38 = vld [vmem:[#allocation20 + $0x660] ss:$28 sps:$4 sm:$0xff]   ;;  %v6944_v40 = vld [vmem:[#allocation20 + $0x62c] ss:$28 sps:$4 sm:$0xff]  }
 0x6ec   :  { %v3459_v46 = vpop.f32.mrf.mxu0  ;;  %v3500_v51 = vpop.f32.mrf.mxu1  ;;  %v6939_v41 = vld [vmem:[#allocation20 + $0x2a8] ss:$28 sps:$4 sm:$0xff]   ;;  %v6947_v48 = vld [vmem:[#allocation20 + $0x274] ss:$28 sps:$4 sm:$0xff]  }
 0x6ed   :  { %v7676_v43 = vpack.c.bf16 %v3503_v13, %v3503_v13  ;;  %v7678_v54 = vpack.c.bf16 %v3505_v42, %v3505_v42  ;;  %v6942_v44 = vld [vmem:[#allocation20 + $0x628] ss:$28 sps:$4 sm:$0xff]   ;;  %v6950_v49 = vld [vmem:[#allocation20 + $0x5f4] ss:$28 sps:$4 sm:$0xff]   ;;  %v6953_v42 = vld [vmem:[#allocation20 + $0x23c] ss:$28 sps:$4 sm:$0xff]  }
 0x6ee   :  { %v6945_v50 = vld [vmem:[#allocation20 + $0x270] ss:$28 sps:$4 sm:$0xff]   ;;  %v6956_v46 = vld [vmem:[#allocation20 + $0x5bc] ss:$28 sps:$4 sm:$0xff]  }
 0x6ef   :  { %4987 = vmatprep.mubr.bf16.mxu0 %v7676_v43  ;;  %5028 = vmatprep.mubr.bf16.mxu1 %v7678_v54  ;;  %v6948_v13 = vld [vmem:[#allocation20 + $0x5f0] ss:$28 sps:$4 sm:$0xff]   ;;  %v6951_v51 = vld [vmem:[#allocation20 + $0x238] ss:$28 sps:$4 sm:$0xff]  }
 0x6f0   :  { %4988 = vmatmul.mubr.bf16.vlgmr.msra.gmra.mxu0 %v7680_v56  ;;  %5029 = vmatmul.mubr.bf16.vlgmr.msra.gmra.mxu1 %v7682_v21 }
 0x6f1   :  { %5038 = vmatpush1.bf16.msra.mxu0 %v6873_v55  ;;  %5079 = vmatpush1.bf16.msra.mxu1 %v6876_v47  ;;  %v6954_v55 = vld [vmem:[#allocation20 + $0x5b8] ss:$28 sps:$4 sm:$0xff]   ;;  %v6959_v47 = vld [vmem:[#allocation20 + $0x204] ss:$28 sps:$4 sm:$0xff]  }
 0x6f2   :  { %5069 = vmatprep.mubr.bf16.mxu0 %v7676_v43  ;;  %5110 = vmatprep.mubr.bf16.mxu1 %v7678_v54 }
 0x6f3   :  { %5039 = vmatprep.subr.bf16.mxu0 %v6881_v57  ;;  %5080 = vmatprep.subr.bf16.mxu1 %v6884_v60  ;;  %v6962_v57 = vld [vmem:[#allocation20 + $0x584] ss:$28 sps:$4 sm:$0xff]  }
 0x6f4   :  { %v6957_v60 = vld [vmem:[#allocation20 + $0x200] ss:$28 sps:$4 sm:$0xff]  }
 0x6f5   :  { %5040 = vmatpush1.bf16.msra.mxu0 %v6879_v62  ;;  %5081 = vmatpush1.bf16.msra.mxu1 %v6882_v63  ;;  %v6960_v62 = vld [vmem:[#allocation20 + $0x580] ss:$28 sps:$4 sm:$0xff]   ;;  %v6965_v63 = vld [vmem:[#allocation20 + $0x1cc] ss:$28 sps:$4 sm:$0xff]  }
 0x6f6   :  { %5041 = vmatprep.subr.bf16.mxu0 %v6887_v2  ;;  %5082 = vmatprep.subr.bf16.mxu1 %v6890_v3  ;;  %v6968_v2 = vld [vmem:[#allocation20 + $0x54c] ss:$28 sps:$4 sm:$0xff]  }
 0x6f7   :  { %v6963_v3 = vld [vmem:[#allocation20 + $0x1c8] ss:$28 sps:$4 sm:$0xff]  }
 0x6f9   :  { %5042 = vmatpush1.bf16.msra.mxu0 %v6885_v4  ;;  %5083 = vmatpush1.bf16.msra.mxu1 %v6888_v5  ;;  %v6966_v4 = vld [vmem:[#allocation20 + $0x548] ss:$28 sps:$4 sm:$0xff]   ;;  %v6971_v5 = vld [vmem:[#allocation20 + $0x19c] ss:$28 sps:$4 sm:$0xff]  }
 0x6fa   :  { %5043 = vmatprep.subr.bf16.mxu0 %v6893_v6  ;;  %5084 = vmatprep.subr.bf16.mxu1 %v6896_v8  ;;  %v6974_v6 = vld [vmem:[#allocation20 + $0x51c] ss:$28 sps:$4 sm:$0xff]  }
 0x6fb   :  { %v6969_v8 = vld [vmem:[#allocation20 + $0x198] ss:$28 sps:$4 sm:$0xff]  }
 0x6fd   :  { %5044 = vmatpush1.bf16.msra.mxu0 %v6891_v9  ;;  %5085 = vmatpush1.bf16.msra.mxu1 %v6894_v10  ;;  %v6972_v9 = vld [vmem:[#allocation20 + $0x518] ss:$28 sps:$4 sm:$0xff]   ;;  %v6977_v10 = vld [vmem:[#allocation20 + $0x164] ss:$28 sps:$4 sm:$0xff]  }
 0x6fe   :  { %5045 = vmatprep.subr.bf16.mxu0 %v6899_v11  ;;  %5086 = vmatprep.subr.bf16.mxu1 %v6902_v12  ;;  %v6980_v11 = vld [vmem:[#allocation20 + $0x4e4] ss:$28 sps:$4 sm:$0xff]  }
 0x6ff   :  { %v6975_v12 = vld [vmem:[#allocation20 + $0x160] ss:$28 sps:$4 sm:$0xff]  }
 0x701   :  { %5046 = vmatpush1.bf16.msra.mxu0 %v6897_v15  ;;  %5087 = vmatpush1.bf16.msra.mxu1 %v6900_v16  ;;  %v6978_v15 = vld [vmem:[#allocation20 + $0x4e0] ss:$28 sps:$4 sm:$0xff]   ;;  %v6983_v16 = vld [vmem:[#allocation20 + $0x12c] ss:$28 sps:$4 sm:$0xff]  }
 0x702   :  { %5047 = vmatprep.subr.bf16.mxu0 %v6905_v7  ;;  %5088 = vmatprep.subr.bf16.mxu1 %v6908_v17  ;;  %v6986_v7 = vld [vmem:[#allocation20 + $0x4ac] ss:$28 sps:$4 sm:$0xff]  }
 0x703   :  { %v6981_v17 = vld [vmem:[#allocation20 + $0x128] ss:$28 sps:$4 sm:$0xff]  }
 0x705   :  { %5048 = vmatpush1.bf16.msra.mxu0 %v6903_v18  ;;  %5089 = vmatpush1.bf16.msra.mxu1 %v6906_v19  ;;  %v6984_v18 = vld [vmem:[#allocation20 + $0x4a8] ss:$28 sps:$4 sm:$0xff]   ;;  %v6989_v19 = vld [vmem:[#allocation20 + $0xf4] ss:$28 sps:$4 sm:$0xff]  }
 0x706   :  { %5049 = vmatprep.subr.bf16.mxu0 %v6911_v20  ;;  %5090 = vmatprep.subr.bf16.mxu1 %v6914_v14  ;;  %v6992_v20 = vld [vmem:[#allocation20 + $0x474] ss:$28 sps:$4 sm:$0xff]  }
 0x707   :  { %v6987_v14 = vld [vmem:[#allocation20 + $0xf0] ss:$28 sps:$4 sm:$0xff]  }
 0x709   :  { %5050 = vmatpush1.bf16.msra.mxu0 %v6909_v22  ;;  %5091 = vmatpush1.bf16.msra.mxu1 %v6912_v23  ;;  %v6990_v22 = vld [vmem:[#allocation20 + $0x470] ss:$28 sps:$4 sm:$0xff]   ;;  %v6995_v23 = vld [vmem:[#allocation20 + $0xbc] ss:$28 sps:$4 sm:$0xff]  }
 0x70a   :  { %5051 = vmatprep.subr.bf16.mxu0 %v6917_v24  ;;  %5092 = vmatprep.subr.bf16.mxu1 %v6920_v25  ;;  %v6998_v24 = vld [vmem:[#allocation20 + $0x43c] ss:$28 sps:$4 sm:$0xff]  }
 0x70b   :  { %v6993_v25 = vld [vmem:[#allocation20 + $0xb8] ss:$28 sps:$4 sm:$0xff]  }
 0x70d   :  { %5052 = vmatpush1.bf16.msra.mxu0 %v6915_v52  ;;  %5093 = vmatpush1.bf16.msra.mxu1 %v6918_v58  ;;  %v6996_v52 = vld [vmem:[#allocation20 + $0x438] ss:$28 sps:$4 sm:$0xff]   ;;  %v7001_v58 = vld [vmem:[#allocation20 + $0x84] ss:$28 sps:$4 sm:$0xff]  }
 0x70e   :  { %5053 = vmatprep.subr.bf16.mxu0 %v6923_v26  ;;  %5094 = vmatprep.subr.bf16.mxu1 %v6926_v29  ;;  %v7004_v26 = vld [vmem:[#allocation20 + $0x404] ss:$28 sps:$4 sm:$0xff]  }
 0x70f   :  { %v6999_v29 = vld [vmem:[#allocation20 + $0x80] ss:$28 sps:$4 sm:$0xff]  }
 0x711   :  { %5054 = vmatpush2.bf16.msra.mxu0 %v6921_v30  ;;  %5095 = vmatpush2.bf16.msra.mxu1 %v6924_v31  ;;  %v7002_v30 = vld [vmem:[#allocation20 + $0x400] ss:$28 sps:$4 sm:$0xff]   ;;  %v7007_v31 = vld [vmem:[#allocation20 + $0x4c] ss:$28 sps:$4 sm:$0xff]  }
 0x712   :  { %5055 = vmatprep.subr.bf16.mxu0 %v6929_v32  ;;  %5096 = vmatprep.subr.bf16.mxu1 %v6932_v0  ;;  %v7010_v32 = vld [vmem:[#allocation20 + $0x3cc] ss:$28 sps:$4 sm:$0xff]  }
 0x713   :  { %v7005_v0 = vld [vmem:[#allocation20 + $0x48] ss:$28 sps:$4 sm:$0xff]  }
 0x715   :  { %5056 = vmatpush2.bf16.msra.mxu0 %v6927_v33  ;;  %5097 = vmatpush2.bf16.msra.mxu1 %v6930_v34  ;;  %v7008_v33 = vld [vmem:[#allocation20 + $0x3c8] ss:$28 sps:$4 sm:$0xff]   ;;  %v7013_v34 = vld [vmem:[#allocation20 + $0x14] ss:$28 sps:$4 sm:$0xff]  }
 0x716   :  { %5057 = vmatprep.subr.bf16.mxu0 %v6935_v35  ;;  %5098 = vmatprep.subr.bf16.mxu1 %v6938_v36  ;;  %v7016_v35 = vld [vmem:[#allocation20 + $0x394] ss:$28 sps:$4 sm:$0xff]  }
 0x717   :  { %v7011_v36 = vld [vmem:[#allocation20 + $0x10] ss:$28 sps:$4 sm:$0xff]  }
 0x719   :  { %5058 = vmatpush2.bf16.msra.mxu0 %v6933_v37  ;;  %5099 = vmatpush2.bf16.msra.mxu1 %v6936_v38  ;;  %v7014_v37 = vld [vmem:[#allocation20 + $0x390] ss:$28 sps:$4 sm:$0xff]   ;;  %v7019_v38 = vld [vmem:[#allocation20 + $0x35c] ss:$28 sps:$4 sm:$0xff]  }
 0x71a   :  { %5059 = vmatprep.subr.bf16.mxu0 %v6941_v39  ;;  %5100 = vmatprep.subr.bf16.mxu1 %v6944_v40  ;;  %v7022_v39 = vld [vmem:[#allocation20 + $0x6dc] ss:$28 sps:$4 sm:$0xff]  }
 0x71b   :  { %v7017_v40 = vld [vmem:[#allocation20 + $0x358] ss:$28 sps:$4 sm:$0xff]  }
 0x71d   :  { %5060 = vmatpush2.bf16.msra.mxu0 %v6939_v41  ;;  %5101 = vmatpush2.bf16.msra.mxu1 %v6942_v44  ;;  %v7020_v41 = vld [vmem:[#allocation20 + $0x6d8] ss:$28 sps:$4 sm:$0xff]   ;;  %v7025_v44 = vld [vmem:[#allocation20 + $0x324] ss:$28 sps:$4 sm:$0xff]  }
 0x71e   :  { %5061 = vmatprep.subr.bf16.mxu0 %v6947_v48  ;;  %5102 = vmatprep.subr.bf16.mxu1 %v6950_v49  ;;  %v7028_v48 = vld [vmem:[#allocation20 + $0x6a4] ss:$28 sps:$4 sm:$0xff]  }
 0x71f   :  { %v7023_v49 = vld [vmem:[#allocation20 + $0x320] ss:$28 sps:$4 sm:$0xff]  }
 0x721   :  { %5062 = vmatpush2.bf16.msra.mxu0 %v6945_v50  ;;  %5103 = vmatpush2.bf16.msra.mxu1 %v6948_v13  ;;  %v7026_v50 = vld [vmem:[#allocation20 + $0x6a0] ss:$28 sps:$4 sm:$0xff]   ;;  %v7031_v13 = vld [vmem:[#allocation20 + $0x2ec] ss:$28 sps:$4 sm:$0xff]  }
 0x722   :  { %5063 = vmatprep.subr.bf16.mxu0 %v6953_v42  ;;  %5104 = vmatprep.subr.bf16.mxu1 %v6956_v46  ;;  %v7034_v42 = vld [vmem:[#allocation20 + $0x66c] ss:$28 sps:$4 sm:$0xff]  }
 0x723   :  { %v7029_v46 = vld [vmem:[#allocation20 + $0x2e8] ss:$28 sps:$4 sm:$0xff]  }
 0x725   :  { %5064 = vmatpush2.bf16.msra.mxu0 %v6951_v51  ;;  %5105 = vmatpush2.bf16.msra.mxu1 %v6954_v55  ;;  %v7032_v51 = vld [vmem:[#allocation20 + $0x668] ss:$28 sps:$4 sm:$0xff]   ;;  %v7037_v55 = vld [vmem:[#allocation20 + $0x2b4] ss:$28 sps:$4 sm:$0xff]  }
 0x726   :  { %5065 = vmatprep.subr.bf16.mxu0 %v6959_v47  ;;  %5106 = vmatprep.subr.bf16.mxu1 %v6962_v57  ;;  %v7040_v47 = vld [vmem:[#allocation20 + $0x634] ss:$28 sps:$4 sm:$0xff]  }
 0x727   :  { %v7035_v57 = vld [vmem:[#allocation20 + $0x2b0] ss:$28 sps:$4 sm:$0xff]  }
 0x729   :  { %5066 = vmatpush2.bf16.msra.mxu0 %v6957_v60  ;;  %5107 = vmatpush2.bf16.msra.mxu1 %v6960_v62  ;;  %v7038_v60 = vld [vmem:[#allocation20 + $0x630] ss:$28 sps:$4 sm:$0xff]   ;;  %v7043_v62 = vld [vmem:[#allocation20 + $0x27c] ss:$28 sps:$4 sm:$0xff]  }
 0x72a   :  { %5067 = vmatprep.subr.bf16.mxu0 %v6965_v63  ;;  %5108 = vmatprep.subr.bf16.mxu1 %v6968_v2  ;;  %v7046_v63 = vld [vmem:[#allocation20 + $0x5fc] ss:$28 sps:$4 sm:$0xff]  }
 0x72b   :  { %v7041_v2 = vld [vmem:[#allocation20 + $0x278] ss:$28 sps:$4 sm:$0xff]  }
 0x72d   :  { %5068 = vmatpush2.bf16.msra.mxu0 %v6963_v3  ;;  %5109 = vmatpush2.bf16.msra.mxu1 %v6966_v4  ;;  %v7044_v3 = vld [vmem:[#allocation20 + $0x5f8] ss:$28 sps:$4 sm:$0xff]   ;;  %v7049_v4 = vld [vmem:[#allocation20 + $0x244] ss:$28 sps:$4 sm:$0xff]  }
 0x72e   :  { %5119 = vmatprep.subr.bf16.mxu0 %v6971_v5  ;;  %5160 = vmatprep.subr.bf16.mxu1 %v6974_v6  ;;  %v7052_v5 = vld [vmem:[#allocation20 + $0x5c4] ss:$28 sps:$4 sm:$0xff]  }
 0x72f   :  { %v7047_v6 = vld [vmem:[#allocation20 + $0x240] ss:$28 sps:$4 sm:$0xff]  }
 0x730   :  { %5070 = vmatmul.mubr.bf16.vlgmr.msra.gmra.mxu0 %v7680_v56  ;;  %5111 = vmatmul.mubr.bf16.vlgmr.msra.gmra.mxu1 %v7682_v21 }
 0x731   :  { %5120 = vmatpush1.bf16.msra.mxu0 %v6969_v8  ;;  %5151 = vmatprep.mubr.bf16.mxu0 %v7676_v43  ;;  %v7050_v8 = vld [vmem:[#allocation20 + $0x5c0] ss:$28 sps:$4 sm:$0xff]  }
 0x732   :  { %5161 = vmatpush1.bf16.msra.mxu1 %v6972_v9  ;;  %5192 = vmatprep.mubr.bf16.mxu1 %v7678_v54  ;;  %v7055_v9 = vld [vmem:[#allocation20 + $0x20c] ss:$28 sps:$4 sm:$0xff]  }
 0x733   :  { %5121 = vmatprep.subr.bf16.mxu0 %v6977_v10  ;;  %5162 = vmatprep.subr.bf16.mxu1 %v6980_v11  ;;  %v7058_v10 = vld [vmem:[#allocation20 + $0x58c] ss:$28 sps:$4 sm:$0xff]  }
 0x734   :  { %v7053_v11 = vld [vmem:[#allocation20 + $0x208] ss:$28 sps:$4 sm:$0xff]  }
 0x735   :  { %5122 = vmatpush1.bf16.msra.mxu0 %v6975_v12  ;;  %v7056_v12 = vld [vmem:[#allocation20 + $0x588] ss:$28 sps:$4 sm:$0xff]  }
 0x736   :  { %5163 = vmatpush1.bf16.msra.mxu1 %v6978_v15  ;;  %5123 = vmatprep.subr.bf16.mxu0 %v6983_v16  ;;  %v7061_v15 = vld [vmem:[#allocation20 + $0x1d4] ss:$28 sps:$4 sm:$0xff]  }
 0x737   :  { %5164 = vmatprep.subr.bf16.mxu1 %v6986_v7  ;;  %v7064_v16 = vld [vmem:[#allocation20 + $0x554] ss:$28 sps:$4 sm:$0xff]  }
 0x738   :  { %v7059_v7 = vld [vmem:[#allocation20 + $0x1d0] ss:$28 sps:$4 sm:$0xff]  }
 0x739   :  { %5124 = vmatpush1.bf16.msra.mxu0 %v6981_v17  ;;  %v7062_v17 = vld [vmem:[#allocation20 + $0x550] ss:$28 sps:$4 sm:$0xff]  }
 0x73a   :  { %5165 = vmatpush1.bf16.msra.mxu1 %v6984_v18  ;;  %5125 = vmatprep.subr.bf16.mxu0 %v6989_v19  ;;  %v7065_v18 = vld [vmem:[#allocation20 + $0x360] ss:$28 sps:$4 sm:$0xff]  }
 0x73b   :  { %5166 = vmatprep.subr.bf16.mxu1 %v6992_v20  ;;  %v7066_v19 = vld [vmem:[#allocation20 + $0x6e0] ss:$28 sps:$4 sm:$0xff]  }
 0x73c   :  { %v7067_v20 = vld [vmem:[#allocation20 + $0x1a0] ss:$28 sps:$4 sm:$0xff]  }
 0x73d   :  { %5126 = vmatpush1.bf16.msra.mxu0 %v6987_v14  ;;  %v7068_v14 = vld [vmem:[#allocation20 + $0x520] ss:$28 sps:$4 sm:$0xff]  }
 0x73e   :  { %5167 = vmatpush1.bf16.msra.mxu1 %v6990_v22  ;;  %5127 = vmatprep.subr.bf16.mxu0 %v6995_v23  ;;  %v7069_v22 = vld [vmem:[#allocation20 + $0x328] ss:$28 sps:$4 sm:$0xff]  }
 0x73f   :  { %5168 = vmatprep.subr.bf16.mxu1 %v6998_v24  ;;  %v7070_v23 = vld [vmem:[#allocation20 + $0x6a8] ss:$28 sps:$4 sm:$0xff]  }
 0x740   :  { %v7071_v24 = vld [vmem:[#allocation20 + $0x168] ss:$28 sps:$4 sm:$0xff]  }
 0x741   :  { %5128 = vmatpush1.bf16.msra.mxu0 %v6993_v25  ;;  %v7072_v25 = vld [vmem:[#allocation20 + $0x4e8] ss:$28 sps:$4 sm:$0xff]  }
 0x742   :  { %5169 = vmatpush1.bf16.msra.mxu1 %v6996_v52  ;;  %5129 = vmatprep.subr.bf16.mxu0 %v7001_v58  ;;  %v7073_v52 = vld [vmem:[#allocation20 + $0x2f0] ss:$28 sps:$4 sm:$0xff]  }
 0x743   :  { %5170 = vmatprep.subr.bf16.mxu1 %v7004_v26  ;;  %v7074_v58 = vld [vmem:[#allocation20 + $0x670] ss:$28 sps:$4 sm:$0xff]  }
 0x744   :  { %v7075_v26 = vld [vmem:[#allocation20 + $0x130] ss:$28 sps:$4 sm:$0xff]  }
 0x745   :  { %5130 = vmatpush1.bf16.msra.mxu0 %v6999_v29  ;;  %v7076_v29 = vld [vmem:[#allocation20 + $0x4b0] ss:$28 sps:$4 sm:$0xff]  }
 0x746   :  { %5171 = vmatpush1.bf16.msra.mxu1 %v7002_v30  ;;  %5131 = vmatprep.subr.bf16.mxu0 %v7007_v31  ;;  %v7077_v30 = vld [vmem:[#allocation20 + $0x2b8] ss:$28 sps:$4 sm:$0xff]  }
 0x747   :  { %5172 = vmatprep.subr.bf16.mxu1 %v7010_v32  ;;  %v7078_v31 = vld [vmem:[#allocation20 + $0x638] ss:$28 sps:$4 sm:$0xff]  }
 0x748   :  { %v7079_v32 = vld [vmem:[#allocation20 + $0xf8] ss:$28 sps:$4 sm:$0xff]  }
 0x749   :  { %5132 = vmatpush1.bf16.msra.mxu0 %v7005_v0  ;;  %v7081_v0 = vld [vmem:[#allocation20 + $0x280] ss:$28 sps:$4 sm:$0xff]  }
 0x74a   :  { %5173 = vmatpush1.bf16.msra.mxu1 %v7008_v33  ;;  %5133 = vmatprep.subr.bf16.mxu0 %v7013_v34  ;;  %v7082_v33 = vld [vmem:[#allocation20 + $0x600] ss:$28 sps:$4 sm:$0xff]  }
 0x74b   :  { %5174 = vmatprep.subr.bf16.mxu1 %v7016_v35  ;;  %v7084_v34 = vld [vmem:[#allocation20 + $0x440] ss:$28 sps:$4 sm:$0xff]   ;;  %v7085_v35 = vld [vmem:[#allocation20 + $0x248] ss:$28 sps:$4 sm:$0xff]  }
 0x74d   :  { %5134 = vmatpush1.bf16.msra.mxu0 %v7011_v36  ;;  %v7086_v36 = vld [vmem:[#allocation20 + $0x5c8] ss:$28 sps:$4 sm:$0xff]  }
 0x74e   :  { %5175 = vmatpush1.bf16.msra.mxu1 %v7014_v37  ;;  %5135 = vmatprep.subr.bf16.mxu0 %v7019_v38  ;;  %v7087_v37 = vld [vmem:[#allocation20 + $0x88] ss:$28 sps:$4 sm:$0xff]  }
 0x74f   :  { %5176 = vmatprep.subr.bf16.mxu1 %v7022_v39  ;;  %v7088_v38 = vld [vmem:[#allocation20 + $0x408] ss:$28 sps:$4 sm:$0xff]   ;;  %v7089_v39 = vld [vmem:[#allocation20 + $0x210] ss:$28 sps:$4 sm:$0xff]  }
 0x751   :  { %5136 = vmatpush2.bf16.msra.mxu0 %v7017_v40  ;;  %v7090_v40 = vld [vmem:[#allocation20 + $0x590] ss:$28 sps:$4 sm:$0xff]  }
 0x752   :  { %5177 = vmatpush2.bf16.msra.mxu1 %v7020_v41  ;;  %5137 = vmatprep.subr.bf16.mxu0 %v7025_v44  ;;  %v7091_v41 = vld [vmem:[#allocation20 + $0x50] ss:$28 sps:$4 sm:$0xff]  }
 0x753   :  { %5178 = vmatprep.subr.bf16.mxu1 %v7028_v48  ;;  %v7092_v44 = vld [vmem:[#allocation20 + $0x3d0] ss:$28 sps:$4 sm:$0xff]   ;;  %v7093_v48 = vld [vmem:[#allocation20 + $0x1d8] ss:$28 sps:$4 sm:$0xff]  }
 0x755   :  { %5138 = vmatpush2.bf16.msra.mxu0 %v7023_v49  ;;  %v7094_v49 = vld [vmem:[#allocation20 + $0x558] ss:$28 sps:$4 sm:$0xff]  }
 0x756   :  { %5179 = vmatpush2.bf16.msra.mxu1 %v7026_v50  ;;  %5139 = vmatprep.subr.bf16.mxu0 %v7031_v13  ;;  %v7095_v50 = vld [vmem:[#allocation20 + $0x18] ss:$28 sps:$4 sm:$0xff]  }
 0x757   :  { %5180 = vmatprep.subr.bf16.mxu1 %v7034_v42  ;;  %v7096_v13 = vld [vmem:[#allocation20 + $0x398] ss:$28 sps:$4 sm:$0xff]   ;;  %v7703_v42 = vld [vmem:[%s7746_s16] sm:$0xff]  ;;  %s7402_s16 = smov [#allocation21]  }
 0x758   :  { %s5393_s29 = sshll.u32 %s7402_s16, 4  ;;  %s5394_s29 = int_to_ptr.vmem [resolvable:$true] %s5393_s29 }
 0x759   :  { %5140 = vmatpush2.bf16.msra.mxu0 %v7029_v46  ;;  %v3771_v46 = vrot.slane %v7703_v42, %v7615_v27  ;;  %s7345_s3 = scalar_lea.vmem %s5394_s29, 112  ;;  %s7349_s2 = scalar_lea.vmem %s5394_s29, 128 }
 0x75a   :  { %5181 = vmatpush2.bf16.msra.mxu1 %v7032_v51  ;;  %5141 = vmatprep.subr.bf16.mxu0 %v7037_v55  ;;  %v3775_v51 = vrot.slane %v7703_v42, %v7618_v28  ;;  %p7346_p13 = scmp.ne.s32.totalorder %s5394_s29, %s7345_s3  ;;  %p7350_p0 = scmp.lt.s32.totalorder %s5394_s29, %s5394_s29 }
 0x75b   :  { %5182 = vmatprep.subr.bf16.mxu1 %v7040_v47  ;;  %p7351_p1 = scmp.lt.s32.totalorder %s7349_s2, %s7345_s3 }
 0x75d   :  { %5142 = vmatpush2.bf16.msra.mxu0 %v7035_v57  ;;  %p7352_p2 = por %p7351_p1, %p7350_p0 }
 0x75e   :  { %5183 = vmatpush2.bf16.msra.mxu1 %v7038_v60  ;;  %5143 = vmatprep.subr.bf16.mxu0 %v7043_v62 }
 0x75f   :  { %5184 = vmatprep.subr.bf16.mxu1 %v7046_v63  ;;  %p7353_p3 = pnand %p7352_p2, %p7346_p13 }
 0x761   :  { %5144 = vmatpush2.bf16.msra.mxu0 %v7041_v2 }
 0x762   :  { %5185 = vmatpush2.bf16.msra.mxu1 %v7044_v3  ;;  %5145 = vmatprep.subr.bf16.mxu0 %v7049_v4 }
 0x763   :  { %5186 = vmatprep.subr.bf16.mxu1 %v7052_v5 }
 0x765   :  { %5146 = vmatpush2.bf16.msra.mxu0 %v7047_v6 }
 0x766   :  { %5187 = vmatpush2.bf16.msra.mxu1 %v7050_v8  ;;  %5147 = vmatprep.subr.bf16.mxu0 %v7055_v9 }
 0x767   :  { %5188 = vmatprep.subr.bf16.mxu1 %v7058_v10 }
 0x769   :  { %5148 = vmatpush2.bf16.msra.mxu0 %v7053_v11 }
 0x76a   :  { %5189 = vmatpush2.bf16.msra.mxu1 %v7056_v12  ;;  %5149 = vmatprep.subr.bf16.mxu0 %v7061_v15 }
 0x76b   :  { %5190 = vmatprep.subr.bf16.mxu1 %v7064_v16  ;;  %v3779_v16 = vrot.slane %v7703_v42, %v7627_v61 }
 0x76d   :  { %5150 = vmatpush2.bf16.msra.mxu0 %v7059_v7  ;;  %v3783_v7 = vrot.slane %v7703_v42, %v7630_v1 }
 0x76e   :  { %5191 = vmatpush2.bf16.msra.mxu1 %v7062_v17  ;;  %6084 = vmatprep.subr.bf16.mxu0 %v7065_v18 }
 0x76f   :  { %6106 = vmatprep.subr.bf16.mxu1 %v7066_v19 }
 0x770   :  { %5152 = vmatmul.mubr.bf16.vlgmr.msra.gmra.mxu0 %v7680_v56 }
 0x771   :  { %5193 = vmatmul.mubr.bf16.vlgmr.msra.gmra.mxu1 %v7682_v21  ;;  %6085 = vmatpush3.bf16.msra.mxu0 %v7067_v20 }
 0x772   :  { %5233 = vmatprep.mubr.bf16.mxu0 %v7676_v43  ;;  %6107 = vmatpush3.bf16.msra.mxu1 %v7068_v14  ;;  %v7080_v43 = vld [vmem:[#allocation20 + $0x478] ss:$28 sps:$4 sm:$0xff]  }
 0x773   :  { %5273 = vmatprep.mubr.bf16.mxu1 %v7678_v54  ;;  %6086 = vmatprep.subr.bf16.mxu0 %v7069_v22  ;;  %v7083_v54 = vld [vmem:[#allocation20 + $0xc0] ss:$28 sps:$4 sm:$0xff]  }
 0x774   :  { %6108 = vmatprep.subr.bf16.mxu1 %v7070_v23 }
 0x775   :  { %6087 = vmatpush3.bf16.msra.mxu0 %v7071_v24 }
 0x776   :  { %6109 = vmatpush3.bf16.msra.mxu1 %v7072_v25  ;;  %6088 = vmatprep.subr.bf16.mxu0 %v7073_v52 }
 0x777   :  { %6110 = vmatprep.subr.bf16.mxu1 %v7074_v58 }
 0x779   :  { %6089 = vmatpush3.bf16.msra.mxu0 %v7075_v26 }
 0x77a   :  { %6111 = vmatpush3.bf16.msra.mxu1 %v7076_v29  ;;  %6090 = vmatprep.subr.bf16.mxu0 %v7077_v30 }
 0x77b   :  { %6112 = vmatprep.subr.bf16.mxu1 %v7078_v31 }
 0x77d   :  { %6091 = vmatpush3.bf16.msra.mxu0 %v7079_v32 }
 0x77e   :  { %6113 = vmatpush3.bf16.msra.mxu1 %v7080_v43  ;;  %6092 = vmatprep.subr.bf16.mxu0 %v7081_v0 }
 0x77f   :  { %6114 = vmatprep.subr.bf16.mxu1 %v7082_v33 }
 0x781   :  { %6093 = vmatpush3.bf16.msra.mxu0 %v7083_v54 }
 0x782   :  { %6115 = vmatpush3.bf16.msra.mxu1 %v7084_v34  ;;  %6094 = vmatprep.subr.bf16.mxu0 %v7085_v35 }
 0x783   :  { %6116 = vmatprep.subr.bf16.mxu1 %v7086_v36 }
 0x785   :  { %6095 = vmatpush3.bf16.msra.mxu0 %v7087_v37 }
 0x786   :  { %6117 = vmatpush3.bf16.msra.mxu1 %v7088_v38  ;;  %6096 = vmatprep.subr.bf16.mxu0 %v7089_v39 }
 0x787   :  { %6118 = vmatprep.subr.bf16.mxu1 %v7090_v40 }
 0x789   :  { %6097 = vmatpush3.bf16.msra.mxu0 %v7091_v41 }
 0x78a   :  { %6119 = vmatpush3.bf16.msra.mxu1 %v7092_v44  ;;  %6098 = vmatprep.subr.bf16.mxu0 %v7093_v48 }
 0x78b   :  { %6120 = vmatprep.subr.bf16.mxu1 %v7094_v49  ;;  %v3790_v49 = vsub.s32 5, %v7554_v53 }
 0x78d   :  { %6099 = vmatpush3.bf16.msra.mxu0 %v7095_v50  ;;  %v3786_v50 = vsub.s32 4, %v7554_v53 }
 0x78e   :  { %6121 = vmatpush3.bf16.msra.mxu1 %v7096_v13  ;;  %v3791_v13 = vrot.slane %v7703_v42, %v3790_v49 }
 0x790   :  { %5234 = vmatmul.mubr.bf16.vlgmr.msra.gmra.mxu0 %v7680_v56 }
 0x791   :  { %5274 = vmatmul.mubr.bf16.vlgmr.msra.gmra.mxu1 %v7682_v21 }
 0x7b0   :  { %v4989_v55 = vpop.f32.mrf.mxu0  ;;  %v5030_v47 = vpop.f32.mrf.mxu1 }
 0x7b1   :  { %v4990_v57 = vadd.f32 %v4989_v55, %v3771_v46  ;;  %v3787_v46 = vrot.slane %v7703_v42, %v3786_v50 }
 0x7b2   :  { %v4991_v60 = vpop.f32.mrf.mxu0  ;;  %v5032_v62 = vpop.f32.mrf.mxu1 }
 0x7b3   :  { %v5031_v63 = vadd.f32 %v5030_v47, %v4990_v57  ;;  %v4992_v56 = vadd.f32 %v4991_v60, %v3775_v51  ;;  %v3794_v60 = vsub.s32 6, %v7554_v53 }
 0x7b4   :  { %v4993_v2 = vpop.f32.mrf.mxu0  ;;  %v5034_v21 = vpop.f32.mrf.mxu1 }
 0x7b5   :  { %v6034_v3 = vmul.f32 -1.442695, %v5031_v63  ;;  %v5033_v4 = vadd.f32 %v5032_v62, %v4992_v56  ;;  %v3795_v21 = vrot.slane %v7703_v42, %v3794_v60 }
 0x7b6   :  { %v4994_v5 = vpop.f32.mrf.mxu0  ;;  %v5035_v6 = vpop.f32.mrf.mxu1 }
 0x7b7   :  { %7097 = vpow2.f32 %v6034_v3  ;;  %v6035_v8 = vmul.f32 -1.442695, %v5033_v4 }
 0x7b9   :  { %7099 = vpow2.f32 %v6035_v8 }
 0x7c4   :  { %v7098_v27 = vpop.eup %7097 }
 0x7c5   :  { %v5302_v9 = vadd.f32 1.0, %v7098_v27 }
 0x7c6   :  { %v7100_v10 = vpop.eup %7099 }
 0x7c7   :  { %v5303_v28 = vadd.f32 1.0, %v7100_v10  ;;  %7101 = vrcp.f32 %v5302_v9 }
 0x7c9   :  { %7103 = vrcp.f32 %v5303_v28 }
 0x7d4   :  { %v7102_v11 = vpop.eup %7101 }
 0x7d6   :  { %v7104_v12 = vpop.eup %7103 }
 0x7d7   :  { %v6041_v15 = vpack.c.bf16 %v7104_v12, %v7102_v11 }
 0x7d9   :  { %v5346_v54 = vrot.slane %v6041_v15, %v7557_v59 }
 0x7f0   :  { %v5071_v17 = vpop.f32.mrf.mxu0  ;;  %v5112_v18 = vpop.f32.mrf.mxu1 }
 0x7f1   :  { %v5072_v19 = vadd.f32 %v5071_v17, %v3779_v16 }
 0x7f2   :  { %v5073_v20 = vpop.f32.mrf.mxu0  ;;  %v5114_v14 = vpop.f32.mrf.mxu1 }
 0x7f3   :  { %v5113_v22 = vadd.f32 %v5112_v18, %v5072_v19  ;;  %v5074_v23 = vadd.f32 %v5073_v20, %v3783_v7 }
 0x7f4   :  { %v5075_v24 = vpop.f32.mrf.mxu0  ;;  %v5116_v25 = vpop.f32.mrf.mxu1 }
 0x7f5   :  { %v6036_v52 = vmul.f32 -1.442695, %v5113_v22  ;;  %v5115_v58 = vadd.f32 %v5114_v14, %v5074_v23 }
 0x7f6   :  { %v5076_v26 = vpop.f32.mrf.mxu0  ;;  %v5117_v29 = vpop.f32.mrf.mxu1 }
 0x7f7   :  { %7105 = vpow2.f32 %v6036_v52  ;;  %v6037_v30 = vmul.f32 -1.442695, %v5115_v58 }
 0x7f9   :  { %7107 = vpow2.f32 %v6037_v30 }
 0x804   :  { %v7106_v61 = vpop.eup %7105 }
 0x805   :  { %v5304_v31 = vadd.f32 1.0, %v7106_v61 }
 0x806   :  { %v7108_v32 = vpop.eup %7107 }
 0x807   :  { %v5305_v1 = vadd.f32 1.0, %v7108_v32  ;;  %7109 = vrcp.f32 %v5304_v31 }
 0x809   :  { %7111 = vrcp.f32 %v5305_v1 }
 0x814   :  { %v7110_v43 = vpop.eup %7109 }
 0x816   :  { %v7112_v0 = vpop.eup %7111 }
 0x817   :  { %v6042_v33 = vpack.c.bf16 %v7112_v0, %v7110_v43 }
 0x819   :  { %v5353_v34 = vrot.slane %v6042_v33, %v7557_v59 }
 0x81b   :  { %v5368_v35 = vcombine.low %v5346_v54, %v5353_v34 }
 0x81d   :  { %v5376_v52 = vrot.slane %v5368_v35, %v7557_v59 }
 0x830   :  { %v5153_v36 = vpop.f32.mrf.mxu0 }
 0x831   :  { %v5194_v37 = vpop.f32.mrf.mxu1  ;;  %v5154_v55 = vadd.f32 %v5153_v36, %v3787_v46 }
 0x832   :  { %v5155_v38 = vpop.f32.mrf.mxu0 }
 0x833   :  { %v5196_v39 = vpop.f32.mrf.mxu1  ;;  %v5156_v51 = vadd.f32 %v5155_v38, %v3791_v13  ;;  %v5195_v57 = vadd.f32 %v5194_v37, %v5154_v55 }
 0x834   :  { %v5157_v40 = vpop.f32.mrf.mxu0 }
 0x835   :  { %v5198_v41 = vpop.f32.mrf.mxu1  ;;  %v5197_v47 = vadd.f32 %v5196_v39, %v5156_v51  ;;  %v6038_v56 = vmul.f32 -1.442695, %v5195_v57 }
 0x836   :  { %v5158_v44 = vpop.f32.mrf.mxu0 }
 0x837   :  { %v5199_v48 = vpop.f32.mrf.mxu1  ;;  %v6039_v62 = vmul.f32 -1.442695, %v5197_v47 }
 0x839   :  { %7113 = vpow2.f32 %v6039_v62 }
 0x83a   :  { %7115 = vpow2.f32 %v6038_v56 }
 0x846   :  { %v7114_v53 = vpop.eup %7113 }
 0x847   :  { %v7116_v15 = vpop.eup %7115  ;;  %v5307_v16 = vadd.f32 1.0, %v7114_v53 }
 0x848   :  { %v5306_v7 = vadd.f32 1.0, %v7116_v15 }
 0x850   :  { %v6100_v63 = vpop.f32.mrf.mxu0 }
 0x851   :  { %v6122_v2 = vpop.f32.mrf.mxu1 }
 0x852   :  { %v6101_v3 = vpop.f32.mrf.mxu0 }
 0x853   :  { %v6102_v4 = vadd.f32 %v6101_v3, %v6100_v63  ;;  %v6123_v5 = vpop.f32.mrf.mxu1 }
 0x854   :  { %v6103_v6 = vpop.f32.mrf.mxu0  ;;  %v6124_v27 = vadd.f32 %v6123_v5, %v6122_v2 }
 0x855   :  { %v5236_v8 = vadd.f32 %v6102_v4, %v3795_v21  ;;  %v6125_v9 = vpop.f32.mrf.mxu1 }
 0x856   :  { %v6104_v10 = vpop.f32.mrf.mxu0 }
 0x857   :  { %v5276_v28 = vadd.f32 %v6124_v27, %v5236_v8  ;;  %v6126_v11 = vpop.f32.mrf.mxu1 }
 0x859   :  { %v6040_v12 = vmul.f32 -1.442695, %v5276_v28 }
 0x85b   :  { %7117 = vpow2.f32 %v6040_v12 }
 0x85c   :  { %7119 = vrcp.f32 %v5307_v16 }
 0x85d   :  { %7121 = vrcp.f32 %v5306_v7 }
 0x868   :  { %v7118_v42 = vpop.eup %7117 }
 0x869   :  { %v5308_v17 = vadd.f32 1.0, %v7118_v42  ;;  %v7120_v18 = vpop.eup %7119 }
 0x86a   :  { %v7122_v19 = vpop.eup %7121 }
 0x86b   :  { %7123 = vrcp.f32 %v5308_v17  ;;  %v6043_v20 = vpack.c.bf16 %v7120_v18, %v7122_v19 }
 0x86d   :  { %v5360_v23 = vrot.slane %v6043_v20, %v7557_v59 }
 0x878   :  { %v7124_v14 = vpop.eup %7123 }
 0x879   :  { %v5329_v22 = vpack.c.bf16 %v7124_v14, %v7124_v14 }
 0x87b   :  { %v5367_v24 = vrot.slane %v5329_v22, %v7557_v59 }
 0x87d   :  { %v5369_v25 = vcombine.low %v5360_v23, %v5367_v24 }
 0x87f   :  { %v5383_v58 = vrot.slane %v5369_v25, %v7557_v59 }
 0x881   :  { %v5384_v26 = vcombine.low %v5376_v52, %v5383_v58 }
 0x883   :  { %5386 = vst.msk [vmem:[#allocation21] sm:$0x7f] %vm7548_vm12, %v5384_v26 }
 0x884   :  { %7356 = shalt.err (!%p7353_p3)
}
 0x885   :  { %5396 = dma.vmem_to_hbm [thread:$0]  %s5394_s29, 112, %s7747_s17, [#allocation5]  }
 0x886   :  { %7377 = dma.done.wait [#allocation5], 112  }
 0x887   :  { %7378 = vsyncadd [#allocation5], 4294967184 }
 0x888   :  { %5400 = vsyncpa [#allocation4], 1 }
 0x889   :  { %5401 = vsyncpa [#allocation7], 1 }
 0x88a   :  { %5402 = vsyncpa [#allocation10], 1 }
 0x88b   :  { %5403 = vsyncpa [#allocation13], 1 }
 0x88c   :  { %5404 = vsyncpa [#allocation16], 1 }
 0x88d   :  { %5405 = vsyncpa [#allocation19], 1 }
 0x88e   :  { %5406 = vsyncpa [#allocation5], 1 }

</bundles_post_ra>
